<compile_context>
chip_gen: v6e
topology: v6e:2x2x1
jax: 0.10.0
libtpu: 0.0.40
codegen_flags: <defaults>
</compile_context>

<pallas_src>
import functools

import jax
import jax.numpy as jnp
import numpy as np
from jax import lax
from jax.experimental import pallas as pl
from jax.experimental.pallas import tpu as pltpu

LEAKY_SLOPE = 0.2
BN_EPS = 1e-5
KW = 4        # conv kernel size
PAD = 1       # conv padding
LANE = 128    # TPU lane width: Cout padded to a multiple of this (lane-dense stores)
SUB = 8       # f32 sublane tile

# Rows per M tile: 512 reaches ~85% of HBM roofline on v6e (vs ~63% at 256) and the
# double-buffered (TM, K) bf16 tile + resident (K, Cpad) weights stay well inside
# v7x's 64 MiB VMEM even at prod sizes (K <= 8192, Cpad <= 512).  v5e/v6e (128 MiB)
# can push this to 1024 together with a larger VMEM limit; v7x should not.
TM_MAX = 512
_VMEM_LIMIT = 48 * 1024 * 1024   # < v7x's 64 MiB physical; raise toward ~96 MiB on v5e/v6e


def _round_up(v, m):
    return ((v + m - 1) // m) * m


# ------------------------------- Pallas kernels --------------------------------

def _conv_bias_act_kernel(a_ref, w_ref, b_ref, y_ref, *, apply_leaky):
    """One M-tile: y = [leaky](a @ w + b).  a:(TM,K) bf16, w:(K,Cp) bf16, f32 acc."""
    y = jnp.dot(a_ref[...], w_ref[...], preferred_element_type=jnp.float32)
    y = y + b_ref[...]
    if apply_leaky:
        y = jnp.where(y >= 0, y, LEAKY_SLOPE * y)
    y_ref[...] = y.astype(y_ref.dtype)


def _conv_stats_kernel(a_ref, w_ref, y_ref, sum_ref, ssq_ref):
    """One M-tile of a bias-free conv (BatchNorm layer): y = a @ w (stored bf16), plus
    this tile's per-channel partial sum / sum-of-squares as an aligned (8, Cpad) block.
    Tiles are independent -> the grid axis is 'parallel' (megacore-safe).  The partial
    reduction folds sublane slabs with VPU adds only (no cross-lane XLU work) and is
    chunked over 128-lane slices to bound live f32 temporaries."""
    y = jnp.dot(a_ref[...], w_ref[...], preferred_element_type=jnp.float32)
    y_ref[...] = y.astype(y_ref.dtype)
    tm, cpad = y.shape
    for c0 in range(0, cpad, LANE):              # static lane-aligned chunks
        yc = y[:, c0:c0 + LANE]                  # (tm, 128) f32
        y3 = yc.reshape(tm // SUB, SUB, LANE)    # sublane-tile-aligned split
        sum_ref[:, c0:c0 + LANE] = jnp.sum(y3, axis=0)
        ssq_ref[:, c0:c0 + LANE] = jnp.sum(y3 * y3, axis=0)


# ------------------------------ pallas_call glue --------------------------------

def _row_spec(tm, k):
    # Tile over rows (M); full width.
    return pl.BlockSpec((tm, k), lambda i: (i, 0))


def _resident_spec(shape):
    # Same block for every grid step (weights / bias rows stay resident in VMEM).
    # TODO(synk): pipeline_mode=pl.Buffered(1) would drop their second buffer.
    return pl.BlockSpec(shape, lambda i: (0, 0))


def conv_bias_act(patches, wmat, bias_row, apply_leaky, tm, out_dtype):
    mp, k = patches.shape
    cpad = wmat.shape[1]
    return pl.pallas_call(
        functools.partial(_conv_bias_act_kernel, apply_leaky=apply_leaky),
        grid=(mp // tm,),
        in_specs=[_row_spec(tm, k),
                  _resident_spec((k, cpad)),
                  _resident_spec((1, cpad))],
        out_specs=_row_spec(tm, cpad),
        out_shape=jax.ShapeDtypeStruct((mp, cpad), out_dtype),
        compiler_params=pltpu.CompilerParams(
            dimension_semantics=("parallel",),
            vmem_limit_bytes=_VMEM_LIMIT),
    )(patches, wmat, bias_row)


def conv_stats(patches, wmat, tm, out_dtype):
    mp, k = patches.shape
    cpad = wmat.shape[1]
    nt = mp // tm
    return pl.pallas_call(
        _conv_stats_kernel,
        grid=(nt,),
        in_specs=[_row_spec(tm, k),
                  _resident_spec((k, cpad))],
        out_specs=(_row_spec(tm, cpad),
                   pl.BlockSpec((SUB, cpad), lambda i: (i, 0)),
                   pl.BlockSpec((SUB, cpad), lambda i: (i, 0))),
        out_shape=(jax.ShapeDtypeStruct((mp, cpad), out_dtype),
                   jax.ShapeDtypeStruct((nt * SUB, cpad), jnp.float32),
                   jax.ShapeDtypeStruct((nt * SUB, cpad), jnp.float32)),
        compiler_params=pltpu.CompilerParams(
            dimension_semantics=("parallel",),      # per-tile partials -> no cross-tile dep
            vmem_limit_bytes=_VMEM_LIMIT),
    )(patches, wmat)


# --------------------------------- model glue -----------------------------------

def _choose_m_tiling(m, tm_max=TM_MAX):
    """Return (tile_rows, padded_M).  Single full-size tile (rounded to a multiple of
    8 sublanes for unmasked stores) when m <= tm_max."""
    if m <= tm_max:
        mp = _round_up(m, SUB)
        return mp, mp
    return tm_max, _round_up(m, tm_max)          # tm_max is a multiple of 8


def im2col(x_nhwc, stride):
    """Extract 4x4 patches (pad=1) from a bf16 NHWC activation.
    Returns (N*OH*OW, KW*KW*C) bf16, OH, OW.  Under jit, the BN-affine + LeakyReLU of
    the previous layer (applied lazily by the caller) fuses into this gather, so the
    activation is read exactly once."""
    N, H, W, C = x_nhwc.shape
    OH = (H + 2 * PAD - KW) // stride + 1
    OW = (W + 2 * PAD - KW) // stride + 1
    xp = jnp.pad(x_nhwc, ((0, 0), (PAD, PAD), (PAD, PAD), (0, 0)))
    cols = []
    for kh in range(KW):
        for kw in range(KW):
            cols.append(
                xp[:, kh:kh + stride * OH:stride, kw:kw + stride * OW:stride, :])
    patches = jnp.stack(cols, axis=3)                 # (N, OH, OW, KW*KW, C)
    patches = patches.reshape(N * OH * OW, KW * KW * C)
    return patches, OH, OW


def init_params(key, input_nc=3, ndf=8, n_layers=3):
    """Deterministic synthetic init following the PyTorch module's structure."""
    cfgs = [dict(cin=input_nc, cout=ndf, stride=2, bias=True, bn=False, act=True)]
    nf_mult = 1
    for n in range(1, n_layers):
        nf_prev, nf_mult = nf_mult, min(2 ** n, 8)
        cfgs.append(dict(cin=ndf * nf_prev, cout=ndf * nf_mult, stride=2,
                         bias=False, bn=True, act=True))
    nf_prev, nf_mult = nf_mult, min(2 ** n_layers, 8)
    cfgs.append(dict(cin=ndf * nf_prev, cout=ndf * nf_mult, stride=1,
                     bias=False, bn=True, act=True))
    cfgs.append(dict(cin=ndf * nf_mult, cout=1, stride=1,
                     bias=True, bn=False, act=False))

    params = []
    for cfg in cfgs:
        key, k_w, k_b = jax.random.split(key, 3)
        fan_in = cfg['cin'] * KW * KW
        bound = 1.0 / float(np.sqrt(fan_in))
        w = jax.random.uniform(k_w, (cfg['cout'], cfg['cin'], KW, KW),
                               jnp.float32, -bound, bound)       # OIHW like PyTorch
        b = (jax.random.uniform(k_b, (cfg['cout'],), jnp.float32, -bound, bound)
             if cfg['bias'] else None)
        gamma = jnp.ones((cfg['cout'],), jnp.float32) if cfg['bn'] else None
        beta = jnp.zeros((cfg['cout'],), jnp.float32) if cfg['bn'] else None
        params.append(dict(cfg=cfg, w=w, b=b, gamma=gamma, beta=beta))
    return params


def discriminator_forward(x_nchw, params):
    """Pallas forward.  Input NCHW (PyTorch), output NCHW."""
    x = jnp.transpose(x_nchw, (0, 2, 3, 1)).astype(jnp.float32)   # -> NHWC
    for p in params:
        cfg = p['cfg']
        N = x.shape[0]
        cout = cfg['cout']
        cpad = _round_up(cout, LANE)

        # bf16 cast BEFORE the patch gather (halves patch-slab HBM bytes); for BN
        # layers `x` is a lazy f32 BN+LeakyReLU expression that XLA fuses in here.
        patches, OH, OW = im2col(x.astype(jnp.bfloat16), cfg['stride'])
        M, K = patches.shape
        tm, mp = _choose_m_tiling(M)
        if mp > M:                                   # zero rows: harmless for stats
            patches = jnp.pad(patches, ((0, mp - M), (0, 0)))

        wmat = jnp.transpose(p['w'], (2, 3, 1, 0)).reshape(K, cout)   # (kh,kw,ci) x co
        wmat = jnp.pad(wmat, ((0, 0), (0, cpad - cout))).astype(jnp.bfloat16)

        if cfg['bn']:
            # Bias-free conv; stats accumulated per tile in f32, y stored bf16.
            y, sums, ssqs = conv_stats(patches, wmat, tm, jnp.bfloat16)
            col_sum = jnp.sum(sums, axis=0)                        # (cpad,) f32
            col_ssq = jnp.sum(ssqs, axis=0)
            mean = col_sum[:cout] / float(M)                       # biased, over N*H*W
            var = jnp.maximum(col_ssq[:cout] / float(M) - mean * mean, 0.0)
            scale = p['gamma'] * lax.rsqrt(var + BN_EPS)
            shift = p['beta'] - mean * scale
            yv = y[:M, :cout].astype(jnp.float32)                  # drop lane/row pads
            v = yv * scale[None, :] + shift[None, :]               # BN(train) affine
            x = jnp.where(v >= 0, v, LEAKY_SLOPE * v).reshape(N, OH, OW, cout)
            # ^ stays lazy: fused into the NEXT layer's im2col (no extra HBM pass).
        else:
            bias = p['b'] if p['b'] is not None else jnp.zeros((cout,), jnp.float32)
            bias_row = jnp.pad(bias, (0, cpad - cout)).reshape(1, cpad)
            out_dtype = jnp.bfloat16 if cfg['act'] else jnp.float32   # f32 final layer
            y = conv_bias_act(patches, wmat, bias_row, cfg['act'], tm, out_dtype)
            x = y[:M, :cout].reshape(N, OH, OW, cout)
    return jnp.transpose(x, (0, 3, 1, 2)).astype(jnp.float32)         # -> NCHW


def ref_forward(x_nchw, params):
    """Pure-JAX reference (training-mode BatchNorm, LeakyReLU(0.2)).

    Operands and intermediates are quantized to bf16 at the same points as the Pallas
    pipeline (bf16 conv inputs/weights, bf16 storage of intermediate conv outputs,
    f32 batch statistics), so the comparison measures kernel correctness rather than
    quantization noise."""
    h = x_nchw.astype(jnp.float32)
    for p in params:
        cfg = p['cfg']
        hq = h.astype(jnp.bfloat16).astype(jnp.float32)
        wq = p['w'].astype(jnp.bfloat16).astype(jnp.float32)
        h = lax.conv_general_dilated(
            hq, wq, (cfg['stride'],) * 2, [(PAD, PAD), (PAD, PAD)],
            dimension_numbers=('NCHW', 'OIHW', 'NCHW'),
            precision=lax.Precision.HIGHEST)
        if p['b'] is not None:
            h = h + p['b'][None, :, None, None]
        if cfg['bn']:
            m = jnp.mean(h, axis=(0, 2, 3), keepdims=True)           # stats from f32
            v = jnp.mean((h - m) ** 2, axis=(0, 2, 3), keepdims=True)
            h = h.astype(jnp.bfloat16).astype(jnp.float32)           # bf16 y storage
            h = ((h - m) / jnp.sqrt(v + BN_EPS) * p['gamma'][None, :, None, None]
                 + p['beta'][None, :, None, None])
        if cfg['act']:
            h = jnp.where(h >= 0, h, LEAKY_SLOPE * h)
    return h


if __name__ == "__main__":
    key = jax.random.PRNGKey(0)
    kx, kp = jax.random.split(key)

    # 96x96 input, ndf=8: spatial 96->48->24->12->11->10, channels 3->8->16->32->64->1.
    # Exercises the multi-tile "parallel" conv path (layer 1: M=4608, 9 tiles of 512)
    # and multi-tile per-tile BN statistics with padded rows (layer 2: M=1152 -> 3
    # tiles of 512 with 384 zero rows).
    x = jax.random.normal(kx, (2, 3, 96, 96), jnp.float32)
    params = init_params(kp, input_nc=3, ndf=8, n_layers=3)

    fwd = jax.jit(functools.partial(discriminator_forward, params=params))
    out = jax.block_until_ready(fwd(x))
    assert out.shape == (2, 1, 10, 10), out.shape

    ref_fn = jax.jit(functools.partial(ref_forward, params=params))
    ref = jax.block_until_ready(ref_fn(x))
    np.testing.assert_allclose(np.asarray(out), np.asarray(ref),
                               rtol=5e-3, atol=5e-3)
    print("KERNEL_OK")
</pallas_src>

<mosaic_0001>
module attributes {stable_mosaic.version = 11 : i64} {
  func.func @_conv_bias_act_kernel(%arg0: i32, %arg1: memref<512x48xbf16, #tpu.memory_space<vmem>>, %arg2: memref<48x128xbf16, #tpu.memory_space<vmem>>, %arg3: memref<1x128xf32, #tpu.memory_space<vmem>>, %arg4: memref<512x128xbf16, #tpu.memory_space<vmem>>) attributes {dimension_semantics = [#tpu.dimension_semantics<parallel>], iteration_bounds = array<i64: 9>, scalar_prefetch = 0 : i64, scratch_operands = 0 : i64, tpu.core_type = #tpu.core_type<tc>, window_params = [{transform_indices = @transform_0, window_bounds = array<i64: 512, 48>}, {pipeline_mode = #tpu.pipeline_mode<synchronous>, transform_indices = @transform_1, window_bounds = array<i64: 48, 128>}, {pipeline_mode = #tpu.pipeline_mode<synchronous>, transform_indices = @transform_2, window_bounds = array<i64: 1, 128>}, {transform_indices = @transform_3, window_bounds = array<i64: 512, 128>}]} {
    %c0 = arith.constant 0 : index
    %c0_0 = arith.constant 0 : index
    %0 = vector.load %arg1[%c0, %c0_0] : memref<512x48xbf16, #tpu.memory_space<vmem>>, vector<512x48xbf16>
    %c0_1 = arith.constant 0 : index
    %c0_2 = arith.constant 0 : index
    %1 = vector.load %arg2[%c0_1, %c0_2] : memref<48x128xbf16, #tpu.memory_space<vmem>>, vector<48x128xbf16>
    %cst = arith.constant dense<0.000000e+00> : vector<512x128xf32>
    %2 = tpu.matmul %0, %1, %cst {dimension_numbers = #tpu.dot_dimension_numbers<[1], [0], [0], [1], [0, 0, 1, 1], [], []>} : vector<512x48xbf16>, vector<48x128xbf16>, vector<512x128xf32> -> vector<512x128xf32>
    %c0_3 = arith.constant 0 : index
    %c0_4 = arith.constant 0 : index
    %3 = vector.load %arg3[%c0_3, %c0_4] : memref<1x128xf32, #tpu.memory_space<vmem>>, vector<1x128xf32>
    %4 = vector.broadcast %3 : vector<1x128xf32> to vector<512x128xf32>
    %5 = arith.addf %2, %4 : vector<512x128xf32>
    %cst_5 = arith.constant 0.000000e+00 : f32
    %6 = vector.broadcast %cst_5 : f32 to vector<512x128xf32>
    %7 = arith.cmpf oge, %5, %6 : vector<512x128xf32>
    %cst_6 = arith.constant 2.000000e-01 : f32
    %8 = vector.broadcast %cst_6 : f32 to vector<512x128xf32>
    %9 = arith.mulf %8, %5 : vector<512x128xf32>
    %10 = arith.select %7, %5, %9 : vector<512x128xi1>, vector<512x128xf32>
    %11 = arith.truncf %10 : vector<512x128xf32> to vector<512x128xbf16>
    %c0_7 = arith.constant 0 : index
    %c0_8 = arith.constant 0 : index
    %12 = vector.load %arg4[%c0_7, %c0_8] : memref<512x128xbf16, #tpu.memory_space<vmem>>, vector<512x128xbf16>
    tpu.vector_store %arg4[%c0_7, %c0_8], %11 {strides = array<i32>} : memref<512x128xbf16, #tpu.memory_space<vmem>>, vector<512x128xbf16>,
    return
  }
  func.func @transform_0(%arg0: i32) -> (i32, i32) {
    %c0_i32 = arith.constant 0 : i32
    %c0_i32_0 = arith.constant 0 : i32
    return %arg0, %c0_i32 : i32, i32
  }
  func.func @transform_1(%arg0: i32) -> (i32, i32) {
    %c0_i32 = arith.constant 0 : i32
    %c0_i32_0 = arith.constant 0 : i32
    %c0_i32_1 = arith.constant 0 : i32
    return %c0_i32, %c0_i32_0 : i32, i32
  }
  func.func @transform_2(%arg0: i32) -> (i32, i32) {
    %c0_i32 = arith.constant 0 : i32
    %c0_i32_0 = arith.constant 0 : i32
    %c0_i32_1 = arith.constant 0 : i32
    return %c0_i32, %c0_i32_0 : i32, i32
  }
  func.func @transform_3(%arg0: i32) -> (i32, i32) {
    %c0_i32 = arith.constant 0 : i32
    %c0_i32_0 = arith.constant 0 : i32
    return %arg0, %c0_i32 : i32, i32
  }
}

module attributes {stable_mosaic.version = 11 : i64} {
  func.func @_conv_stats_kernel(%arg0: i32, %arg1: memref<512x128xbf16, #tpu.memory_space<vmem>>, %arg2: memref<128x128xbf16, #tpu.memory_space<vmem>>, %arg3: memref<512x128xbf16, #tpu.memory_space<vmem>>, %arg4: memref<8x128xf32, #tpu.memory_space<vmem>>, %arg5: memref<8x128xf32, #tpu.memory_space<vmem>>) attributes {dimension_semantics = [#tpu.dimension_semantics<parallel>], iteration_bounds = array<i64: 3>, scalar_prefetch = 0 : i64, scratch_operands = 0 : i64, tpu.core_type = #tpu.core_type<tc>, window_params = [{transform_indices = @transform_0, window_bounds = array<i64: 512, 128>}, {pipeline_mode = #tpu.pipeline_mode<synchronous>, transform_indices = @transform_1, window_bounds = array<i64: 128, 128>}, {transform_indices = @transform_2, window_bounds = array<i64: 512, 128>}, {transform_indices = @transform_3, window_bounds = array<i64: 8, 128>}, {transform_indices = @transform_4, window_bounds = array<i64: 8, 128>}]} {
    %c0 = arith.constant 0 : index
    %c0_0 = arith.constant 0 : index
    %0 = vector.load %arg1[%c0, %c0_0] : memref<512x128xbf16, #tpu.memory_space<vmem>>, vector<512x128xbf16>
    %c0_1 = arith.constant 0 : index
    %c0_2 = arith.constant 0 : index
    %1 = vector.load %arg2[%c0_1, %c0_2] : memref<128x128xbf16, #tpu.memory_space<vmem>>, vector<128x128xbf16>
    %cst = arith.constant dense<0.000000e+00> : vector<512x128xf32>
    %2 = tpu.matmul %0, %1, %cst {dimension_numbers = #tpu.dot_dimension_numbers<[1], [0], [0], [1], [0, 0, 1, 1], [], []>} : vector<512x128xbf16>, vector<128x128xbf16>, vector<512x128xf32> -> vector<512x128xf32>
    %3 = arith.truncf %2 : vector<512x128xf32> to vector<512x128xbf16>
    %c0_3 = arith.constant 0 : index
    %c0_4 = arith.constant 0 : index
    %4 = vector.load %arg3[%c0_3, %c0_4] : memref<512x128xbf16, #tpu.memory_space<vmem>>, vector<512x128xbf16>
    tpu.vector_store %arg3[%c0_3, %c0_4], %3 {strides = array<i32>} : memref<512x128xbf16, #tpu.memory_space<vmem>>, vector<512x128xbf16>,
    %5 = vector.shape_cast %2 : vector<512x128xf32> to vector<64x8x128xf32>
    %cst_5 = arith.constant dense<0.000000e+00> : vector<8x128xf32>
    %6 = vector.multi_reduction <add>, %5, %cst_5 [0] : vector<64x8x128xf32> to vector<8x128xf32>
    %c0_6 = arith.constant 0 : index
    %c0_7 = arith.constant 0 : index
    %7 = vector.load %arg4[%c0_6, %c0_7] : memref<8x128xf32, #tpu.memory_space<vmem>>, vector<8x128xf32>
    tpu.vector_store %arg4[%c0_6, %c0_7], %6 {strides = array<i32>} : memref<8x128xf32, #tpu.memory_space<vmem>>, vector<8x128xf32>,
    %8 = arith.mulf %5, %5 : vector<64x8x128xf32>
    %cst_8 = arith.constant dense<0.000000e+00> : vector<8x128xf32>
    %9 = vector.multi_reduction <add>, %8, %cst_8 [0] : vector<64x8x128xf32> to vector<8x128xf32>
    %c0_9 = arith.constant 0 : index
    %c0_10 = arith.constant 0 : index
    %10 = vector.load %arg5[%c0_9, %c0_10] : memref<8x128xf32, #tpu.memory_space<vmem>>, vector<8x128xf32>
    tpu.vector_store %arg5[%c0_9, %c0_10], %9 {strides = array<i32>} : memref<8x128xf32, #tpu.memory_space<vmem>>, vector<8x128xf32>,
    return
  }
  func.func @transform_0(%arg0: i32) -> (i32, i32) {
    %c0_i32 = arith.constant 0 : i32
    %c0_i32_0 = arith.constant 0 : i32
    return %arg0, %c0_i32 : i32, i32
  }
  func.func @transform_1(%arg0: i32) -> (i32, i32) {
    %c0_i32 = arith.constant 0 : i32
    %c0_i32_0 = arith.constant 0 : i32
    %c0_i32_1 = arith.constant 0 : i32
    return %c0_i32, %c0_i32_0 : i32, i32
  }
  func.func @transform_2(%arg0: i32) -> (i32, i32) {
    %c0_i32 = arith.constant 0 : i32
    %c0_i32_0 = arith.constant 0 : i32
    return %arg0, %c0_i32 : i32, i32
  }
  func.func @transform_3(%arg0: i32) -> (i32, i32) {
    %c0_i32 = arith.constant 0 : i32
    %c0_i32_0 = arith.constant 0 : i32
    return %arg0, %c0_i32 : i32, i32
  }
  func.func @transform_4(%arg0: i32) -> (i32, i32) {
    %c0_i32 = arith.constant 0 : i32
    %c0_i32_0 = arith.constant 0 : i32
    return %arg0, %c0_i32 : i32, i32
  }
}

module attributes {stable_mosaic.version = 11 : i64} {
  func.func @_conv_stats_kernel(%arg0: i32, %arg1: memref<288x256xbf16, #tpu.memory_space<vmem>>, %arg2: memref<256x128xbf16, #tpu.memory_space<vmem>>, %arg3: memref<288x128xbf16, #tpu.memory_space<vmem>>, %arg4: memref<8x128xf32, #tpu.memory_space<vmem>>, %arg5: memref<8x128xf32, #tpu.memory_space<vmem>>) attributes {dimension_semantics = [#tpu.dimension_semantics<parallel>], iteration_bounds = array<i64: 1>, scalar_prefetch = 0 : i64, scratch_operands = 0 : i64, tpu.core_type = #tpu.core_type<tc>, window_params = [{transform_indices = @transform_0, window_bounds = array<i64: 288, 256>}, {pipeline_mode = #tpu.pipeline_mode<synchronous>, transform_indices = @transform_1, window_bounds = array<i64: 256, 128>}, {transform_indices = @transform_2, window_bounds = array<i64: 288, 128>}, {transform_indices = @transform_3, window_bounds = array<i64: 8, 128>}, {transform_indices = @transform_4, window_bounds = array<i64: 8, 128>}]} {
    %c0 = arith.constant 0 : index
    %c0_0 = arith.constant 0 : index
    %0 = vector.load %arg1[%c0, %c0_0] : memref<288x256xbf16, #tpu.memory_space<vmem>>, vector<288x256xbf16>
    %c0_1 = arith.constant 0 : index
    %c0_2 = arith.constant 0 : index
    %1 = vector.load %arg2[%c0_1, %c0_2] : memref<256x128xbf16, #tpu.memory_space<vmem>>, vector<256x128xbf16>
    %cst = arith.constant dense<0.000000e+00> : vector<288x128xf32>
    %2 = tpu.matmul %0, %1, %cst {dimension_numbers = #tpu.dot_dimension_numbers<[1], [0], [0], [1], [0, 0, 1, 1], [], []>} : vector<288x256xbf16>, vector<256x128xbf16>, vector<288x128xf32> -> vector<288x128xf32>
    %3 = arith.truncf %2 : vector<288x128xf32> to vector<288x128xbf16>
    %c0_3 = arith.constant 0 : index
    %c0_4 = arith.constant 0 : index
    %4 = vector.load %arg3[%c0_3, %c0_4] : memref<288x128xbf16, #tpu.memory_space<vmem>>, vector<288x128xbf16>
    tpu.vector_store %arg3[%c0_3, %c0_4], %3 {strides = array<i32>} : memref<288x128xbf16, #tpu.memory_space<vmem>>, vector<288x128xbf16>,
    %5 = vector.shape_cast %2 : vector<288x128xf32> to vector<36x8x128xf32>
    %cst_5 = arith.constant dense<0.000000e+00> : vector<8x128xf32>
    %6 = vector.multi_reduction <add>, %5, %cst_5 [0] : vector<36x8x128xf32> to vector<8x128xf32>
    %c0_6 = arith.constant 0 : index
    %c0_7 = arith.constant 0 : index
    %7 = vector.load %arg4[%c0_6, %c0_7] : memref<8x128xf32, #tpu.memory_space<vmem>>, vector<8x128xf32>
    tpu.vector_store %arg4[%c0_6, %c0_7], %6 {strides = array<i32>} : memref<8x128xf32, #tpu.memory_space<vmem>>, vector<8x128xf32>,
    %8 = arith.mulf %5, %5 : vector<36x8x128xf32>
    %cst_8 = arith.constant dense<0.000000e+00> : vector<8x128xf32>
    %9 = vector.multi_reduction <add>, %8, %cst_8 [0] : vector<36x8x128xf32> to vector<8x128xf32>
    %c0_9 = arith.constant 0 : index
    %c0_10 = arith.constant 0 : index
    %10 = vector.load %arg5[%c0_9, %c0_10] : memref<8x128xf32, #tpu.memory_space<vmem>>, vector<8x128xf32>
    tpu.vector_store %arg5[%c0_9, %c0_10], %9 {strides = array<i32>} : memref<8x128xf32, #tpu.memory_space<vmem>>, vector<8x128xf32>,
    return
  }
  func.func @transform_0(%arg0: i32) -> (i32, i32) {
    %c0_i32 = arith.constant 0 : i32
    %c0_i32_0 = arith.constant 0 : i32
    return %arg0, %c0_i32 : i32, i32
  }
  func.func @transform_1(%arg0: i32) -> (i32, i32) {
    %c0_i32 = arith.constant 0 : i32
    %c0_i32_0 = arith.constant 0 : i32
    %c0_i32_1 = arith.constant 0 : i32
    return %c0_i32, %c0_i32_0 : i32, i32
  }
  func.func @transform_2(%arg0: i32) -> (i32, i32) {
    %c0_i32 = arith.constant 0 : i32
    %c0_i32_0 = arith.constant 0 : i32
    return %arg0, %c0_i32 : i32, i32
  }
  func.func @transform_3(%arg0: i32) -> (i32, i32) {
    %c0_i32 = arith.constant 0 : i32
    %c0_i32_0 = arith.constant 0 : i32
    return %arg0, %c0_i32 : i32, i32
  }
  func.func @transform_4(%arg0: i32) -> (i32, i32) {
    %c0_i32 = arith.constant 0 : i32
    %c0_i32_0 = arith.constant 0 : i32
    return %arg0, %c0_i32 : i32, i32
  }
}

module attributes {stable_mosaic.version = 11 : i64} {
  func.func @_conv_stats_kernel(%arg0: i32, %arg1: memref<248x512xbf16, #tpu.memory_space<vmem>>, %arg2: memref<512x128xbf16, #tpu.memory_space<vmem>>, %arg3: memref<248x128xbf16, #tpu.memory_space<vmem>>, %arg4: memref<8x128xf32, #tpu.memory_space<vmem>>, %arg5: memref<8x128xf32, #tpu.memory_space<vmem>>) attributes {dimension_semantics = [#tpu.dimension_semantics<parallel>], iteration_bounds = array<i64: 1>, scalar_prefetch = 0 : i64, scratch_operands = 0 : i64, tpu.core_type = #tpu.core_type<tc>, window_params = [{transform_indices = @transform_0, window_bounds = array<i64: 248, 512>}, {pipeline_mode = #tpu.pipeline_mode<synchronous>, transform_indices = @transform_1, window_bounds = array<i64: 512, 128>}, {transform_indices = @transform_2, window_bounds = array<i64: 248, 128>}, {transform_indices = @transform_3, window_bounds = array<i64: 8, 128>}, {transform_indices = @transform_4, window_bounds = array<i64: 8, 128>}]} {
    %c0 = arith.constant 0 : index
    %c0_0 = arith.constant 0 : index
    %0 = vector.load %arg1[%c0, %c0_0] : memref<248x512xbf16, #tpu.memory_space<vmem>>, vector<248x512xbf16>
    %c0_1 = arith.constant 0 : index
    %c0_2 = arith.constant 0 : index
    %1 = vector.load %arg2[%c0_1, %c0_2] : memref<512x128xbf16, #tpu.memory_space<vmem>>, vector<512x128xbf16>
    %cst = arith.constant dense<0.000000e+00> : vector<248x128xf32>
    %2 = tpu.matmul %0, %1, %cst {dimension_numbers = #tpu.dot_dimension_numbers<[1], [0], [0], [1], [0, 0, 1, 1], [], []>} : vector<248x512xbf16>, vector<512x128xbf16>, vector<248x128xf32> -> vector<248x128xf32>
    %3 = arith.truncf %2 : vector<248x128xf32> to vector<248x128xbf16>
    %c0_3 = arith.constant 0 : index
    %c0_4 = arith.constant 0 : index
    %4 = vector.load %arg3[%c0_3, %c0_4] : memref<248x128xbf16, #tpu.memory_space<vmem>>, vector<248x128xbf16>
    tpu.vector_store %arg3[%c0_3, %c0_4], %3 {strides = array<i32>} : memref<248x128xbf16, #tpu.memory_space<vmem>>, vector<248x128xbf16>,
    %5 = vector.shape_cast %2 : vector<248x128xf32> to vector<31x8x128xf32>
    %cst_5 = arith.constant dense<0.000000e+00> : vector<8x128xf32>
    %6 = vector.multi_reduction <add>, %5, %cst_5 [0] : vector<31x8x128xf32> to vector<8x128xf32>
    %c0_6 = arith.constant 0 : index
    %c0_7 = arith.constant 0 : index
    %7 = vector.load %arg4[%c0_6, %c0_7] : memref<8x128xf32, #tpu.memory_space<vmem>>, vector<8x128xf32>
    tpu.vector_store %arg4[%c0_6, %c0_7], %6 {strides = array<i32>} : memref<8x128xf32, #tpu.memory_space<vmem>>, vector<8x128xf32>,
    %8 = arith.mulf %5, %5 : vector<31x8x128xf32>
    %cst_8 = arith.constant dense<0.000000e+00> : vector<8x128xf32>
    %9 = vector.multi_reduction <add>, %8, %cst_8 [0] : vector<31x8x128xf32> to vector<8x128xf32>
    %c0_9 = arith.constant 0 : index
    %c0_10 = arith.constant 0 : index
    %10 = vector.load %arg5[%c0_9, %c0_10] : memref<8x128xf32, #tpu.memory_space<vmem>>, vector<8x128xf32>
    tpu.vector_store %arg5[%c0_9, %c0_10], %9 {strides = array<i32>} : memref<8x128xf32, #tpu.memory_space<vmem>>, vector<8x128xf32>,
    return
  }
  func.func @transform_0(%arg0: i32) -> (i32, i32) {
    %c0_i32 = arith.constant 0 : i32
    %c0_i32_0 = arith.constant 0 : i32
    return %arg0, %c0_i32 : i32, i32
  }
  func.func @transform_1(%arg0: i32) -> (i32, i32) {
    %c0_i32 = arith.constant 0 : i32
    %c0_i32_0 = arith.constant 0 : i32
    %c0_i32_1 = arith.constant 0 : i32
    return %c0_i32, %c0_i32_0 : i32, i32
  }
  func.func @transform_2(%arg0: i32) -> (i32, i32) {
    %c0_i32 = arith.constant 0 : i32
    %c0_i32_0 = arith.constant 0 : i32
    return %arg0, %c0_i32 : i32, i32
  }
  func.func @transform_3(%arg0: i32) -> (i32, i32) {
    %c0_i32 = arith.constant 0 : i32
    %c0_i32_0 = arith.constant 0 : i32
    return %arg0, %c0_i32 : i32, i32
  }
  func.func @transform_4(%arg0: i32) -> (i32, i32) {
    %c0_i32 = arith.constant 0 : i32
    %c0_i32_0 = arith.constant 0 : i32
    return %arg0, %c0_i32 : i32, i32
  }
}

module attributes {stable_mosaic.version = 11 : i64} {
  func.func @_conv_bias_act_kernel(%arg0: i32, %arg1: memref<200x1024xbf16, #tpu.memory_space<vmem>>, %arg2: memref<1024x128xbf16, #tpu.memory_space<vmem>>, %arg3: memref<1x128xf32, #tpu.memory_space<vmem>>, %arg4: memref<200x128xf32, #tpu.memory_space<vmem>>) attributes {dimension_semantics = [#tpu.dimension_semantics<parallel>], iteration_bounds = array<i64: 1>, scalar_prefetch = 0 : i64, scratch_operands = 0 : i64, tpu.core_type = #tpu.core_type<tc>, window_params = [{transform_indices = @transform_0, window_bounds = array<i64: 200, 1024>}, {pipeline_mode = #tpu.pipeline_mode<synchronous>, transform_indices = @transform_1, window_bounds = array<i64: 1024, 128>}, {pipeline_mode = #tpu.pipeline_mode<synchronous>, transform_indices = @transform_2, window_bounds = array<i64: 1, 128>}, {transform_indices = @transform_3, window_bounds = array<i64: 200, 128>}]} {
    %c0 = arith.constant 0 : index
    %c0_0 = arith.constant 0 : index
    %0 = vector.load %arg1[%c0, %c0_0] : memref<200x1024xbf16, #tpu.memory_space<vmem>>, vector<200x1024xbf16>
    %c0_1 = arith.constant 0 : index
    %c0_2 = arith.constant 0 : index
    %1 = vector.load %arg2[%c0_1, %c0_2] : memref<1024x128xbf16, #tpu.memory_space<vmem>>, vector<1024x128xbf16>
    %cst = arith.constant dense<0.000000e+00> : vector<200x128xf32>
    %2 = tpu.matmul %0, %1, %cst {dimension_numbers = #tpu.dot_dimension_numbers<[1], [0], [0], [1], [0, 0, 1, 1], [], []>} : vector<200x1024xbf16>, vector<1024x128xbf16>, vector<200x128xf32> -> vector<200x128xf32>
    %c0_3 = arith.constant 0 : index
    %c0_4 = arith.constant 0 : index
    %3 = vector.load %arg3[%c0_3, %c0_4] : memref<1x128xf32, #tpu.memory_space<vmem>>, vector<1x128xf32>
    %4 = vector.broadcast %3 : vector<1x128xf32> to vector<200x128xf32>
    %5 = arith.addf %2, %4 : vector<200x128xf32>
    %c0_5 = arith.constant 0 : index
    %c0_6 = arith.constant 0 : index
    %6 = vector.load %arg4[%c0_5, %c0_6] : memref<200x128xf32, #tpu.memory_space<vmem>>, vector<200x128xf32>
    tpu.vector_store %arg4[%c0_5, %c0_6], %5 {strides = array<i32>} : memref<200x128xf32, #tpu.memory_space<vmem>>, vector<200x128xf32>,
    return
  }
  func.func @transform_0(%arg0: i32) -> (i32, i32) {
    %c0_i32 = arith.constant 0 : i32
    %c0_i32_0 = arith.constant 0 : i32
    return %arg0, %c0_i32 : i32, i32
  }
  func.func @transform_1(%arg0: i32) -> (i32, i32) {
    %c0_i32 = arith.constant 0 : i32
    %c0_i32_0 = arith.constant 0 : i32
    %c0_i32_1 = arith.constant 0 : i32
    return %c0_i32, %c0_i32_0 : i32, i32
  }
  func.func @transform_2(%arg0: i32) -> (i32, i32) {
    %c0_i32 = arith.constant 0 : i32
    %c0_i32_0 = arith.constant 0 : i32
    %c0_i32_1 = arith.constant 0 : i32
    return %c0_i32, %c0_i32_0 : i32, i32
  }
  func.func @transform_3(%arg0: i32) -> (i32, i32) {
    %c0_i32 = arith.constant 0 : i32
    %c0_i32_0 = arith.constant 0 : i32
    return %arg0, %c0_i32 : i32, i32
  }
}

</mosaic_0001>

<bundles_post_ra>
// kernel: discriminator_forward.5
= control target key start
LH: loop header
LB: loop body
LE: loop exit
PB: predicated region body
PF: predicated region fallthrough
CT: control target
= control target key end

     0   :  { %s1964_s12 = smov 0   ;;  %s2169_s0 = inlined_call_operand.vmem [shape: bf16[4608,48], index: 0, kind: input, shape index: {}]   ;;  %s2170_s1 = inlined_call_operand.vmem [shape: bf16[48,128], index: 1, kind: input, shape index: {}]   ;;  %s2171_s2 = inlined_call_operand.vmem [shape: f32[1,128], index: 2, kind: input, shape index: {}]   ;;  %s2172_s3 = inlined_call_operand.vmem [shape: bf16[4608,128], index: 3, kind: output, shape index: {}]  }
   0x1 LB: > { %s1384_s13 = sadd.s32 4294967295, %s1942_s12   ;;  %p1388_p0 = scmp.ge.s32.totalorder %s1942_s12, 1  ;;  %s1942_s12 = sphi %s1964_s12, %s13_s12  }
   0x2   : > { %p138_p1 = scmp.lt.s32.totalorder %s1942_s12, 10 }
   0x4   : > { %p139_p2 = pnand %p1388_p0, %p138_p1 }
   0x5   : > { %s1389_s16 = sshll.u32 (!%p139_p2), %s1384_s13, 6 }
   0x6   : > { %142 = sbr.rel (%p139_p2) target bundleno = 294 (0x126), region = 32  ;;  %p163_p3 = scmp.lt.s32.totalorder (!%p139_p2), %s1389_s16, 575 }
   0xb   : > { %v1901_v0 = vld [vmem:[%s2170_s1 + $0x10] sm:$0xff]   ;;  %v1902_v1 = vld [vmem:[%s2170_s1 + $0x8] sm:$0xff]   ;;  %s2174_s16 = smov (!%p163_p3, %s1389_s16), 575  ;;  %v1903_v2 = vld [vmem:[%s2170_s1] sm:$0xff]   ;;  %vm430_vm0 = vcmask 392192  }
   0xc   : > { %1817 = vmatprep.subr.bf16.mxu0 %v1901_v0  ;;  %1887 = vmatprep.subr.bf16.mxu1 %v1901_v0  ;;  %s1390_s21 = sshll.u32 %s2174_s16, 2  ;;  %v2058_v35 = vld [vmem:[%s2171_s2] ss:$0 sm:$0xff] }
   0xd   : > { %1818 = vmatpush3.bf16.msra.mxu0 %v1901_v0  ;;  %1890 = vmatpush3.bf16.msra.mxu1 %v1901_v0  ;;  %s1989_s24 = scalar_lea.vmem %s2169_s0, %s1390_s21  ;;  %s2073_s29 = scalar_lea.vmem %s2172_s3, %s1390_s21 }
   0xe   : > { %1819 = vmatprep.subr.bf16.mxu0 %v1902_v1  ;;  %1888 = vmatprep.subr.bf16.mxu1 %v1902_v1  ;;  %v1904_v3 = vld [vmem:[%s1989_s24] sm:$0xff]   ;;  %v1906_v5 = vld [vmem:[%s1989_s24 + $0x8] sm:$0xff]   ;;  %v1908_v7 = vld [vmem:[%s1989_s24 + $0x10] sm:$0xff]  }
   0xf   : > { %v1905_v4 = vld [vmem:[%s1989_s24 + $0x80] sm:$0xff]   ;;  %1823 = vmatprep.mubr.msk.bf16.mxu0 %vm430_vm0, %v1904_v3  ;;  %v1907_v6 = vld [vmem:[%s1989_s24 + $0x88] sm:$0xff]   ;;  %v1909_v8 = vld [vmem:[%s1989_s24 + $0x90] sm:$0xff]  }
  0x10   : > { %1855 = vmatprep.mubr.msk.bf16.mxu1 %vm430_vm0, %v1905_v4  ;;  %v1910_v9 = vld [vmem:[%s1989_s24 + $0x18] sm:$0xff]   ;;  %v1912_v11 = vld [vmem:[%s1989_s24 + $0x20] sm:$0xff]   ;;  %v1914_v13 = vld [vmem:[%s1989_s24 + $0x28] sm:$0xff]  }
  0x11   : > { %1820 = vmatpush3.bf16.msra.mxu0 %v1902_v1  ;;  %1891 = vmatpush3.bf16.msra.mxu1 %v1902_v1  ;;  %v1911_v10 = vld [vmem:[%s1989_s24 + $0x98] sm:$0xff]   ;;  %v1913_v12 = vld [vmem:[%s1989_s24 + $0xa0] sm:$0xff]   ;;  %v1915_v14 = vld [vmem:[%s1989_s24 + $0xa8] sm:$0xff]  }
  0x12   : > { %1821 = vmatprep.subr.bf16.mxu0 %v1903_v2  ;;  %1889 = vmatprep.subr.bf16.mxu1 %v1903_v2  ;;  %v1916_v15 = vld [vmem:[%s1989_s24 + $0x30] sm:$0xff]   ;;  %v1918_v17 = vld [vmem:[%s1989_s24 + $0x38] sm:$0xff]   ;;  %v1920_v19 = vld [vmem:[%s1989_s24 + $0x40] sm:$0xff]  }
  0x13   : > { %v1917_v16 = vld [vmem:[%s1989_s24 + $0xb0] sm:$0xff]   ;;  %v1919_v18 = vld [vmem:[%s1989_s24 + $0xb8] sm:$0xff]   ;;  %v1921_v20 = vld [vmem:[%s1989_s24 + $0xc0] sm:$0xff]  }
  0x14   : > { %v1922_v21 = vld [vmem:[%s1989_s24 + $0x48] sm:$0xff]   ;;  %v1924_v23 = vld [vmem:[%s1989_s24 + $0x50] sm:$0xff]   ;;  %v1926_v25 = vld [vmem:[%s1989_s24 + $0x58] sm:$0xff]  }
  0x15   : > { %1822 = vmatpush3.bf16.msra.mxu0 %v1903_v2  ;;  %1892 = vmatpush3.bf16.msra.mxu1 %v1903_v2  ;;  %v1923_v22 = vld [vmem:[%s1989_s24 + $0xc8] sm:$0xff]   ;;  %v1925_v24 = vld [vmem:[%s1989_s24 + $0xd0] sm:$0xff]   ;;  %v1927_v26 = vld [vmem:[%s1989_s24 + $0xd8] sm:$0xff]  }
  0x16   : > { %v1928_v27 = vld [vmem:[%s1989_s24 + $0x60] sm:$0xff]   ;;  %v1930_v29 = vld [vmem:[%s1989_s24 + $0x68] sm:$0xff]   ;;  %v1932_v31 = vld [vmem:[%s1989_s24 + $0x70] sm:$0xff]  }
  0x17   : > { %v1929_v28 = vld [vmem:[%s1989_s24 + $0xe0] sm:$0xff]   ;;  %v1931_v30 = vld [vmem:[%s1989_s24 + $0xe8] sm:$0xff]   ;;  %v1933_v32 = vld [vmem:[%s1989_s24 + $0xf0] sm:$0xff]  }
  0x18   : > { %1824 = vmatmul.mubr.msk.bf16.vlgmr.msra.gmra.mxu0 %vm430_vm0, %v1906_v5  ;;  %1856 = vmatmul.mubr.msk.bf16.vlgmr.msra.gmra.mxu1 %vm430_vm0, %v1907_v6  ;;  %v1934_v33 = vld [vmem:[%s1989_s24 + $0x78] sm:$0xff]  }
  0x19   : > { %1827 = vmatprep.mubr.msk.bf16.mxu0 %vm430_vm0, %v1908_v7  ;;  %1859 = vmatprep.mubr.msk.bf16.mxu1 %vm430_vm0, %v1909_v8  ;;  %v1935_v34 = vld [vmem:[%s1989_s24 + $0xf8] sm:$0xff]  }
  0x20   : > { %1828 = vmatmul.mubr.msk.bf16.gmra.mxu0 %vm430_vm0, %v1910_v9  ;;  %1860 = vmatmul.mubr.msk.bf16.gmra.mxu1 %vm430_vm0, %v1911_v10 }
  0x21   : > { %1831 = vmatprep.mubr.msk.bf16.mxu0 %vm430_vm0, %v1912_v11  ;;  %1863 = vmatprep.mubr.msk.bf16.mxu1 %vm430_vm0, %v1913_v12 }
  0x28   : > { %1832 = vmatmul.mubr.msk.bf16.gmra.mxu0 %vm430_vm0, %v1914_v13  ;;  %1864 = vmatmul.mubr.msk.bf16.gmra.mxu1 %vm430_vm0, %v1915_v14 }
  0x29   : > { %1835 = vmatprep.mubr.msk.bf16.mxu0 %vm430_vm0, %v1916_v15  ;;  %1867 = vmatprep.mubr.msk.bf16.mxu1 %vm430_vm0, %v1917_v16 }
  0x30   : > { %1836 = vmatmul.mubr.msk.bf16.gmra.mxu0 %vm430_vm0, %v1918_v17  ;;  %1868 = vmatmul.mubr.msk.bf16.gmra.mxu1 %vm430_vm0, %v1919_v18 }
  0x31   : > { %1839 = vmatprep.mubr.msk.bf16.mxu0 %vm430_vm0, %v1920_v19  ;;  %1871 = vmatprep.mubr.msk.bf16.mxu1 %vm430_vm0, %v1921_v20 }
  0x38   : > { %1840 = vmatmul.mubr.msk.bf16.gmra.mxu0 %vm430_vm0, %v1922_v21  ;;  %1872 = vmatmul.mubr.msk.bf16.gmra.mxu1 %vm430_vm0, %v1923_v22 }
  0x39   : > { %1843 = vmatprep.mubr.msk.bf16.mxu0 %vm430_vm0, %v1924_v23  ;;  %1875 = vmatprep.mubr.msk.bf16.mxu1 %vm430_vm0, %v1925_v24 }
  0x40   : > { %1844 = vmatmul.mubr.msk.bf16.gmra.mxu0 %vm430_vm0, %v1926_v25  ;;  %1876 = vmatmul.mubr.msk.bf16.gmra.mxu1 %vm430_vm0, %v1927_v26 }
  0x41   : > { %1847 = vmatprep.mubr.msk.bf16.mxu0 %vm430_vm0, %v1928_v27  ;;  %1879 = vmatprep.mubr.msk.bf16.mxu1 %vm430_vm0, %v1929_v28 }
  0x48   : > { %1848 = vmatmul.mubr.msk.bf16.gmra.mxu0 %vm430_vm0, %v1930_v29  ;;  %1880 = vmatmul.mubr.msk.bf16.gmra.mxu1 %vm430_vm0, %v1931_v30 }
  0x49   : > { %1851 = vmatprep.mubr.msk.bf16.mxu0 %vm430_vm0, %v1932_v31  ;;  %1883 = vmatprep.mubr.msk.bf16.mxu1 %vm430_vm0, %v1933_v32 }
  0x50   : > { %1852 = vmatmul.mubr.msk.bf16.gmra.mxu0 %vm430_vm0, %v1934_v33  ;;  %1884 = vmatmul.mubr.msk.bf16.gmra.mxu1 %vm430_vm0, %v1935_v34 }
  0xd8   : > { %v1825_v36 = vpop.f32.mrf.mxu0  ;;  %v1857_v37 = vpop.f32.mrf.mxu1 }
  0xd9   : > { %v570_v38 = vadd.f32 %v1825_v36, %v2058_v35  ;;  %v698_v39 = vadd.f32 %v1857_v37, %v2058_v35 }
  0xda   : > { %v561_v40 = vpop.f32.mrf.mxu0  ;;  %v689_v41 = vpop.f32.mrf.mxu1 }
  0xdb   : > { %vm818_vm1 = vcmp.ge.f32.partialorder %v570_v38, 0.0  ;;  %v882_v42 = vmul.f32 0.2, %v570_v38  ;;  %vm850_vm2 = vcmp.ge.f32.partialorder %v698_v39, 0.0  ;;  %v914_v43 = vmul.f32 0.2, %v698_v39 }
  0xdc   : > { %v562_v44 = vadd.f32 %v2058_v35, %v561_v40  ;;  %v690_v45 = vadd.f32 %v2058_v35, %v689_v41  ;;  %v1826_v46 = vpop.f32.mrf.mxu0  ;;  %v1858_v47 = vpop.f32.mrf.mxu1 }
  0xdd   : > { %v946_v48 = vsel %vm818_vm1, %v570_v38, %v882_v42  ;;  %v573_v49 = vadd.f32 %v1826_v46, %v2058_v35  ;;  %v701_v50 = vadd.f32 %v1858_v47, %v2058_v35  ;;  %v978_v51 = vsel %vm850_vm2, %v698_v39, %v914_v43 }
  0xde   : > { %vm816_vm3 = vcmp.ge.f32.partialorder %v562_v44, 0.0  ;;  %v880_v52 = vmul.f32 0.2, %v562_v44  ;;  %vm848_vm4 = vcmp.ge.f32.partialorder %v690_v45, 0.0  ;;  %v564_v53 = vpop.f32.mrf.mxu0  ;;  %v692_v54 = vpop.f32.mrf.mxu1  ;;  %v912_v58 = vmul.f32 0.2, %v690_v45 }
  0xdf   : > { %vm819_vm5 = vcmp.ge.f32.partialorder %v573_v49, 0.0  ;;  %v883_v55 = vmul.f32 0.2, %v573_v49  ;;  %vm851_vm6 = vcmp.ge.f32.partialorder %v701_v50, 0.0  ;;  %v915_v56 = vmul.f32 0.2, %v701_v50 }
  0xe0   : > { %v944_v57 = vsel %vm816_vm3, %v562_v44, %v880_v52  ;;  %v565_v59 = vadd.f32 %v2058_v35, %v564_v53  ;;  %v693_v60 = vadd.f32 %v2058_v35, %v692_v54  ;;  %v1829_v61 = vpop.f32.mrf.mxu0  ;;  %v1861_v62 = vpop.f32.mrf.mxu1  ;;  %v976_v10 = vsel %vm848_vm4, %v690_v45, %v912_v58 }
  0xe1   : > { %v947_v63 = vsel %vm819_vm5, %v573_v49, %v883_v55  ;;  %v979_v0 = vsel %vm851_vm6, %v701_v50, %v915_v56  ;;  %v586_v1 = vadd.f32 %v1829_v61, %v2058_v35  ;;  %v714_v2 = vadd.f32 %v1861_v62, %v2058_v35 }
  0xe2   : > { %v1599_v3 = vpack.c.bf16 %v947_v63, %v946_v48  ;;  %v1679_v4 = vpack.c.bf16 %v979_v0, %v978_v51  ;;  %vm817_vm7 = vcmp.ge.f32.partialorder %v565_v59, 0.0  ;;  %v881_v5 = vmul.f32 0.2, %v565_v59  ;;  %v577_v6 = vpop.f32.mrf.mxu0  ;;  %v705_v7 = vpop.f32.mrf.mxu1 }
  0xe3   : > { %vm849_vm8 = vcmp.ge.f32.partialorder %v693_v60, 0.0  ;;  %v913_v8 = vmul.f32 0.2, %v693_v60  ;;  %vm822_vm9 = vcmp.ge.f32.partialorder %v586_v1, 0.0  ;;  %v886_v9 = vmul.f32 0.2, %v586_v1 }
  0xe4   : > { %1751 = vst [vmem:[%s2073_s29 + $0x8] sm:$0xff] %v1599_v3   ;;  %1767 = vst [vmem:[%s2073_s29 + $0x88] sm:$0xff] %v1679_v4   ;;  %v945_v11 = vsel %vm817_vm7, %v565_v59, %v881_v5  ;;  %v918_v12 = vmul.f32 0.2, %v714_v2  ;;  %v578_v13 = vadd.f32 %v2058_v35, %v577_v6  ;;  %v1830_v14 = vpop.f32.mrf.mxu0  ;;  %v1862_v15 = vpop.f32.mrf.mxu1  ;;  %vm854_vm10 = vcmp.ge.f32.partialorder %v714_v2, 0.0 }
  0xe5   : > { %v1594_v16 = vpack.c.bf16 %v945_v11, %v944_v57  ;;  %v977_v17 = vsel %vm849_vm8, %v693_v60, %v913_v8  ;;  %v706_v18 = vadd.f32 %v2058_v35, %v705_v7  ;;  %v950_v20 = vsel %vm822_vm9, %v586_v1, %v886_v9 }
  0xe6   : > { %v1674_v19 = vpack.c.bf16 %v977_v17, %v976_v10  ;;  %vm820_vm11 = vcmp.ge.f32.partialorder %v578_v13, 0.0  ;;  %v884_v21 = vmul.f32 0.2, %v578_v13  ;;  %v580_v22 = vpop.f32.mrf.mxu0  ;;  %v708_v23 = vpop.f32.mrf.mxu1  ;;  %v589_v25 = vadd.f32 %v1830_v14, %v2058_v35 }
  0xe7   : > { %1595 = vst [vmem:[%s2073_s29] sm:$0xff] %v1594_v16   ;;  %vm852_vm12 = vcmp.ge.f32.partialorder %v706_v18, 0.0  ;;  %v916_v24 = vmul.f32 0.2, %v706_v18  ;;  %v717_v26 = vadd.f32 %v1862_v15, %v2058_v35  ;;  %v982_v27 = vsel %vm854_vm10, %v714_v2, %v918_v12 }
  0xe8   : > { %1766 = vst [vmem:[%s2073_s29 + $0x80] sm:$0xff] %v1674_v19   ;;  %v948_v28 = vsel %vm820_vm11, %v578_v13, %v884_v21  ;;  %v581_v29 = vadd.f32 %v2058_v35, %v580_v22  ;;  %v709_v30 = vadd.f32 %v2058_v35, %v708_v23  ;;  %v1833_v31 = vpop.f32.mrf.mxu0  ;;  %v1865_v32 = vpop.f32.mrf.mxu1  ;;  %vm823_vm13 = vcmp.ge.f32.partialorder %v589_v25, 0.0 }
  0xe9   : > { %v980_v33 = vsel %vm852_vm12, %v706_v18, %v916_v24  ;;  %v887_v34 = vmul.f32 0.2, %v589_v25  ;;  %vm855_vm14 = vcmp.ge.f32.partialorder %v717_v26, 0.0  ;;  %v919_v36 = vmul.f32 0.2, %v717_v26 }
  0xea   : > { %vm821_vm15 = vcmp.ge.f32.partialorder %v581_v29, 0.0  ;;  %v885_v37 = vmul.f32 0.2, %v581_v29  ;;  %vm853_vm0 = vcmp.ge.f32.partialorder %v709_v30, 0.0  ;;  %v593_v38 = vpop.f32.mrf.mxu0  ;;  %v721_v39 = vpop.f32.mrf.mxu1  ;;  %v917_v41 = vmul.f32 0.2, %v709_v30 }
  0xeb   : > { %v951_v40 = vsel %vm823_vm13, %v589_v25, %v887_v34  ;;  %v602_v42 = vadd.f32 %v1833_v31, %v2058_v35  ;;  %v730_v43 = vadd.f32 %v1865_v32, %v2058_v35  ;;  %v983_v45 = vsel %vm855_vm14, %v717_v26, %v919_v36 }
  0xec   : > { %v1609_v44 = vpack.c.bf16 %v951_v40, %v950_v20  ;;  %v949_v46 = vsel %vm821_vm15, %v581_v29, %v885_v37  ;;  %v594_v47 = vadd.f32 %v2058_v35, %v593_v38  ;;  %v1834_v48 = vpop.f32.mrf.mxu0  ;;  %v1866_v49 = vpop.f32.mrf.mxu1  ;;  %v1689_v50 = vpack.c.bf16 %v983_v45, %v982_v27 }
  0xed   : > { %v1604_v51 = vpack.c.bf16 %v949_v46, %v948_v28  ;;  %v981_v52 = vsel %vm853_vm0, %v709_v30, %v917_v41  ;;  %vm826_vm1 = vcmp.ge.f32.partialorder %v602_v42, 0.0  ;;  %v890_v54 = vmul.f32 0.2, %v602_v42 }
  0xee   : > { %1753 = vst [vmem:[%s2073_s29 + $0x18] sm:$0xff] %v1609_v44   ;;  %v1684_v53 = vpack.c.bf16 %v981_v52, %v980_v33  ;;  %vm858_vm2 = vcmp.ge.f32.partialorder %v730_v43, 0.0  ;;  %v922_v55 = vmul.f32 0.2, %v730_v43  ;;  %v596_v56 = vpop.f32.mrf.mxu0  ;;  %v724_v57 = vpop.f32.mrf.mxu1  ;;  %1769 = vst [vmem:[%s2073_s29 + $0x98] sm:$0xff] %v1689_v50   ;;  %vm824_vm3 = vcmp.ge.f32.partialorder %v594_v47, 0.0 }
  0xef   : > { %1752 = vst [vmem:[%s2073_s29 + $0x10] sm:$0xff] %v1604_v51   ;;  %v888_v58 = vmul.f32 0.2, %v594_v47  ;;  %v722_v59 = vadd.f32 %v2058_v35, %v721_v39  ;;  %v605_v60 = vadd.f32 %v1834_v48, %v2058_v35  ;;  %v954_v61 = vsel %vm826_vm1, %v602_v42, %v890_v54 }
  0xf0   : > { %1768 = vst [vmem:[%s2073_s29 + $0x90] sm:$0xff] %v1684_v53   ;;  %v986_v62 = vsel %vm858_vm2, %v730_v43, %v922_v55  ;;  %v733_v63 = vadd.f32 %v1866_v49, %v2058_v35  ;;  %v597_v0 = vadd.f32 %v2058_v35, %v596_v56  ;;  %v1837_v1 = vpop.f32.mrf.mxu0  ;;  %v1869_v2 = vpop.f32.mrf.mxu1  ;;  %v725_v11 = vadd.f32 %v2058_v35, %v724_v57 }
  0xf1   : > { %v952_v3 = vsel %vm824_vm3, %v594_v47, %v888_v58  ;;  %vm856_vm4 = vcmp.ge.f32.partialorder %v722_v59, 0.0  ;;  %v920_v4 = vmul.f32 0.2, %v722_v59  ;;  %vm827_vm5 = vcmp.ge.f32.partialorder %v605_v60, 0.0 }
  0xf2   : > { %v891_v5 = vmul.f32 0.2, %v605_v60  ;;  %vm859_vm6 = vcmp.ge.f32.partialorder %v733_v63, 0.0  ;;  %v923_v6 = vmul.f32 0.2, %v733_v63  ;;  %vm825_vm7 = vcmp.ge.f32.partialorder %v597_v0, 0.0  ;;  %v609_v7 = vpop.f32.mrf.mxu0  ;;  %v737_v8 = vpop.f32.mrf.mxu1 }
  0xf3   : > { %v984_v9 = vsel %vm856_vm4, %v722_v59, %v920_v4  ;;  %v889_v10 = vmul.f32 0.2, %v597_v0  ;;  %v618_v12 = vadd.f32 %v1837_v1, %v2058_v35  ;;  %v746_v15 = vadd.f32 %v1869_v2, %v2058_v35 }
  0xf4   : > { %v955_v13 = vsel %vm827_vm5, %v605_v60, %v891_v5  ;;  %v987_v14 = vsel %vm859_vm6, %v733_v63, %v923_v6  ;;  %v610_v16 = vadd.f32 %v2058_v35, %v609_v7  ;;  %v1838_v17 = vpop.f32.mrf.mxu0  ;;  %v1870_v18 = vpop.f32.mrf.mxu1  ;;  %vm857_vm8 = vcmp.ge.f32.partialorder %v725_v11, 0.0 }
  0xf5   : > { %v1619_v19 = vpack.c.bf16 %v955_v13, %v954_v61  ;;  %v1699_v20 = vpack.c.bf16 %v987_v14, %v986_v62  ;;  %v953_v21 = vsel %vm825_vm7, %v597_v0, %v889_v10  ;;  %v921_v23 = vmul.f32 0.2, %v725_v11 }
  0xf6   : > { %v1614_v22 = vpack.c.bf16 %v953_v21, %v952_v3  ;;  %vm830_vm9 = vcmp.ge.f32.partialorder %v618_v12, 0.0  ;;  %v894_v24 = vmul.f32 0.2, %v618_v12  ;;  %v612_v25 = vpop.f32.mrf.mxu0  ;;  %v740_v26 = vpop.f32.mrf.mxu1  ;;  %vm862_vm10 = vcmp.ge.f32.partialorder %v746_v15, 0.0 }
  0xf7   : > { %1755 = vst [vmem:[%s2073_s29 + $0x28] sm:$0xff] %v1619_v19   ;;  %1771 = vst [vmem:[%s2073_s29 + $0xa8] sm:$0xff] %v1699_v20   ;;  %v926_v27 = vmul.f32 0.2, %v746_v15  ;;  %vm828_vm11 = vcmp.ge.f32.partialorder %v610_v16, 0.0  ;;  %v985_v29 = vsel %vm857_vm8, %v725_v11, %v921_v23  ;;  %v738_v31 = vadd.f32 %v2058_v35, %v737_v8 }
  0xf8   : > { %v892_v28 = vmul.f32 0.2, %v610_v16  ;;  %1754 = vst [vmem:[%s2073_s29 + $0x20] sm:$0xff] %v1614_v22   ;;  %v958_v30 = vsel %vm830_vm9, %v618_v12, %v894_v24  ;;  %v621_v32 = vadd.f32 %v1838_v17, %v2058_v35  ;;  %v1841_v33 = vpop.f32.mrf.mxu0  ;;  %v1873_v34 = vpop.f32.mrf.mxu1  ;;  %v1694_v36 = vpack.c.bf16 %v985_v29, %v984_v9 }
  0xf9   : > { %v990_v37 = vsel %vm862_vm10, %v746_v15, %v926_v27  ;;  %v749_v39 = vadd.f32 %v1870_v18, %v2058_v35  ;;  %vm860_vm12 = vcmp.ge.f32.partialorder %v738_v31, 0.0  ;;  %v924_v40 = vmul.f32 0.2, %v738_v31 }
  0xfa   : > { %v956_v38 = vsel %vm828_vm11, %v610_v16, %v892_v28  ;;  %vm831_vm13 = vcmp.ge.f32.partialorder %v621_v32, 0.0  ;;  %v895_v41 = vmul.f32 0.2, %v621_v32  ;;  %v625_v42 = vpop.f32.mrf.mxu0  ;;  %v753_v43 = vpop.f32.mrf.mxu1  ;;  %1770 = vst [vmem:[%s2073_s29 + $0xa0] sm:$0xff] %v1694_v36   ;;  %v613_v45 = vadd.f32 %v2058_v35, %v612_v25 }
  0xfb   : > { %vm863_vm14 = vcmp.ge.f32.partialorder %v749_v39, 0.0  ;;  %v927_v44 = vmul.f32 0.2, %v749_v39  ;;  %v741_v46 = vadd.f32 %v2058_v35, %v740_v26  ;;  %v988_v47 = vsel %vm860_vm12, %v738_v31, %v924_v40 }
  0xfc   : > { %v959_v48 = vsel %vm831_vm13, %v621_v32, %v895_v41  ;;  %v634_v49 = vadd.f32 %v1841_v33, %v2058_v35  ;;  %v762_v50 = vadd.f32 %v1873_v34, %v2058_v35  ;;  %v1842_v51 = vpop.f32.mrf.mxu0  ;;  %v1874_v52 = vpop.f32.mrf.mxu1  ;;  %vm829_vm15 = vcmp.ge.f32.partialorder %v613_v45, 0.0 }
  0xfd   : > { %v1629_v53 = vpack.c.bf16 %v959_v48, %v958_v30  ;;  %v991_v54 = vsel %vm863_vm14, %v749_v39, %v927_v44  ;;  %v893_v55 = vmul.f32 0.2, %v613_v45  ;;  %vm861_vm0 = vcmp.ge.f32.partialorder %v741_v46, 0.0 }
  0xfe   : > { %v1709_v56 = vpack.c.bf16 %v991_v54, %v990_v37  ;;  %v925_v57 = vmul.f32 0.2, %v741_v46  ;;  %vm834_vm1 = vcmp.ge.f32.partialorder %v634_v49, 0.0  ;;  %v628_v58 = vpop.f32.mrf.mxu0  ;;  %v756_v59 = vpop.f32.mrf.mxu1  ;;  %v898_v61 = vmul.f32 0.2, %v634_v49 }
  0xff   : > { %1757 = vst [vmem:[%s2073_s29 + $0x38] sm:$0xff] %v1629_v53   ;;  %v957_v60 = vsel %vm829_vm15, %v613_v45, %v893_v55  ;;  %vm866_vm2 = vcmp.ge.f32.partialorder %v762_v50, 0.0  ;;  %v930_v62 = vmul.f32 0.2, %v762_v50  ;;  %v626_v1 = vadd.f32 %v2058_v35, %v625_v42 }
 0x100   : > { %1773 = vst [vmem:[%s2073_s29 + $0xb8] sm:$0xff] %v1709_v56   ;;  %v1624_v63 = vpack.c.bf16 %v957_v60, %v956_v38  ;;  %v989_v0 = vsel %vm861_vm0, %v741_v46, %v925_v57  ;;  %v754_v2 = vadd.f32 %v2058_v35, %v753_v43  ;;  %v1845_v3 = vpop.f32.mrf.mxu0  ;;  %v1877_v4 = vpop.f32.mrf.mxu1  ;;  %v962_v6 = vsel %vm834_vm1, %v634_v49, %v898_v61 }
 0x101   : > { %v1704_v5 = vpack.c.bf16 %v989_v0, %v988_v47  ;;  %v994_v7 = vsel %vm866_vm2, %v762_v50, %v930_v62  ;;  %v637_v8 = vadd.f32 %v1842_v51, %v2058_v35  ;;  %vm832_vm3 = vcmp.ge.f32.partialorder %v626_v1, 0.0 }
 0x102   : > { %1756 = vst [vmem:[%s2073_s29 + $0x30] sm:$0xff] %v1624_v63   ;;  %v896_v9 = vmul.f32 0.2, %v626_v1  ;;  %vm864_vm4 = vcmp.ge.f32.partialorder %v754_v2, 0.0  ;;  %v928_v10 = vmul.f32 0.2, %v754_v2  ;;  %v641_v11 = vpop.f32.mrf.mxu0  ;;  %v769_v12 = vpop.f32.mrf.mxu1  ;;  %v765_v14 = vadd.f32 %v1874_v52, %v2058_v35 }
 0x103   : > { %1772 = vst [vmem:[%s2073_s29 + $0xb0] sm:$0xff] %v1704_v5   ;;  %vm835_vm5 = vcmp.ge.f32.partialorder %v637_v8, 0.0  ;;  %v899_v13 = vmul.f32 0.2, %v637_v8  ;;  %v629_v15 = vadd.f32 %v2058_v35, %v628_v58  ;;  %v757_v18 = vadd.f32 %v2058_v35, %v756_v59 }
 0x104   : > { %v960_v16 = vsel %vm832_vm3, %v626_v1, %v896_v9  ;;  %v992_v17 = vsel %vm864_vm4, %v754_v2, %v928_v10  ;;  %v650_v19 = vadd.f32 %v1845_v3, %v2058_v35  ;;  %v1846_v20 = vpop.f32.mrf.mxu0  ;;  %v1878_v21 = vpop.f32.mrf.mxu1  ;;  %vm867_vm6 = vcmp.ge.f32.partialorder %v765_v14, 0.0 }
 0x105   : > { %v963_v22 = vsel %vm835_vm5, %v637_v8, %v899_v13  ;;  %v931_v23 = vmul.f32 0.2, %v765_v14  ;;  %vm833_vm7 = vcmp.ge.f32.partialorder %v629_v15, 0.0  ;;  %v897_v25 = vmul.f32 0.2, %v629_v15 }
 0x106   : > { %v1639_v24 = vpack.c.bf16 %v963_v22, %v962_v6  ;;  %vm865_vm8 = vcmp.ge.f32.partialorder %v757_v18, 0.0  ;;  %v929_v26 = vmul.f32 0.2, %v757_v18  ;;  %v644_v27 = vpop.f32.mrf.mxu0  ;;  %v772_v28 = vpop.f32.mrf.mxu1  ;;  %vm838_vm9 = vcmp.ge.f32.partialorder %v650_v19, 0.0 }
 0x107   : > { %v995_v29 = vsel %vm867_vm6, %v765_v14, %v931_v23  ;;  %v902_v30 = vmul.f32 0.2, %v650_v19  ;;  %v778_v31 = vadd.f32 %v1877_v4, %v2058_v35  ;;  %v961_v33 = vsel %vm833_vm7, %v629_v15, %v897_v25 }
 0x108   : > { %1759 = vst [vmem:[%s2073_s29 + $0x48] sm:$0xff] %v1639_v24   ;;  %v1719_v32 = vpack.c.bf16 %v995_v29, %v994_v7  ;;  %v993_v34 = vsel %vm865_vm8, %v757_v18, %v929_v26  ;;  %v642_v36 = vadd.f32 %v2058_v35, %v641_v11  ;;  %v1849_v37 = vpop.f32.mrf.mxu0  ;;  %v1881_v38 = vpop.f32.mrf.mxu1  ;;  %v1634_v39 = vpack.c.bf16 %v961_v33, %v960_v16 }
 0x109   : > { %v1714_v40 = vpack.c.bf16 %v993_v34, %v992_v17  ;;  %v966_v41 = vsel %vm838_vm9, %v650_v19, %v902_v30  ;;  %vm870_vm10 = vcmp.ge.f32.partialorder %v778_v31, 0.0  ;;  %v934_v42 = vmul.f32 0.2, %v778_v31 }
 0x10a   : > { %1775 = vst [vmem:[%s2073_s29 + $0xc8] sm:$0xff] %v1719_v32   ;;  %vm836_vm11 = vcmp.ge.f32.partialorder %v642_v36, 0.0  ;;  %v900_v43 = vmul.f32 0.2, %v642_v36  ;;  %v770_v44 = vadd.f32 %v2058_v35, %v769_v12  ;;  %v657_v45 = vpop.f32.mrf.mxu0  ;;  %v785_v46 = vpop.f32.mrf.mxu1  ;;  %1758 = vst [vmem:[%s2073_s29 + $0x40] sm:$0xff] %v1634_v39   ;;  %v653_v47 = vadd.f32 %v1846_v20, %v2058_v35 }
 0x10b   : > { %1774 = vst [vmem:[%s2073_s29 + $0xc0] sm:$0xff] %v1714_v40   ;;  %v781_v48 = vadd.f32 %v1878_v21, %v2058_v35  ;;  %v645_v49 = vadd.f32 %v2058_v35, %v644_v27  ;;  %v773_v50 = vadd.f32 %v2058_v35, %v772_v28  ;;  %v998_v51 = vsel %vm870_vm10, %v778_v31, %v934_v42 }
 0x10c   : > { %v964_v52 = vsel %vm836_vm11, %v642_v36, %v900_v43  ;;  %vm868_vm12 = vcmp.ge.f32.partialorder %v770_v44, 0.0  ;;  %v932_v53 = vmul.f32 0.2, %v770_v44  ;;  %v1850_v54 = vpop.f32.mrf.mxu0  ;;  %v1882_v55 = vpop.f32.mrf.mxu1  ;;  %vm839_vm13 = vcmp.ge.f32.partialorder %v653_v47, 0.0 }
 0x10d   : > { %v903_v56 = vmul.f32 0.2, %v653_v47  ;;  %vm871_vm14 = vcmp.ge.f32.partialorder %v781_v48, 0.0  ;;  %v935_v57 = vmul.f32 0.2, %v781_v48  ;;  %vm837_vm15 = vcmp.ge.f32.partialorder %v645_v49, 0.0 }
 0x10e   : > { %v996_v58 = vsel %vm868_vm12, %v770_v44, %v932_v53  ;;  %v901_v59 = vmul.f32 0.2, %v645_v49  ;;  %vm869_vm0 = vcmp.ge.f32.partialorder %v773_v50, 0.0  ;;  %v660_v60 = vpop.f32.mrf.mxu0  ;;  %v788_v61 = vpop.f32.mrf.mxu1  ;;  %v933_v0 = vmul.f32 0.2, %v773_v50 }
 0x10f   : > { %v967_v62 = vsel %vm839_vm13, %v653_v47, %v903_v56  ;;  %v999_v63 = vsel %vm871_vm14, %v781_v48, %v935_v57  ;;  %v666_v1 = vadd.f32 %v1849_v37, %v2058_v35  ;;  %v794_v5 = vadd.f32 %v1881_v38, %v2058_v35 }
 0x110   : > { %v1649_v2 = vpack.c.bf16 %v967_v62, %v966_v41  ;;  %v1729_v3 = vpack.c.bf16 %v999_v63, %v998_v51  ;;  %v965_v4 = vsel %vm837_vm15, %v645_v49, %v901_v59  ;;  %v1853_v6 = vpop.f32.mrf.mxu0  ;;  %v1885_v7 = vpop.f32.mrf.mxu1  ;;  %v997_v9 = vsel %vm869_vm0, %v773_v50, %v933_v0 }
 0x111   : > { %v1644_v8 = vpack.c.bf16 %v965_v4, %v964_v52  ;;  %vm842_vm1 = vcmp.ge.f32.partialorder %v666_v1, 0.0  ;;  %v906_v10 = vmul.f32 0.2, %v666_v1  ;;  %v1724_v11 = vpack.c.bf16 %v997_v9, %v996_v58 }
 0x112   : > { %1761 = vst [vmem:[%s2073_s29 + $0x58] sm:$0xff] %v1649_v2   ;;  %1777 = vst [vmem:[%s2073_s29 + $0xd8] sm:$0xff] %v1729_v3   ;;  %vm874_vm2 = vcmp.ge.f32.partialorder %v794_v5, 0.0  ;;  %v938_v12 = vmul.f32 0.2, %v794_v5  ;;  %v658_v13 = vadd.f32 %v2058_v35, %v657_v45  ;;  %v786_v14 = vadd.f32 %v2058_v35, %v785_v46  ;;  %v673_v20 = vpop.f32.mrf.mxu0  ;;  %v801_v21 = vpop.f32.mrf.mxu1 }
 0x113   : > { %1760 = vst [vmem:[%s2073_s29 + $0x50] sm:$0xff] %v1644_v8   ;;  %v669_v15 = vadd.f32 %v1850_v54, %v2058_v35  ;;  %v797_v16 = vadd.f32 %v1882_v55, %v2058_v35  ;;  %1776 = vst [vmem:[%s2073_s29 + $0xd0] sm:$0xff] %v1724_v11   ;;  %v970_v17 = vsel %vm842_vm1, %v666_v1, %v906_v10 }
 0x114   : > { %vm840_vm3 = vcmp.ge.f32.partialorder %v658_v13, 0.0  ;;  %v904_v18 = vmul.f32 0.2, %v658_v13  ;;  %v661_v19 = vadd.f32 %v2058_v35, %v660_v60  ;;  %v1002_v22 = vsel %vm874_vm2, %v794_v5, %v938_v12  ;;  %v1854_v34 = vpop.f32.mrf.mxu0  ;;  %v1886_v36 = vpop.f32.mrf.mxu1 }
 0x115   : > { %vm872_vm4 = vcmp.ge.f32.partialorder %v786_v14, 0.0  ;;  %vm843_vm5 = vcmp.ge.f32.partialorder %v669_v15, 0.0  ;;  %v907_v23 = vmul.f32 0.2, %v669_v15  ;;  %v936_v24 = vmul.f32 0.2, %v786_v14 }
 0x116   : > { %vm875_vm6 = vcmp.ge.f32.partialorder %v797_v16, 0.0  ;;  %v939_v25 = vmul.f32 0.2, %v797_v16  ;;  %vm841_vm7 = vcmp.ge.f32.partialorder %v661_v19, 0.0  ;;  %v968_v26 = vsel %vm840_vm3, %v658_v13, %v904_v18  ;;  %v676_v50 = vpop.f32.mrf.mxu0  ;;  %v804_v51 = vpop.f32.mrf.mxu1 }
 0x117   : > { %v971_v27 = vsel %vm843_vm5, %v669_v15, %v907_v23  ;;  %v905_v28 = vmul.f32 0.2, %v661_v19  ;;  %v789_v29 = vadd.f32 %v2058_v35, %v788_v61  ;;  %v682_v32 = vadd.f32 %v1853_v6, %v2058_v35 }
 0x118   : > { %v1659_v30 = vpack.c.bf16 %v971_v27, %v970_v17  ;;  %v1003_v31 = vsel %vm875_vm6, %v797_v16, %v939_v25  ;;  %v810_v33 = vadd.f32 %v1885_v7, %v2058_v35  ;;  %v1000_v40 = vsel %vm872_vm4, %v786_v14, %v936_v24 }
 0x119   : > { %v1739_v37 = vpack.c.bf16 %v1003_v31, %v1002_v22  ;;  %v969_v38 = vsel %vm841_vm7, %v661_v19, %v905_v28  ;;  %vm873_vm8 = vcmp.ge.f32.partialorder %v789_v29, 0.0  ;;  %v937_v39 = vmul.f32 0.2, %v789_v29 }
 0x11a   : > { %1763 = vst [vmem:[%s2073_s29 + $0x68] sm:$0xff] %v1659_v30   ;;  %v1654_v41 = vpack.c.bf16 %v969_v38, %v968_v26  ;;  %vm846_vm9 = vcmp.ge.f32.partialorder %v682_v32, 0.0  ;;  %v910_v42 = vmul.f32 0.2, %v682_v32  ;;  %vm878_vm10 = vcmp.ge.f32.partialorder %v810_v33, 0.0 }
 0x11b   : > { %1779 = vst [vmem:[%s2073_s29 + $0xe8] sm:$0xff] %v1739_v37   ;;  %v1001_v43 = vsel %vm873_vm8, %v789_v29, %v937_v39  ;;  %v942_v44 = vmul.f32 0.2, %v810_v33  ;;  %v674_v45 = vadd.f32 %v2058_v35, %v673_v20  ;;  %v802_v47 = vadd.f32 %v2058_v35, %v801_v21 }
 0x11c   : > { %1762 = vst [vmem:[%s2073_s29 + $0x60] sm:$0xff] %v1654_v41   ;;  %v1734_v46 = vpack.c.bf16 %v1001_v43, %v1000_v40  ;;  %v685_v48 = vadd.f32 %v1854_v34, %v2058_v35  ;;  %v813_v49 = vadd.f32 %v1886_v36, %v2058_v35  ;;  %v974_v52 = vsel %vm846_vm9, %v682_v32, %v910_v42 }
 0x11d   : > { %v1006_v53 = vsel %vm878_vm10, %v810_v33, %v942_v44  ;;  %v908_v55 = vmul.f32 0.2, %v674_v45  ;;  %v677_v57 = vadd.f32 %v2058_v35, %v676_v50  ;;  %v805_v58 = vadd.f32 %v2058_v35, %v804_v51 }
 0x11e   : > { %1778 = vst [vmem:[%s2073_s29 + $0xe0] sm:$0xff] %v1734_v46   ;;  %vm847_vm11 = vcmp.ge.f32.partialorder %v685_v48, 0.0  ;;  %v911_v54 = vmul.f32 0.2, %v685_v48  ;;  %vm879_vm12 = vcmp.ge.f32.partialorder %v813_v49, 0.0  ;;  %vm844_vm13 = vcmp.ge.f32.partialorder %v674_v45, 0.0 }
 0x11f   : > { %v943_v56 = vmul.f32 0.2, %v813_v49  ;;  %vm876_vm14 = vcmp.ge.f32.partialorder %v802_v47, 0.0  ;;  %v940_v59 = vmul.f32 0.2, %v802_v47  ;;  %vm845_vm15 = vcmp.ge.f32.partialorder %v677_v57, 0.0 }
 0x120   : > { %v975_v60 = vsel %vm847_vm11, %v685_v48, %v911_v54  ;;  %v909_v63 = vmul.f32 0.2, %v677_v57  ;;  %vm877_vm0 = vcmp.ge.f32.partialorder %v805_v58, 0.0  ;;  %v941_v1 = vmul.f32 0.2, %v805_v58 }
 0x121   : > { %v1669_v61 = vpack.c.bf16 %v975_v60, %v974_v52  ;;  %v1007_v62 = vsel %vm879_vm12, %v813_v49, %v943_v56  ;;  %v972_v2 = vsel %vm844_vm13, %v674_v45, %v908_v55  ;;  %v1004_v4 = vsel %vm876_vm14, %v802_v47, %v940_v59 }
 0x122   : > { %v1749_v0 = vpack.c.bf16 %v1007_v62, %v1006_v53  ;;  %v973_v3 = vsel %vm845_vm15, %v677_v57, %v909_v63  ;;  %v1005_v5 = vsel %vm877_vm0, %v805_v58, %v941_v1 }
 0x123   : > { %1765 = vst [vmem:[%s2073_s29 + $0x78] sm:$0xff] %v1669_v61   ;;  %v1664_v35 = vpack.c.bf16 %v973_v3, %v972_v2  ;;  %v1744_v6 = vpack.c.bf16 %v1005_v5, %v1004_v4 }
 0x124   : > { %1781 = vst [vmem:[%s2073_s29 + $0xf8] sm:$0xff] %v1749_v0  }
 0x125   : > { %1764 = vst [vmem:[%s2073_s29 + $0x70] sm:$0xff] %v1664_v35   ;;  %1780 = vst [vmem:[%s2073_s29 + $0xf0] sm:$0xff] %v1744_v6  }
 0x126 PF: > { %s13_s12 = sadd.s32 1, %s1942_s12  }
 0x127   : > { %p10_p4 = scmp.ge.s32.totalorder %s13_s12, 11  }
 0x129   :  { %12 = sbr.rel (!%p10_p4) target bundleno = 1 (0x1), region = 62 }

// kernel: discriminator_forward.6
= control target key start
LH: loop header
LB: loop body
LE: loop exit
PB: predicated region body
PF: predicated region fallthrough
CT: control target
= control target key end

     0   :  { %s2051_s15 = smov 0   ;;  %s2370_s0 = inlined_call_operand.vmem [shape: bf16[1536,128], index: 0, kind: input, shape index: {}]   ;;  %s2371_s1 = inlined_call_operand.vmem [shape: bf16[128,128], index: 1, kind: input, shape index: {}]   ;;  %s2372_s2 = inlined_call_operand.vmem [shape: bf16[1536,128], index: 2, kind: output, shape index: {0}]   ;;  %s2373_s3 = inlined_call_operand.vmem [shape: f32[24,128], index: 3, kind: output, shape index: {1}]   ;;  %s2374_s4 = inlined_call_operand.vmem [shape: f32[24,128], index: 4, kind: output, shape index: {2}]  }
   0x1 LB: > { %s2057_s16 = sadd.s32 4294967295, %s2024_s15   ;;  %p1466_p0 = scmp.ge.s32.totalorder %s2024_s15, 1  ;;  %s2024_s15 = sphi %s2051_s15, %s15_s15  }
   0x2   : > { %p168_p1 = scmp.lt.s32.totalorder %s2024_s15, 4 }
   0x4   : > { %p169_p2 = pnand %p1466_p0, %p168_p1 }
   0x5   : > { %s1467_s19 = sshll.u32 (!%p169_p2), %s2057_s16, 6  ;;  %p214_p4 = scmp.lt.s32.totalorder (!%p169_p2), %s2057_s16, 2 }
   0x6   : > { %172 = sbr.rel (%p169_p2) target bundleno = 372 (0x174), region = 28  ;;  %p203_p3 = scmp.lt.s32.totalorder (!%p169_p2), %s1467_s19, 191 }
   0xb   : > { %v1978_v0 = vld [vmem:[%s2371_s1 + $0x38] sm:$0xff]   ;;  %v1979_v1 = vld [vmem:[%s2371_s1 + $0x30] sm:$0xff]   ;;  %s2376_s19 = smov (!%p203_p3, %s1467_s19), 191  ;;  %v1980_v2 = vld [vmem:[%s2371_s1 + $0x28] sm:$0xff]   ;;  %s2378_s16 = smov (!%p214_p4, %s2057_s16), 2 }
   0xc   : > { %1874 = vmatprep.subr.bf16.mxu0 %v1978_v0  ;;  %1954 = vmatprep.subr.bf16.mxu1 %v1978_v0  ;;  %s1468_s24 = sshll.u32 %s2376_s19, 2  ;;  %v1981_v3 = vld [vmem:[%s2371_s1 + $0x20] sm:$0xff]   ;;  %v1982_v5 = vld [vmem:[%s2371_s1 + $0x18] sm:$0xff]   ;;  %v1983_v6 = vld [vmem:[%s2371_s1 + $0x10] sm:$0xff]   ;;  %s1471_s17 = sshll.u32 %s2378_s16, 3 }
   0xd   : > { %1875 = vmatpush3.bf16.msra.mxu0 %v1978_v0  ;;  %1962 = vmatpush3.bf16.msra.mxu1 %v1978_v0  ;;  %s2079_s27 = scalar_lea.vmem %s2370_s0, %s1468_s24  ;;  %v1984_v7 = vld [vmem:[%s2371_s1 + $0x8] sm:$0xff]   ;;  %v1985_v8 = vld [vmem:[%s2371_s1] sm:$0xff]   ;;  %s2137_s14 = scalar_lea.vmem %s2372_s2, %s1468_s24 }
   0xe   : > { %1876 = vmatprep.subr.bf16.mxu0 %v1979_v1  ;;  %1955 = vmatprep.subr.bf16.mxu1 %v1979_v1  ;;  %v1986_v4 = vld [vmem:[%s2079_s27] sm:$0xff]   ;;  %v1987_v10 = vld [vmem:[%s2079_s27 + $0x8] sm:$0xff]   ;;  %v1988_v11 = vld [vmem:[%s2079_s27 + $0x10] sm:$0xff]   ;;  %s217_s20 = scalar_lea.vmem %s2373_s3, %s1471_s17  ;;  %s221_s22 = scalar_lea.vmem %s2374_s4, %s1471_s17 }
   0xf   : > { %1890 = vmatprep.mubr.bf16.mxu0 %v1986_v4  ;;  %v2002_v9 = vld [vmem:[%s2079_s27 + $0x80] sm:$0xff]   ;;  %v2003_v12 = vld [vmem:[%s2079_s27 + $0x88] sm:$0xff]   ;;  %v2004_v13 = vld [vmem:[%s2079_s27 + $0x90] sm:$0xff]  }
  0x10   : > { %1922 = vmatprep.mubr.bf16.mxu1 %v2002_v9  ;;  %v1989_v14 = vld [vmem:[%s2079_s27 + $0x18] sm:$0xff]   ;;  %v1990_v15 = vld [vmem:[%s2079_s27 + $0x20] sm:$0xff]   ;;  %v1991_v18 = vld [vmem:[%s2079_s27 + $0x28] sm:$0xff]  }
  0x11   : > { %1877 = vmatpush3.bf16.msra.mxu0 %v1979_v1  ;;  %1963 = vmatpush3.bf16.msra.mxu1 %v1979_v1  ;;  %v2005_v16 = vld [vmem:[%s2079_s27 + $0x98] sm:$0xff]   ;;  %v2006_v17 = vld [vmem:[%s2079_s27 + $0xa0] sm:$0xff]   ;;  %v2007_v19 = vld [vmem:[%s2079_s27 + $0xa8] sm:$0xff]  }
  0x12   : > { %1878 = vmatprep.subr.bf16.mxu0 %v1980_v2  ;;  %1956 = vmatprep.subr.bf16.mxu1 %v1980_v2  ;;  %v1992_v20 = vld [vmem:[%s2079_s27 + $0x30] sm:$0xff]   ;;  %v1993_v22 = vld [vmem:[%s2079_s27 + $0x38] sm:$0xff]   ;;  %v1994_v24 = vld [vmem:[%s2079_s27 + $0x40] sm:$0xff]  }
  0x13   : > { %v2008_v21 = vld [vmem:[%s2079_s27 + $0xb0] sm:$0xff]   ;;  %v2009_v23 = vld [vmem:[%s2079_s27 + $0xb8] sm:$0xff]   ;;  %v2010_v25 = vld [vmem:[%s2079_s27 + $0xc0] sm:$0xff]  }
  0x14   : > { %v1995_v26 = vld [vmem:[%s2079_s27 + $0x48] sm:$0xff]   ;;  %v1996_v28 = vld [vmem:[%s2079_s27 + $0x50] sm:$0xff]   ;;  %v1997_v30 = vld [vmem:[%s2079_s27 + $0x58] sm:$0xff]  }
  0x15   : > { %1879 = vmatpush3.bf16.msra.mxu0 %v1980_v2  ;;  %1964 = vmatpush3.bf16.msra.mxu1 %v1980_v2  ;;  %v2011_v27 = vld [vmem:[%s2079_s27 + $0xc8] sm:$0xff]   ;;  %v2012_v29 = vld [vmem:[%s2079_s27 + $0xd0] sm:$0xff]   ;;  %v2013_v31 = vld [vmem:[%s2079_s27 + $0xd8] sm:$0xff]  }
  0x16   : > { %1880 = vmatprep.subr.bf16.mxu0 %v1981_v3  ;;  %1957 = vmatprep.subr.bf16.mxu1 %v1981_v3  ;;  %v1998_v32 = vld [vmem:[%s2079_s27 + $0x60] sm:$0xff]   ;;  %v1999_v34 = vld [vmem:[%s2079_s27 + $0x68] sm:$0xff]   ;;  %v2000_v36 = vld [vmem:[%s2079_s27 + $0x70] sm:$0xff]  }
  0x17   : > { %v2014_v33 = vld [vmem:[%s2079_s27 + $0xe0] sm:$0xff]   ;;  %v2015_v35 = vld [vmem:[%s2079_s27 + $0xe8] sm:$0xff]   ;;  %v2016_v37 = vld [vmem:[%s2079_s27 + $0xf0] sm:$0xff]  }
  0x18   : > { %v2001_v38 = vld [vmem:[%s2079_s27 + $0x78] sm:$0xff]  }
  0x19   : > { %1881 = vmatpush3.bf16.msra.mxu0 %v1981_v3  ;;  %1965 = vmatpush3.bf16.msra.mxu1 %v1981_v3  ;;  %v2017_v39 = vld [vmem:[%s2079_s27 + $0xf8] sm:$0xff]  }
  0x1a   : > { %1882 = vmatprep.subr.bf16.mxu0 %v1982_v5  ;;  %1958 = vmatprep.subr.bf16.mxu1 %v1982_v5 }
  0x1d   : > { %1883 = vmatpush3.bf16.msra.mxu0 %v1982_v5  ;;  %1966 = vmatpush3.bf16.msra.mxu1 %v1982_v5 }
  0x1e   : > { %1884 = vmatprep.subr.bf16.mxu0 %v1983_v6  ;;  %1959 = vmatprep.subr.bf16.mxu1 %v1983_v6 }
  0x21   : > { %1885 = vmatpush3.bf16.msra.mxu0 %v1983_v6  ;;  %1967 = vmatpush3.bf16.msra.mxu1 %v1983_v6 }
  0x22   : > { %1886 = vmatprep.subr.bf16.mxu0 %v1984_v7  ;;  %1960 = vmatprep.subr.bf16.mxu1 %v1984_v7 }
  0x25   : > { %1887 = vmatpush3.bf16.msra.mxu0 %v1984_v7  ;;  %1968 = vmatpush3.bf16.msra.mxu1 %v1984_v7 }
  0x26   : > { %1888 = vmatprep.subr.bf16.mxu0 %v1985_v8  ;;  %1961 = vmatprep.subr.bf16.mxu1 %v1985_v8 }
  0x29   : > { %1889 = vmatpush3.bf16.msra.mxu0 %v1985_v8  ;;  %1969 = vmatpush3.bf16.msra.mxu1 %v1985_v8 }
  0x2c   : > { %1891 = vmatmul.mubr.bf16.vlgmr.msra.gmra.mxu0 %v1987_v10  ;;  %1923 = vmatmul.mubr.bf16.vlgmr.msra.gmra.mxu1 %v2003_v12 }
  0x2d   : > { %1894 = vmatprep.mubr.bf16.mxu0 %v1988_v11  ;;  %1926 = vmatprep.mubr.bf16.mxu1 %v2004_v13 }
  0x34   : > { %1895 = vmatmul.mubr.bf16.gmra.mxu0 %v1989_v14  ;;  %1927 = vmatmul.mubr.bf16.gmra.mxu1 %v2005_v16 }
  0x35   : > { %1898 = vmatprep.mubr.bf16.mxu0 %v1990_v15  ;;  %1930 = vmatprep.mubr.bf16.mxu1 %v2006_v17 }
  0x3c   : > { %1899 = vmatmul.mubr.bf16.gmra.mxu0 %v1991_v18  ;;  %1931 = vmatmul.mubr.bf16.gmra.mxu1 %v2007_v19 }
  0x3d   : > { %1902 = vmatprep.mubr.bf16.mxu0 %v1992_v20  ;;  %1934 = vmatprep.mubr.bf16.mxu1 %v2008_v21 }
  0x44   : > { %1903 = vmatmul.mubr.bf16.gmra.mxu0 %v1993_v22  ;;  %1935 = vmatmul.mubr.bf16.gmra.mxu1 %v2009_v23 }
  0x45   : > { %1906 = vmatprep.mubr.bf16.mxu0 %v1994_v24  ;;  %1938 = vmatprep.mubr.bf16.mxu1 %v2010_v25 }
  0x4c   : > { %1907 = vmatmul.mubr.bf16.gmra.mxu0 %v1995_v26  ;;  %1939 = vmatmul.mubr.bf16.gmra.mxu1 %v2011_v27 }
  0x4d   : > { %1910 = vmatprep.mubr.bf16.mxu0 %v1996_v28  ;;  %1942 = vmatprep.mubr.bf16.mxu1 %v2012_v29 }
  0x54   : > { %1911 = vmatmul.mubr.bf16.gmra.mxu0 %v1997_v30  ;;  %1943 = vmatmul.mubr.bf16.gmra.mxu1 %v2013_v31 }
  0x55   : > { %1914 = vmatprep.mubr.bf16.mxu0 %v1998_v32  ;;  %1946 = vmatprep.mubr.bf16.mxu1 %v2014_v33 }
  0x5c   : > { %1915 = vmatmul.mubr.bf16.gmra.mxu0 %v1999_v34  ;;  %1947 = vmatmul.mubr.bf16.gmra.mxu1 %v2015_v35 }
  0x5d   : > { %1918 = vmatprep.mubr.bf16.mxu0 %v2000_v36  ;;  %1950 = vmatprep.mubr.bf16.mxu1 %v2016_v37 }
  0x64   : > { %1919 = vmatmul.mubr.bf16.gmra.mxu0 %v2001_v38  ;;  %1951 = vmatmul.mubr.bf16.gmra.mxu1 %v2017_v39 }
  0xec   : > { %v1892_v40 = vpop.f32.mrf.mxu0  ;;  %v2128_v41 = vpop.f32.mrf.mxu1 }
  0xed   : > { %v1218_v57 = vmul.f32 %v1892_v40, %v1892_v40 }
  0xee   : > { %v577_v42 = vpop.f32.mrf.mxu0  ;;  %v2130_v43 = vpop.f32.mrf.mxu1 }
  0xef   : > { %v1216_v48 = vmul.f32 %v577_v42, %v577_v42 }
  0xf0   : > { %v1893_v44 = vpop.f32.mrf.mxu0  ;;  %v2139_v45 = vpop.f32.mrf.mxu1 }
  0xf1   : > { %v1651_v46 = vpack.c.bf16 %v1893_v44, %v1892_v40  ;;  %v1731_v47 = vpack.c.bf16 %v2139_v45, %v2128_v41  ;;  %v1219_v62 = vmul.f32 %v1893_v44, %v1893_v44 }
  0xf2   : > { %v580_v49 = vpop.f32.mrf.mxu0  ;;  %v2143_v50 = vpop.f32.mrf.mxu1 }
  0xf3   : > { %1803 = vst [vmem:[%s2137_s14 + $0x8] sm:$0xff] %v1651_v46   ;;  %v1646_v51 = vpack.c.bf16 %v580_v49, %v577_v42  ;;  %v1152_v52 = vadd.f32 %v580_v49, %v577_v42  ;;  %v1217_v53 = vmul.f32 %v580_v49, %v580_v49  ;;  %1819 = vst [vmem:[%s2137_s14 + $0x88] sm:$0xff] %v1731_v47  }
  0xf4   : > { %v1726_v54 = vpack.c.bf16 %v2143_v50, %v2130_v43  ;;  %v1896_v55 = vpop.f32.mrf.mxu0  ;;  %v2149_v56 = vpop.f32.mrf.mxu1 }
  0xf5   : > { %1647 = vst [vmem:[%s2137_s14] sm:$0xff] %v1646_v51   ;;  %v1153_v58 = vadd.f32 %v1892_v40, %v1152_v52  ;;  %v1280_v59 = vadd.f32 %v1217_v53, %v1216_v48  ;;  %v1222_v17 = vmul.f32 %v1896_v55, %v1896_v55 }
  0xf6   : > { %1818 = vst [vmem:[%s2137_s14 + $0x80] sm:$0xff] %v1726_v54   ;;  %v593_v60 = vpop.f32.mrf.mxu0  ;;  %v2153_v61 = vpop.f32.mrf.mxu1 }
  0xf7   : > { %v1281_v63 = vadd.f32 %v1280_v59, %v1218_v57  ;;  %v1154_v0 = vadd.f32 %v1893_v44, %v1153_v58  ;;  %v1220_v4 = vmul.f32 %v593_v60, %v593_v60 }
  0xf8   : > { %v1897_v1 = vpop.f32.mrf.mxu0  ;;  %v2155_v2 = vpop.f32.mrf.mxu1 }
  0xf9   : > { %v1155_v3 = vadd.f32 %v1154_v0, %v593_v60  ;;  %v1282_v5 = vadd.f32 %v1281_v63, %v1219_v62  ;;  %v1661_v6 = vpack.c.bf16 %v1897_v1, %v1896_v55  ;;  %v1741_v8 = vpack.c.bf16 %v2155_v2, %v2149_v56 }
  0xfa   : > { %v596_v7 = vpop.f32.mrf.mxu0  ;;  %v2159_v9 = vpop.f32.mrf.mxu1  ;;  %v1223_v22 = vmul.f32 %v1897_v1, %v1897_v1 }
  0xfb   : > { %v1283_v10 = vadd.f32 %v1282_v5, %v1220_v4  ;;  %1805 = vst [vmem:[%s2137_s14 + $0x18] sm:$0xff] %v1661_v6   ;;  %v1656_v11 = vpack.c.bf16 %v596_v7, %v593_v60  ;;  %v1156_v12 = vadd.f32 %v1155_v3, %v596_v7  ;;  %v1221_v13 = vmul.f32 %v596_v7, %v596_v7 }
  0xfc   : > { %v1900_v14 = vpop.f32.mrf.mxu0  ;;  %1821 = vst [vmem:[%s2137_s14 + $0x98] sm:$0xff] %v1741_v8   ;;  %v1736_v15 = vpack.c.bf16 %v2159_v9, %v2153_v61  ;;  %v2165_v16 = vpop.f32.mrf.mxu1 }
  0xfd   : > { %1804 = vst [vmem:[%s2137_s14 + $0x10] sm:$0xff] %v1656_v11   ;;  %v1157_v18 = vadd.f32 %v1896_v55, %v1156_v12  ;;  %v1284_v19 = vadd.f32 %v1283_v10, %v1221_v13  ;;  %v1226_v42 = vmul.f32 %v1900_v14, %v1900_v14 }
  0xfe   : > { %v609_v20 = vpop.f32.mrf.mxu0  ;;  %1820 = vst [vmem:[%s2137_s14 + $0x90] sm:$0xff] %v1736_v15   ;;  %v2169_v21 = vpop.f32.mrf.mxu1 }
  0xff   : > { %v1285_v23 = vadd.f32 %v1284_v19, %v1222_v17  ;;  %v1158_v24 = vadd.f32 %v1897_v1, %v1157_v18  ;;  %v1224_v28 = vmul.f32 %v609_v20, %v609_v20 }
 0x100   : > { %v1901_v25 = vpop.f32.mrf.mxu0  ;;  %v2171_v26 = vpop.f32.mrf.mxu1 }
 0x101   : > { %v1159_v27 = vadd.f32 %v1158_v24, %v609_v20  ;;  %v1286_v29 = vadd.f32 %v1285_v23, %v1223_v22  ;;  %v1671_v30 = vpack.c.bf16 %v1901_v25, %v1900_v14  ;;  %v1751_v32 = vpack.c.bf16 %v2171_v26, %v2165_v16 }
 0x102   : > { %v612_v31 = vpop.f32.mrf.mxu0  ;;  %v2175_v33 = vpop.f32.mrf.mxu1  ;;  %v1227_v49 = vmul.f32 %v1901_v25, %v1901_v25 }
 0x103   : > { %v1287_v34 = vadd.f32 %v1286_v29, %v1224_v28  ;;  %1807 = vst [vmem:[%s2137_s14 + $0x28] sm:$0xff] %v1671_v30   ;;  %v1666_v35 = vpack.c.bf16 %v612_v31, %v609_v20  ;;  %v1160_v36 = vadd.f32 %v1159_v27, %v612_v31  ;;  %v1225_v37 = vmul.f32 %v612_v31, %v612_v31 }
 0x104   : > { %v1904_v38 = vpop.f32.mrf.mxu0  ;;  %1823 = vst [vmem:[%s2137_s14 + $0xa8] sm:$0xff] %v1751_v32   ;;  %v1746_v39 = vpack.c.bf16 %v2175_v33, %v2169_v21  ;;  %v2181_v40 = vpop.f32.mrf.mxu1 }
 0x105   : > { %1806 = vst [vmem:[%s2137_s14 + $0x20] sm:$0xff] %v1666_v35   ;;  %v1161_v44 = vadd.f32 %v1900_v14, %v1160_v36  ;;  %v1288_v46 = vadd.f32 %v1287_v34, %v1225_v37  ;;  %v1230_v8 = vmul.f32 %v1904_v38, %v1904_v38 }
 0x106   : > { %v625_v47 = vpop.f32.mrf.mxu0  ;;  %1822 = vst [vmem:[%s2137_s14 + $0xa0] sm:$0xff] %v1746_v39   ;;  %v2185_v48 = vpop.f32.mrf.mxu1 }
 0x107   : > { %v1289_v51 = vadd.f32 %v1288_v46, %v1226_v42  ;;  %v1162_v52 = vadd.f32 %v1901_v25, %v1161_v44  ;;  %v1228_v57 = vmul.f32 %v625_v47, %v625_v47 }
 0x108   : > { %v1905_v53 = vpop.f32.mrf.mxu0  ;;  %v2187_v54 = vpop.f32.mrf.mxu1 }
 0x109   : > { %v1163_v55 = vadd.f32 %v1162_v52, %v625_v47  ;;  %v1290_v58 = vadd.f32 %v1289_v51, %v1227_v49  ;;  %v1681_v59 = vpack.c.bf16 %v1905_v53, %v1904_v38  ;;  %v1761_v62 = vpack.c.bf16 %v2187_v54, %v2181_v40 }
 0x10a   : > { %v628_v60 = vpop.f32.mrf.mxu0  ;;  %v2191_v63 = vpop.f32.mrf.mxu1  ;;  %v1231_v14 = vmul.f32 %v1905_v53, %v1905_v53 }
 0x10b   : > { %v1291_v0 = vadd.f32 %v1290_v58, %v1228_v57  ;;  %1809 = vst [vmem:[%s2137_s14 + $0x38] sm:$0xff] %v1681_v59   ;;  %v1676_v1 = vpack.c.bf16 %v628_v60, %v625_v47  ;;  %v1164_v3 = vadd.f32 %v1163_v55, %v628_v60  ;;  %v1229_v4 = vmul.f32 %v628_v60, %v628_v60 }
 0x10c   : > { %v1908_v5 = vpop.f32.mrf.mxu0  ;;  %1825 = vst [vmem:[%s2137_s14 + $0xb8] sm:$0xff] %v1761_v62   ;;  %v1756_v6 = vpack.c.bf16 %v2191_v63, %v2185_v48  ;;  %v2197_v7 = vpop.f32.mrf.mxu1 }
 0x10d   : > { %1808 = vst [vmem:[%s2137_s14 + $0x30] sm:$0xff] %v1676_v1   ;;  %v1165_v10 = vadd.f32 %v1904_v38, %v1164_v3  ;;  %v1292_v11 = vadd.f32 %v1291_v0, %v1229_v4  ;;  %v1234_v37 = vmul.f32 %v1908_v5, %v1908_v5 }
 0x10e   : > { %v641_v12 = vpop.f32.mrf.mxu0  ;;  %1824 = vst [vmem:[%s2137_s14 + $0xb0] sm:$0xff] %v1756_v6   ;;  %v2201_v13 = vpop.f32.mrf.mxu1 }
 0x10f   : > { %v1293_v15 = vadd.f32 %v1292_v11, %v1230_v8  ;;  %v1166_v17 = vadd.f32 %v1905_v53, %v1165_v10  ;;  %v1232_v22 = vmul.f32 %v641_v12, %v641_v12 }
 0x110   : > { %v1909_v18 = vpop.f32.mrf.mxu0  ;;  %v2203_v19 = vpop.f32.mrf.mxu1 }
 0x111   : > { %v1167_v20 = vadd.f32 %v1166_v17, %v641_v12  ;;  %v1294_v23 = vadd.f32 %v1293_v15, %v1231_v14  ;;  %v1691_v24 = vpack.c.bf16 %v1909_v18, %v1908_v5  ;;  %v1771_v27 = vpack.c.bf16 %v2203_v19, %v2197_v7 }
 0x112   : > { %v644_v25 = vpop.f32.mrf.mxu0  ;;  %v2207_v28 = vpop.f32.mrf.mxu1  ;;  %v1235_v46 = vmul.f32 %v1909_v18, %v1909_v18 }
 0x113   : > { %v1295_v29 = vadd.f32 %v1294_v23, %v1232_v22  ;;  %1811 = vst [vmem:[%s2137_s14 + $0x48] sm:$0xff] %v1691_v24   ;;  %v1686_v30 = vpack.c.bf16 %v644_v25, %v641_v12  ;;  %v1168_v31 = vadd.f32 %v1167_v20, %v644_v25  ;;  %v1233_v32 = vmul.f32 %v644_v25, %v644_v25 }
 0x114   : > { %v1912_v34 = vpop.f32.mrf.mxu0  ;;  %1827 = vst [vmem:[%s2137_s14 + $0xc8] sm:$0xff] %v1771_v27   ;;  %v1766_v35 = vpack.c.bf16 %v2207_v28, %v2201_v13  ;;  %v2213_v36 = vpop.f32.mrf.mxu1 }
 0x115   : > { %1810 = vst [vmem:[%s2137_s14 + $0x40] sm:$0xff] %v1686_v30   ;;  %v1169_v38 = vadd.f32 %v1908_v5, %v1168_v31  ;;  %v1296_v39 = vadd.f32 %v1295_v29, %v1233_v32  ;;  %v1238_v10 = vmul.f32 %v1912_v34, %v1912_v34 }
 0x116   : > { %v657_v42 = vpop.f32.mrf.mxu0  ;;  %1826 = vst [vmem:[%s2137_s14 + $0xc0] sm:$0xff] %v1766_v35   ;;  %v2217_v44 = vpop.f32.mrf.mxu1 }
 0x117   : > { %v1297_v47 = vadd.f32 %v1296_v39, %v1234_v37  ;;  %v1170_v49 = vadd.f32 %v1909_v18, %v1169_v38  ;;  %v1236_v55 = vmul.f32 %v657_v42, %v657_v42 }
 0x118   : > { %v1913_v51 = vpop.f32.mrf.mxu0  ;;  %v2219_v52 = vpop.f32.mrf.mxu1 }
 0x119   : > { %v1171_v53 = vadd.f32 %v1170_v49, %v657_v42  ;;  %v1298_v57 = vadd.f32 %v1297_v47, %v1235_v46  ;;  %v1701_v58 = vpack.c.bf16 %v1913_v51, %v1912_v34  ;;  %v1781_v60 = vpack.c.bf16 %v2219_v52, %v2213_v36 }
 0x11a   : > { %v660_v59 = vpop.f32.mrf.mxu0  ;;  %v2223_v62 = vpop.f32.mrf.mxu1  ;;  %v1239_v17 = vmul.f32 %v1913_v51, %v1913_v51 }
 0x11b   : > { %v1299_v0 = vadd.f32 %v1298_v57, %v1236_v55  ;;  %1813 = vst [vmem:[%s2137_s14 + $0x58] sm:$0xff] %v1701_v58   ;;  %v1696_v1 = vpack.c.bf16 %v660_v59, %v657_v42  ;;  %v1172_v3 = vadd.f32 %v1171_v53, %v660_v59  ;;  %v1237_v4 = vmul.f32 %v660_v59, %v660_v59 }
 0x11c   : > { %v1916_v5 = vpop.f32.mrf.mxu0  ;;  %1829 = vst [vmem:[%s2137_s14 + $0xd8] sm:$0xff] %v1781_v60   ;;  %v1776_v6 = vpack.c.bf16 %v2223_v62, %v2217_v44  ;;  %v2229_v8 = vpop.f32.mrf.mxu1 }
 0x11d   : > { %1812 = vst [vmem:[%s2137_s14 + $0x50] sm:$0xff] %v1696_v1   ;;  %v1173_v11 = vadd.f32 %v1912_v34, %v1172_v3  ;;  %v1300_v12 = vadd.f32 %v1299_v0, %v1237_v4  ;;  %v1242_v47 = vmul.f32 %v1916_v5, %v1916_v5 }
 0x11e   : > { %v673_v14 = vpop.f32.mrf.mxu0  ;;  %1828 = vst [vmem:[%s2137_s14 + $0xd0] sm:$0xff] %v1776_v6   ;;  %v2233_v15 = vpop.f32.mrf.mxu1 }
 0x11f   : > { %v1301_v18 = vadd.f32 %v1300_v12, %v1238_v10  ;;  %v1174_v20 = vadd.f32 %v1913_v51, %v1173_v11  ;;  %v1240_v25 = vmul.f32 %v673_v14, %v673_v14 }
 0x120   : > { %v1917_v22 = vpop.f32.mrf.mxu0  ;;  %v2235_v23 = vpop.f32.mrf.mxu1 }
 0x121   : > { %v1175_v24 = vadd.f32 %v1174_v20, %v673_v14  ;;  %v1302_v27 = vadd.f32 %v1301_v18, %v1239_v17  ;;  %v1711_v29 = vpack.c.bf16 %v1917_v22, %v1916_v5  ;;  %v1791_v31 = vpack.c.bf16 %v2235_v23, %v2229_v8 }
 0x122   : > { %v676_v30 = vpop.f32.mrf.mxu0  ;;  %v2239_v32 = vpop.f32.mrf.mxu1  ;;  %v1243_v57 = vmul.f32 %v1917_v22, %v1917_v22 }
 0x123   : > { %v1303_v34 = vadd.f32 %v1302_v27, %v1240_v25  ;;  %1815 = vst [vmem:[%s2137_s14 + $0x68] sm:$0xff] %v1711_v29   ;;  %v1706_v35 = vpack.c.bf16 %v676_v30, %v673_v14  ;;  %v1176_v37 = vadd.f32 %v1175_v24, %v676_v30  ;;  %v1241_v38 = vmul.f32 %v676_v30, %v676_v30 }
 0x124   : > { %v1920_v39 = vpop.f32.mrf.mxu0  ;;  %1831 = vst [vmem:[%s2137_s14 + $0xe8] sm:$0xff] %v1791_v31   ;;  %v1786_v42 = vpack.c.bf16 %v2239_v32, %v2233_v15  ;;  %v2245_v46 = vpop.f32.mrf.mxu1  ;;  %v1248_v31 = vmul.f32 %v2130_v43, %v2130_v43 }
 0x125   : > { %1814 = vst [vmem:[%s2137_s14 + $0x60] sm:$0xff] %v1706_v35   ;;  %v1177_v49 = vadd.f32 %v1916_v5, %v1176_v37  ;;  %v1304_v51 = vadd.f32 %v1303_v34, %v1241_v38  ;;  %v1249_v38 = vmul.f32 %v2143_v50, %v2143_v50 }
 0x126   : > { %v689_v53 = vpop.f32.mrf.mxu0  ;;  %1830 = vst [vmem:[%s2137_s14 + $0xe0] sm:$0xff] %v1786_v42   ;;  %v2249_v55 = vpop.f32.mrf.mxu1 }
 0x127   : > { %v1305_v58 = vadd.f32 %v1304_v51, %v1242_v47  ;;  %v1178_v59 = vadd.f32 %v1917_v22, %v1177_v49  ;;  %v1244_v3 = vmul.f32 %v689_v53, %v689_v53  ;;  %v1246_v22 = vmul.f32 %v1920_v39, %v1920_v39 }
 0x128   : > { %v1921_v60 = vpop.f32.mrf.mxu0  ;;  %v2251_v0 = vpop.f32.mrf.mxu1  ;;  %v1251_v51 = vmul.f32 %v2139_v45, %v2139_v45 }
 0x129   : > { %v1179_v1 = vadd.f32 %v1178_v59, %v689_v53  ;;  %v1306_v4 = vadd.f32 %v1305_v58, %v1243_v57  ;;  %v1721_v6 = vpack.c.bf16 %v1921_v60, %v1920_v39  ;;  %v1801_v10 = vpack.c.bf16 %v2251_v0, %v2245_v46 }
 0x12a   : > { %v692_v5 = vpop.f32.mrf.mxu0  ;;  %v2255_v11 = vpop.f32.mrf.mxu1  ;;  %v1247_v27 = vmul.f32 %v1921_v60, %v1921_v60  ;;  %v1252_v58 = vmul.f32 %v2153_v61, %v2153_v61 }
 0x12b   : > { %v1307_v12 = vadd.f32 %v1306_v4, %v1244_v3  ;;  %1817 = vst [vmem:[%s2137_s14 + $0x78] sm:$0xff] %v1721_v6   ;;  %v1716_v14 = vpack.c.bf16 %v692_v5, %v689_v53  ;;  %v1180_v17 = vadd.f32 %v1179_v1, %v692_v5  ;;  %v1245_v18 = vmul.f32 %v692_v5, %v692_v5 }
 0x12c   : > { %1833 = vst [vmem:[%s2137_s14 + $0xf8] sm:$0xff] %v1801_v10   ;;  %v1796_v20 = vpack.c.bf16 %v2255_v11, %v2249_v55  ;;  %v1253_v1 = vmul.f32 %v2159_v9, %v2159_v9  ;;  %v1256_v10 = vmul.f32 %v2169_v21, %v2169_v21 }
 0x12d   : > { %1816 = vst [vmem:[%s2137_s14 + $0x70] sm:$0xff] %v1716_v14   ;;  %v1181_v24 = vadd.f32 %v1920_v39, %v1180_v17  ;;  %v1308_v25 = vadd.f32 %v1307_v12, %v1245_v18  ;;  %v1250_v39 = vmul.f32 %v2128_v41, %v2128_v41  ;;  %v1257_v17 = vmul.f32 %v2175_v33, %v2175_v33 }
 0x12e   : > { %1832 = vst [vmem:[%s2137_s14 + $0xf0] sm:$0xff] %v1796_v20  }
 0x12f   : > { %v1182_v29 = vadd.f32 %v1921_v60, %v1181_v24  ;;  %v1309_v30 = vadd.f32 %v1308_v25, %v1246_v22  ;;  %v1260_v25 = vmul.f32 %v2185_v48, %v2185_v48 }
 0x131   : > { %v1310_v34 = vadd.f32 %v1309_v30, %v1247_v27  ;;  %v1183_v35 = vadd.f32 %v1182_v29, %v2130_v43  ;;  %v1261_v30 = vmul.f32 %v2191_v63, %v2191_v63 }
 0x133   : > { %v1184_v37 = vadd.f32 %v1183_v35, %v2143_v50  ;;  %v1311_v42 = vadd.f32 %v1310_v34, %v1248_v31 }
 0x135   : > { %v1185_v47 = vadd.f32 %v2128_v41, %v1184_v37  ;;  %v1312_v49 = vadd.f32 %v1311_v42, %v1249_v38  ;;  %v1254_v41 = vmul.f32 %v2149_v56, %v2149_v56  ;;  %v1264_v38 = vmul.f32 %v2201_v13, %v2201_v13 }
 0x137   : > { %v1313_v53 = vadd.f32 %v1312_v49, %v1250_v39  ;;  %v1186_v57 = vadd.f32 %v2139_v45, %v1185_v47  ;;  %v1255_v45 = vmul.f32 %v2155_v2, %v2155_v2  ;;  %v1265_v47 = vmul.f32 %v2207_v28, %v2207_v28 }
 0x139   : > { %v1187_v43 = vadd.f32 %v1186_v57, %v2153_v61  ;;  %v1314_v59 = vadd.f32 %v1313_v53, %v1251_v51 }
 0x13b   : > { %v1315_v50 = vadd.f32 %v1314_v59, %v1252_v58  ;;  %v1188_v60 = vadd.f32 %v1187_v43, %v2159_v9  ;;  %v1268_v43 = vmul.f32 %v2217_v44, %v2217_v44 }
 0x13d   : > { %v1189_v3 = vadd.f32 %v2149_v56, %v1188_v60  ;;  %v1316_v4 = vadd.f32 %v1315_v50, %v1253_v1  ;;  %v1258_v56 = vmul.f32 %v2165_v16, %v2165_v16  ;;  %v1270_v50 = vmul.f32 %v2213_v36, %v2213_v36 }
 0x13f   : > { %v1317_v6 = vadd.f32 %v1316_v4, %v1254_v41  ;;  %v1190_v5 = vadd.f32 %v2155_v2, %v1189_v3  ;;  %v1259_v2 = vmul.f32 %v2171_v26, %v2171_v26  ;;  %v1272_v4 = vmul.f32 %v2233_v15, %v2233_v15 }
 0x141   : > { %v1191_v61 = vadd.f32 %v1190_v5, %v2169_v21  ;;  %v1318_v12 = vadd.f32 %v1317_v6, %v1255_v45  ;;  %v1274_v5 = vmul.f32 %v2229_v8, %v2229_v8 }
 0x143   : > { %v1319_v14 = vadd.f32 %v1318_v12, %v1256_v10  ;;  %v1192_v9 = vadd.f32 %v1191_v61, %v2175_v33 }
 0x145   : > { %v1193_v18 = vadd.f32 %v2165_v16, %v1192_v9  ;;  %v1320_v20 = vadd.f32 %v1319_v14, %v1257_v17  ;;  %v1262_v16 = vmul.f32 %v2181_v40, %v2181_v40  ;;  %v1276_v9 = vmul.f32 %v2249_v55, %v2249_v55 }
 0x147   : > { %v1321_v22 = vadd.f32 %v1320_v20, %v1258_v56  ;;  %v1194_v24 = vadd.f32 %v2171_v26, %v1193_v18  ;;  %v1263_v26 = vmul.f32 %v2187_v54, %v2187_v54  ;;  %v1278_v18 = vmul.f32 %v2245_v46, %v2245_v46 }
 0x149   : > { %v1195_v21 = vadd.f32 %v1194_v24, %v2185_v48  ;;  %v1322_v27 = vadd.f32 %v1321_v22, %v1259_v2 }
 0x14b   : > { %v1323_v29 = vadd.f32 %v1322_v27, %v1260_v25  ;;  %v1196_v33 = vadd.f32 %v1195_v21, %v2191_v63 }
 0x14d   : > { %v1197_v31 = vadd.f32 %v2181_v40, %v1196_v33  ;;  %v1324_v34 = vadd.f32 %v1323_v29, %v1261_v30  ;;  %v1266_v40 = vmul.f32 %v2197_v7, %v2197_v7 }
 0x14f   : > { %v1325_v35 = vadd.f32 %v1324_v34, %v1262_v16  ;;  %v1198_v37 = vadd.f32 %v2187_v54, %v1197_v31  ;;  %v1267_v54 = vmul.f32 %v2203_v19, %v2203_v19 }
 0x151   : > { %v1199_v48 = vadd.f32 %v1198_v37, %v2201_v13  ;;  %v1326_v42 = vadd.f32 %v1325_v35, %v1263_v26 }
 0x153   : > { %v1327_v39 = vadd.f32 %v1326_v42, %v1264_v38  ;;  %v1200_v63 = vadd.f32 %v1199_v48, %v2207_v28 }
 0x155   : > { %v1201_v49 = vadd.f32 %v2197_v7, %v1200_v63  ;;  %v1328_v51 = vadd.f32 %v1327_v39, %v1265_v47  ;;  %v1269_v7 = vmul.f32 %v2223_v62, %v2223_v62 }
 0x157   : > { %v1329_v53 = vadd.f32 %v1328_v51, %v1266_v40  ;;  %v1202_v57 = vadd.f32 %v2203_v19, %v1201_v49  ;;  %v1271_v19 = vmul.f32 %v2219_v52, %v2219_v52 }
 0x159   : > { %v1203_v13 = vadd.f32 %v1202_v57, %v2217_v44  ;;  %v1330_v58 = vadd.f32 %v1329_v53, %v1267_v54 }
 0x15b   : > { %v1331_v28 = vadd.f32 %v1330_v58, %v1268_v43  ;;  %v1204_v59 = vadd.f32 %v1203_v13, %v2223_v62 }
 0x15d   : > { %v1205_v60 = vadd.f32 %v2213_v36, %v1204_v59  ;;  %v1332_v1 = vadd.f32 %v1331_v28, %v1269_v7  ;;  %v1273_v36 = vmul.f32 %v2239_v32, %v2239_v32 }
 0x15f   : > { %v1333_v41 = vadd.f32 %v1332_v1, %v1270_v50  ;;  %v1206_v44 = vadd.f32 %v2219_v52, %v1205_v60  ;;  %v1275_v52 = vmul.f32 %v2235_v23, %v2235_v23 }
 0x161   : > { %v1207_v3 = vadd.f32 %v1206_v44, %v2233_v15  ;;  %v1334_v45 = vadd.f32 %v1333_v41, %v1271_v19 }
 0x163   : > { %v1335_v62 = vadd.f32 %v1334_v45, %v1272_v4  ;;  %v1208_v6 = vadd.f32 %v1207_v3, %v2239_v32 }
 0x165   : > { %v1209_v61 = vadd.f32 %v2229_v8, %v1208_v6  ;;  %v1336_v10 = vadd.f32 %v1335_v62, %v1273_v36  ;;  %v1277_v8 = vmul.f32 %v2255_v11, %v2255_v11 }
 0x167   : > { %v1337_v12 = vadd.f32 %v1336_v10, %v1274_v5  ;;  %v1210_v15 = vadd.f32 %v2235_v23, %v1209_v61 }
 0x169   : > { %v1211_v14 = vadd.f32 %v1210_v15, %v2249_v55  ;;  %v1338_v32 = vadd.f32 %v1337_v12, %v1275_v52  ;;  %v1279_v55 = vmul.f32 %v2251_v0, %v2251_v0 }
 0x16b   : > { %v1339_v17 = vadd.f32 %v1338_v32, %v1276_v9  ;;  %v1212_v56 = vadd.f32 %v1211_v14, %v2255_v11 }
 0x16d   : > { %v1213_v20 = vadd.f32 %v2245_v46, %v1212_v56  ;;  %v1340_v23 = vadd.f32 %v1339_v17, %v1277_v8 }
 0x16f   : > { %v1214_v2 = vadd.f32 %v2251_v0, %v1213_v20  ;;  %v1341_v22 = vadd.f32 %v1340_v23, %v1278_v18 }
 0x171   : > { %1215 = vst [vmem:[%s217_s20] sm:$0xff] %v1214_v2  ;;  %v1342_v11 = vadd.f32 %v1341_v22, %v1279_v55 }
 0x173   : > { %1343 = vst [vmem:[%s221_s22] sm:$0xff] %v1342_v11 }
 0x174 PF: > { %s15_s15 = sadd.s32 1, %s2024_s15  }
 0x175   : > { %p12_p5 = scmp.ge.s32.totalorder %s15_s15, 5  }
 0x177   :  { %14 = sbr.rel (!%p12_p5) target bundleno = 1 (0x1), region = 82 }

// kernel: discriminator_forward.7
= control target key start
LH: loop header
LB: loop body
LE: loop exit
PB: predicated region body
PF: predicated region fallthrough
CT: control target
= control target key end

     0   :  { %v1170_v0 = vmov 0   ;;  %s1546_s1 = inlined_call_operand.vmem [shape: bf16[256,128], index: 1, kind: input, shape index: {}]   ;;  %s1547_s0 = inlined_call_operand.vmem [shape: bf16[288,256], index: 0, kind: input, shape index: {}]   ;;  %s1548_s2 = inlined_call_operand.vmem [shape: bf16[288,128], index: 2, kind: output, shape index: {0}]   ;;  %s1549_s3 = inlined_call_operand.vmem [shape: f32[8,128], index: 3, kind: output, shape index: {1}]   ;;  %s1550_s4 = inlined_call_operand.vmem [shape: f32[8,128], index: 4, kind: output, shape index: {2}]  }
   0x1   :  { %359 = vmatprep.subr.bf16.mxu0 %v1170_v0  ;;  %v1100_v1 = vld [vmem:[%s1546_s1 + $0x38] sm:$0xff]   ;;  %1067 = vmatprep.subr.bf16.mxu1 %v1170_v0  ;;  %v1101_v2 = vld [vmem:[%s1546_s1 + $0x30] sm:$0xff]   ;;  %v1102_v3 = vld [vmem:[%s1546_s1 + $0x28] sm:$0xff]  }
   0x2   :  { %360 = vmatpush1.bf16.msra.mxu0 %v1100_v1  ;;  %1083 = vmatpush1.bf16.msra.mxu1 %v1100_v1  ;;  %v1103_v4 = vld [vmem:[%s1546_s1 + $0x20] sm:$0xff]   ;;  %v1104_v5 = vld [vmem:[%s1546_s1 + $0x18] sm:$0xff]   ;;  %v1105_v7 = vld [vmem:[%s1546_s1 + $0x10] sm:$0xff]  }
   0x3   :  { %361 = vmatprep.subr.bf16.mxu0 %v1170_v0  ;;  %1068 = vmatprep.subr.bf16.mxu1 %v1170_v0  ;;  %v1118_v6 = vld [vmem:[%s1547_s0 + $0x4] ss:$8 sps:$4 sm:$0xff]   ;;  %v1130_v9 = vld [vmem:[%s1547_s0 + $0x94] ss:$8 sps:$4 sm:$0xff]   ;;  %v1116_v19 = vld [vmem:[%s1547_s0] ss:$8 sps:$4 sm:$0xff]  }
   0x4   :  { %391 = vmatprep.mubr.bf16.mxu0 %v1118_v6  ;;  %v1106_v8 = vld [vmem:[%s1546_s1 + $0x8] sm:$0xff]   ;;  %463 = vmatprep.mubr.bf16.mxu1 %v1130_v9  ;;  %v1107_v10 = vld [vmem:[%s1546_s1] sm:$0xff]   ;;  %v1108_v11 = vld [vmem:[%s1546_s1 + $0x78] sm:$0xff]  }
   0x5   :  { %v1109_v12 = vld [vmem:[%s1546_s1 + $0x70] sm:$0xff]   ;;  %v1110_v13 = vld [vmem:[%s1546_s1 + $0x68] sm:$0xff]   ;;  %v1111_v14 = vld [vmem:[%s1546_s1 + $0x60] sm:$0xff]  }
   0x6   :  { %362 = vmatpush1.bf16.msra.mxu0 %v1101_v2  ;;  %1084 = vmatpush1.bf16.msra.mxu1 %v1101_v2  ;;  %v1112_v15 = vld [vmem:[%s1546_s1 + $0x58] sm:$0xff]   ;;  %v1113_v16 = vld [vmem:[%s1546_s1 + $0x50] sm:$0xff]   ;;  %v1114_v17 = vld [vmem:[%s1546_s1 + $0x48] sm:$0xff]  }
   0x7   :  { %363 = vmatprep.subr.bf16.mxu0 %v1170_v0  ;;  %1069 = vmatprep.subr.bf16.mxu1 %v1170_v0  ;;  %v1115_v18 = vld [vmem:[%s1546_s1 + $0x40] sm:$0xff]   ;;  %v1128_v20 = vld [vmem:[%s1547_s0 + $0x90] ss:$8 sps:$4 sm:$0xff]   ;;  %v1119_v21 = vld [vmem:[%s1547_s0 + $0x14] ss:$8 sps:$4 sm:$0xff]  }
   0x8   :  { %v1134_v22 = vld [vmem:[%s1547_s0 + $0xa4] ss:$8 sps:$4 sm:$0xff]   ;;  %v1121_v23 = vld [vmem:[%s1547_s0 + $0x10] ss:$8 sps:$4 sm:$0xff]   ;;  %v1136_v24 = vld [vmem:[%s1547_s0 + $0xa0] ss:$8 sps:$4 sm:$0xff]  }
   0x9   :  { %v1122_v25 = vld [vmem:[%s1547_s0 + $0x24] ss:$8 sps:$4 sm:$0xff]   ;;  %v1140_v26 = vld [vmem:[%s1547_s0 + $0xb4] ss:$8 sps:$4 sm:$0xff]   ;;  %v1124_v27 = vld [vmem:[%s1547_s0 + $0x20] ss:$8 sps:$4 sm:$0xff]  }
   0xa   :  { %364 = vmatpush1.bf16.msra.mxu0 %v1102_v3  ;;  %1085 = vmatpush1.bf16.msra.mxu1 %v1102_v3  ;;  %v1142_v28 = vld [vmem:[%s1547_s0 + $0xb0] ss:$8 sps:$4 sm:$0xff]   ;;  %v1125_v29 = vld [vmem:[%s1547_s0 + $0x34] ss:$8 sps:$4 sm:$0xff]   ;;  %v1146_v30 = vld [vmem:[%s1547_s0 + $0xc4] ss:$8 sps:$4 sm:$0xff]  }
   0xb   :  { %365 = vmatprep.subr.bf16.mxu0 %v1170_v0  ;;  %1070 = vmatprep.subr.bf16.mxu1 %v1170_v0  ;;  %v1127_v31 = vld [vmem:[%s1547_s0 + $0x30] ss:$8 sps:$4 sm:$0xff]   ;;  %v1148_v32 = vld [vmem:[%s1547_s0 + $0xc0] ss:$8 sps:$4 sm:$0xff]   ;;  %v1131_v33 = vld [vmem:[%s1547_s0 + $0x44] ss:$8 sps:$4 sm:$0xff]  }
   0xc   :  { %v1152_v34 = vld [vmem:[%s1547_s0 + $0xd4] ss:$8 sps:$4 sm:$0xff]   ;;  %v1133_v35 = vld [vmem:[%s1547_s0 + $0x40] ss:$8 sps:$4 sm:$0xff]   ;;  %v1154_v36 = vld [vmem:[%s1547_s0 + $0xd0] ss:$8 sps:$4 sm:$0xff]  }
   0xd   :  { %v1137_v37 = vld [vmem:[%s1547_s0 + $0x54] ss:$8 sps:$4 sm:$0xff]   ;;  %v1158_v38 = vld [vmem:[%s1547_s0 + $0xe4] ss:$8 sps:$4 sm:$0xff]   ;;  %v1139_v39 = vld [vmem:[%s1547_s0 + $0x50] ss:$8 sps:$4 sm:$0xff]  }
   0xe   :  { %366 = vmatpush1.bf16.msra.mxu0 %v1103_v4  ;;  %1086 = vmatpush1.bf16.msra.mxu1 %v1103_v4  ;;  %v1160_v40 = vld [vmem:[%s1547_s0 + $0xe0] ss:$8 sps:$4 sm:$0xff]   ;;  %v1143_v41 = vld [vmem:[%s1547_s0 + $0x64] ss:$8 sps:$4 sm:$0xff]   ;;  %v1161_v42 = vld [vmem:[%s1547_s0 + $0xf4] ss:$8 sps:$4 sm:$0xff]  }
   0xf   :  { %367 = vmatprep.subr.bf16.mxu0 %v1170_v0  ;;  %1071 = vmatprep.subr.bf16.mxu1 %v1170_v0  ;;  %v1145_v43 = vld [vmem:[%s1547_s0 + $0x60] ss:$8 sps:$4 sm:$0xff]   ;;  %v1163_v44 = vld [vmem:[%s1547_s0 + $0xf0] ss:$8 sps:$4 sm:$0xff]   ;;  %v1149_v45 = vld [vmem:[%s1547_s0 + $0x74] ss:$8 sps:$4 sm:$0xff]  }
  0x10   :  { %v1164_v46 = vld [vmem:[%s1547_s0 + $0x104] ss:$8 sps:$4 sm:$0xff]   ;;  %v1151_v47 = vld [vmem:[%s1547_s0 + $0x70] ss:$8 sps:$4 sm:$0xff]   ;;  %v1166_v48 = vld [vmem:[%s1547_s0 + $0x100] ss:$8 sps:$4 sm:$0xff]  }
  0x11   :  { %v1155_v49 = vld [vmem:[%s1547_s0 + $0x84] ss:$8 sps:$4 sm:$0xff]   ;;  %v1167_v50 = vld [vmem:[%s1547_s0 + $0x114] ss:$8 sps:$4 sm:$0xff]   ;;  %v1157_v51 = vld [vmem:[%s1547_s0 + $0x80] ss:$8 sps:$4 sm:$0xff]  }
  0x12   :  { %368 = vmatpush1.bf16.msra.mxu0 %v1104_v5  ;;  %1087 = vmatpush1.bf16.msra.mxu1 %v1104_v5  ;;  %v1169_v52 = vld [vmem:[%s1547_s0 + $0x110] ss:$8 sps:$4 sm:$0xff]  }
  0x13   :  { %369 = vmatprep.subr.bf16.mxu0 %v1170_v0  ;;  %1072 = vmatprep.subr.bf16.mxu1 %v1170_v0 }
  0x16   :  { %370 = vmatpush1.bf16.msra.mxu0 %v1105_v7  ;;  %1088 = vmatpush1.bf16.msra.mxu1 %v1105_v7 }
  0x17   :  { %371 = vmatprep.subr.bf16.mxu0 %v1170_v0  ;;  %1073 = vmatprep.subr.bf16.mxu1 %v1170_v0 }
  0x1a   :  { %372 = vmatpush1.bf16.msra.mxu0 %v1106_v8  ;;  %1089 = vmatpush1.bf16.msra.mxu1 %v1106_v8 }
  0x1b   :  { %373 = vmatprep.subr.bf16.mxu0 %v1170_v0  ;;  %1074 = vmatprep.subr.bf16.mxu1 %v1170_v0 }
  0x1e   :  { %374 = vmatpush1.bf16.msra.mxu0 %v1107_v10  ;;  %1090 = vmatpush1.bf16.msra.mxu1 %v1107_v10 }
  0x1f   :  { %375 = vmatprep.subr.bf16.mxu0 %v1170_v0  ;;  %1075 = vmatprep.subr.bf16.mxu1 %v1170_v0 }
  0x22   :  { %376 = vmatpush2.bf16.msra.mxu0 %v1108_v11  ;;  %1091 = vmatpush2.bf16.msra.mxu1 %v1108_v11 }
  0x23   :  { %377 = vmatprep.subr.bf16.mxu0 %v1170_v0  ;;  %1076 = vmatprep.subr.bf16.mxu1 %v1170_v0 }
  0x26   :  { %378 = vmatpush2.bf16.msra.mxu0 %v1109_v12  ;;  %1092 = vmatpush2.bf16.msra.mxu1 %v1109_v12 }
  0x27   :  { %379 = vmatprep.subr.bf16.mxu0 %v1170_v0  ;;  %1077 = vmatprep.subr.bf16.mxu1 %v1170_v0 }
  0x2a   :  { %380 = vmatpush2.bf16.msra.mxu0 %v1110_v13  ;;  %1093 = vmatpush2.bf16.msra.mxu1 %v1110_v13 }
  0x2b   :  { %381 = vmatprep.subr.bf16.mxu0 %v1170_v0  ;;  %1078 = vmatprep.subr.bf16.mxu1 %v1170_v0 }
  0x2e   :  { %382 = vmatpush2.bf16.msra.mxu0 %v1111_v14  ;;  %1094 = vmatpush2.bf16.msra.mxu1 %v1111_v14 }
  0x2f   :  { %383 = vmatprep.subr.bf16.mxu0 %v1170_v0  ;;  %1079 = vmatprep.subr.bf16.mxu1 %v1170_v0 }
  0x32   :  { %384 = vmatpush2.bf16.msra.mxu0 %v1112_v15  ;;  %1095 = vmatpush2.bf16.msra.mxu1 %v1112_v15 }
  0x33   :  { %385 = vmatprep.subr.bf16.mxu0 %v1170_v0  ;;  %1080 = vmatprep.subr.bf16.mxu1 %v1170_v0 }
  0x36   :  { %386 = vmatpush2.bf16.msra.mxu0 %v1113_v16  ;;  %1096 = vmatpush2.bf16.msra.mxu1 %v1113_v16 }
  0x37   :  { %387 = vmatprep.subr.bf16.mxu0 %v1170_v0  ;;  %1081 = vmatprep.subr.bf16.mxu1 %v1170_v0 }
  0x3a   :  { %388 = vmatpush2.bf16.msra.mxu0 %v1114_v17  ;;  %1097 = vmatpush2.bf16.msra.mxu1 %v1114_v17 }
  0x3b   :  { %389 = vmatprep.subr.bf16.mxu0 %v1170_v0  ;;  %1082 = vmatprep.subr.bf16.mxu1 %v1170_v0 }
  0x3e   :  { %390 = vmatpush2.bf16.msra.mxu0 %v1115_v18  ;;  %1098 = vmatpush2.bf16.msra.mxu1 %v1115_v18 }
  0x41   :  { %392 = vmatmul.mubr.bf16.vlgmr.msra.gmra.mxu0 %v1116_v19  ;;  %464 = vmatmul.mubr.bf16.vlgmr.msra.gmra.mxu1 %v1128_v20 }
  0x42   :  { %399 = vmatprep.mubr.bf16.mxu0 %v1119_v21  ;;  %471 = vmatprep.mubr.bf16.mxu1 %v1134_v22 }
  0x49   :  { %400 = vmatmul.mubr.bf16.gmra.mxu0 %v1121_v23  ;;  %472 = vmatmul.mubr.bf16.gmra.mxu1 %v1136_v24 }
  0x4a   :  { %407 = vmatprep.mubr.bf16.mxu0 %v1122_v25  ;;  %479 = vmatprep.mubr.bf16.mxu1 %v1140_v26 }
  0x51   :  { %408 = vmatmul.mubr.bf16.gmra.mxu0 %v1124_v27  ;;  %480 = vmatmul.mubr.bf16.gmra.mxu1 %v1142_v28 }
  0x52   :  { %415 = vmatprep.mubr.bf16.mxu0 %v1125_v29  ;;  %487 = vmatprep.mubr.bf16.mxu1 %v1146_v30 }
  0x59   :  { %416 = vmatmul.mubr.bf16.gmra.mxu0 %v1127_v31  ;;  %488 = vmatmul.mubr.bf16.gmra.mxu1 %v1148_v32 }
  0x5a   :  { %423 = vmatprep.mubr.bf16.mxu0 %v1131_v33  ;;  %495 = vmatprep.mubr.bf16.mxu1 %v1152_v34 }
  0x61   :  { %424 = vmatmul.mubr.bf16.gmra.mxu0 %v1133_v35  ;;  %496 = vmatmul.mubr.bf16.gmra.mxu1 %v1154_v36 }
  0x62   :  { %431 = vmatprep.mubr.bf16.mxu0 %v1137_v37  ;;  %503 = vmatprep.mubr.bf16.mxu1 %v1158_v38 }
  0x69   :  { %432 = vmatmul.mubr.bf16.gmra.mxu0 %v1139_v39  ;;  %504 = vmatmul.mubr.bf16.gmra.mxu1 %v1160_v40 }
  0x6a   :  { %439 = vmatprep.mubr.bf16.mxu0 %v1143_v41  ;;  %511 = vmatprep.mubr.bf16.mxu1 %v1161_v42 }
  0x71   :  { %440 = vmatmul.mubr.bf16.gmra.mxu0 %v1145_v43  ;;  %512 = vmatmul.mubr.bf16.gmra.mxu1 %v1163_v44 }
  0x72   :  { %447 = vmatprep.mubr.bf16.mxu0 %v1149_v45  ;;  %519 = vmatprep.mubr.bf16.mxu1 %v1164_v46 }
  0x79   :  { %448 = vmatmul.mubr.bf16.gmra.mxu0 %v1151_v47  ;;  %520 = vmatmul.mubr.bf16.gmra.mxu1 %v1166_v48 }
  0x7a   :  { %455 = vmatprep.mubr.bf16.mxu0 %v1155_v49  ;;  %527 = vmatprep.mubr.bf16.mxu1 %v1167_v50 }
  0x81   :  { %456 = vmatmul.mubr.bf16.gmra.mxu0 %v1157_v51  ;;  %528 = vmatmul.mubr.bf16.gmra.mxu1 %v1169_v52 }
 0x101   :  { %v393_v53 = vpop.f32.mrf.mxu0  ;;  %v1384_v54 = vpop.f32.mrf.mxu1 }
 0x102   :  { %v752_v34 = vmul.f32 %v393_v53, %v393_v53 }
 0x103   :  { %v395_v55 = vpop.f32.mrf.mxu0  ;;  %v467_v56 = vpop.f32.mrf.mxu1 }
 0x105   :  { %v396_v57 = vpop.f32.mrf.mxu0  ;;  %v1386_v58 = vpop.f32.mrf.mxu1 }
 0x106   :  { %v963_v59 = vpack.c.bf16 %v396_v57, %v393_v53  ;;  %v1008_v60 = vpack.c.bf16 %v1386_v58, %v1384_v54  ;;  %v753_v31 = vmul.f32 %v396_v57, %v396_v57  ;;  %v716_v38 = vadd.f32 %v396_v57, %v393_v53 }
 0x107   :  { %v398_v61 = vpop.f32.mrf.mxu0  ;;  %v470_v62 = vpop.f32.mrf.mxu1 }
 0x108   :  { %964 = vst [vmem:[%s1548_s2] sm:$0xff] %v963_v59   ;;  %1058 = vst [vmem:[%s1548_s2 + $0x48] sm:$0xff] %v1008_v60   ;;  %v788_v41 = vadd.f32 %v753_v31, %v752_v34 }
 0x109   :  { %v401_v63 = vpop.f32.mrf.mxu0  ;;  %v1396_v0 = vpop.f32.mrf.mxu1 }
 0x10a   :  { %v754_v35 = vmul.f32 %v401_v63, %v401_v63  ;;  %v717_v45 = vadd.f32 %v716_v38, %v401_v63 }
 0x10b   :  { %v403_v1 = vpop.f32.mrf.mxu0  ;;  %v475_v2 = vpop.f32.mrf.mxu1 }
 0x10c   :  { %v789_v46 = vadd.f32 %v788_v41, %v754_v35 }
 0x10d   :  { %v404_v3 = vpop.f32.mrf.mxu0  ;;  %v1398_v4 = vpop.f32.mrf.mxu1 }
 0x10e   :  { %v968_v5 = vpack.c.bf16 %v404_v3, %v401_v63  ;;  %v1013_v6 = vpack.c.bf16 %v1398_v4, %v1396_v0  ;;  %v755_v42 = vmul.f32 %v404_v3, %v404_v3  ;;  %v718_v50 = vadd.f32 %v717_v45, %v404_v3 }
 0x10f   :  { %v406_v7 = vpop.f32.mrf.mxu0  ;;  %v478_v8 = vpop.f32.mrf.mxu1 }
 0x110   :  { %1050 = vst [vmem:[%s1548_s2 + $0x8] sm:$0xff] %v968_v5   ;;  %1059 = vst [vmem:[%s1548_s2 + $0x50] sm:$0xff] %v1013_v6   ;;  %v790_v51 = vadd.f32 %v789_v46, %v755_v42 }
 0x111   :  { %v409_v9 = vpop.f32.mrf.mxu0  ;;  %v1408_v10 = vpop.f32.mrf.mxu1 }
 0x112   :  { %v756_v47 = vmul.f32 %v409_v9, %v409_v9  ;;  %v719_v56 = vadd.f32 %v718_v50, %v409_v9 }
 0x113   :  { %v411_v11 = vpop.f32.mrf.mxu0  ;;  %v483_v12 = vpop.f32.mrf.mxu1 }
 0x114   :  { %v791_v57 = vadd.f32 %v790_v51, %v756_v47 }
 0x115   :  { %v412_v13 = vpop.f32.mrf.mxu0  ;;  %v1410_v14 = vpop.f32.mrf.mxu1 }
 0x116   :  { %v973_v15 = vpack.c.bf16 %v412_v13, %v409_v9  ;;  %v1018_v16 = vpack.c.bf16 %v1410_v14, %v1408_v10  ;;  %v757_v52 = vmul.f32 %v412_v13, %v412_v13  ;;  %v720_v62 = vadd.f32 %v719_v56, %v412_v13 }
 0x117   :  { %v414_v17 = vpop.f32.mrf.mxu0  ;;  %v486_v18 = vpop.f32.mrf.mxu1 }
 0x118   :  { %1051 = vst [vmem:[%s1548_s2 + $0x10] sm:$0xff] %v973_v15   ;;  %1060 = vst [vmem:[%s1548_s2 + $0x58] sm:$0xff] %v1018_v16   ;;  %v792_v2 = vadd.f32 %v791_v57, %v757_v52 }
 0x119   :  { %v417_v19 = vpop.f32.mrf.mxu0  ;;  %v1420_v20 = vpop.f32.mrf.mxu1 }
 0x11a   :  { %v758_v59 = vmul.f32 %v417_v19, %v417_v19  ;;  %v721_v3 = vadd.f32 %v720_v62, %v417_v19 }
 0x11b   :  { %v419_v21 = vpop.f32.mrf.mxu0  ;;  %v491_v22 = vpop.f32.mrf.mxu1 }
 0x11c   :  { %v793_v8 = vadd.f32 %v792_v2, %v758_v59 }
 0x11d   :  { %v420_v23 = vpop.f32.mrf.mxu0  ;;  %v1422_v24 = vpop.f32.mrf.mxu1 }
 0x11e   :  { %v978_v25 = vpack.c.bf16 %v420_v23, %v417_v19  ;;  %v1023_v26 = vpack.c.bf16 %v1422_v24, %v1420_v20  ;;  %v759_v5 = vmul.f32 %v420_v23, %v420_v23  ;;  %v722_v13 = vadd.f32 %v721_v3, %v420_v23 }
 0x11f   :  { %v422_v27 = vpop.f32.mrf.mxu0  ;;  %v494_v28 = vpop.f32.mrf.mxu1 }
 0x120   :  { %1052 = vst [vmem:[%s1548_s2 + $0x18] sm:$0xff] %v978_v25   ;;  %1061 = vst [vmem:[%s1548_s2 + $0x60] sm:$0xff] %v1023_v26   ;;  %v794_v15 = vadd.f32 %v793_v8, %v759_v5 }
 0x121   :  { %v425_v29 = vpop.f32.mrf.mxu0  ;;  %v1432_v30 = vpop.f32.mrf.mxu1 }
 0x122   :  { %v760_v9 = vmul.f32 %v425_v29, %v425_v29  ;;  %v723_v21 = vadd.f32 %v722_v13, %v425_v29 }
 0x123   :  { %v427_v32 = vpop.f32.mrf.mxu0  ;;  %v499_v33 = vpop.f32.mrf.mxu1 }
 0x124   :  { %v795_v19 = vadd.f32 %v794_v15, %v760_v9 }
 0x125   :  { %v428_v36 = vpop.f32.mrf.mxu0  ;;  %v1434_v37 = vpop.f32.mrf.mxu1 }
 0x126   :  { %v983_v39 = vpack.c.bf16 %v428_v36, %v425_v29  ;;  %v1028_v40 = vpack.c.bf16 %v1434_v37, %v1432_v30  ;;  %v761_v16 = vmul.f32 %v428_v36, %v428_v36  ;;  %v724_v27 = vadd.f32 %v723_v21, %v428_v36 }
 0x127   :  { %v430_v43 = vpop.f32.mrf.mxu0  ;;  %v502_v44 = vpop.f32.mrf.mxu1 }
 0x128   :  { %1053 = vst [vmem:[%s1548_s2 + $0x20] sm:$0xff] %v983_v39   ;;  %1062 = vst [vmem:[%s1548_s2 + $0x68] sm:$0xff] %v1028_v40   ;;  %v796_v32 = vadd.f32 %v795_v19, %v761_v16 }
 0x129   :  { %v433_v48 = vpop.f32.mrf.mxu0  ;;  %v1444_v49 = vpop.f32.mrf.mxu1 }
 0x12a   :  { %v762_v22 = vmul.f32 %v433_v48, %v433_v48  ;;  %v725_v23 = vadd.f32 %v724_v27, %v433_v48 }
 0x12b   :  { %v435_v53 = vpop.f32.mrf.mxu0  ;;  %v507_v55 = vpop.f32.mrf.mxu1 }
 0x12c   :  { %v797_v29 = vadd.f32 %v796_v32, %v762_v22  ;;  %v770_v22 = vmul.f32 %v1384_v54, %v1384_v54 }
 0x12d   :  { %v436_v60 = vpop.f32.mrf.mxu0  ;;  %v1446_v61 = vpop.f32.mrf.mxu1 }
 0x12e   :  { %v988_v63 = vpack.c.bf16 %v436_v60, %v433_v48  ;;  %v1033_v1 = vpack.c.bf16 %v1446_v61, %v1444_v49  ;;  %v763_v33 = vmul.f32 %v436_v60, %v436_v60  ;;  %v726_v40 = vadd.f32 %v725_v23, %v436_v60 }
 0x12f   :  { %v438_v6 = vpop.f32.mrf.mxu0  ;;  %v510_v7 = vpop.f32.mrf.mxu1 }
 0x130   :  { %1054 = vst [vmem:[%s1548_s2 + $0x28] sm:$0xff] %v988_v63   ;;  %1063 = vst [vmem:[%s1548_s2 + $0x70] sm:$0xff] %v1033_v1   ;;  %v798_v41 = vadd.f32 %v797_v29, %v763_v33  ;;  %v772_v33 = vmul.f32 %v1396_v0, %v1396_v0 }
 0x131   :  { %v441_v11 = vpop.f32.mrf.mxu0  ;;  %v1456_v12 = vpop.f32.mrf.mxu1 }
 0x132   :  { %v764_v38 = vmul.f32 %v441_v11, %v441_v11  ;;  %v727_v45 = vadd.f32 %v726_v40, %v441_v11 }
 0x133   :  { %v443_v17 = vpop.f32.mrf.mxu0  ;;  %v515_v18 = vpop.f32.mrf.mxu1 }
 0x134   :  { %v799_v46 = vadd.f32 %v798_v41, %v764_v38  ;;  %v774_v38 = vmul.f32 %v1408_v10, %v1408_v10 }
 0x135   :  { %v444_v25 = vpop.f32.mrf.mxu0  ;;  %v1458_v26 = vpop.f32.mrf.mxu1 }
 0x136   :  { %v993_v28 = vpack.c.bf16 %v444_v25, %v441_v11  ;;  %v1038_v31 = vpack.c.bf16 %v1458_v26, %v1456_v12  ;;  %v765_v42 = vmul.f32 %v444_v25, %v444_v25  ;;  %v728_v51 = vadd.f32 %v727_v45, %v444_v25 }
 0x137   :  { %v446_v34 = vpop.f32.mrf.mxu0  ;;  %v518_v35 = vpop.f32.mrf.mxu1 }
 0x138   :  { %1055 = vst [vmem:[%s1548_s2 + $0x30] sm:$0xff] %v993_v28   ;;  %1064 = vst [vmem:[%s1548_s2 + $0x78] sm:$0xff] %v1038_v31   ;;  %v800_v55 = vadd.f32 %v799_v46, %v765_v42  ;;  %v771_v28 = vmul.f32 %v1386_v58, %v1386_v58 }
 0x139   :  { %v449_v36 = vpop.f32.mrf.mxu0  ;;  %v1468_v39 = vpop.f32.mrf.mxu1 }
 0x13a   :  { %v766_v47 = vmul.f32 %v449_v36, %v449_v36  ;;  %v729_v60 = vadd.f32 %v728_v51, %v449_v36 }
 0x13b   :  { %v451_v43 = vpop.f32.mrf.mxu0  ;;  %v523_v44 = vpop.f32.mrf.mxu1 }
 0x13c   :  { %v801_v62 = vadd.f32 %v800_v55, %v766_v47 }
 0x13d   :  { %v452_v48 = vpop.f32.mrf.mxu0  ;;  %v1470_v50 = vpop.f32.mrf.mxu1 }
 0x13e   :  { %v998_v52 = vpack.c.bf16 %v452_v48, %v449_v36  ;;  %v1043_v53 = vpack.c.bf16 %v1470_v50, %v1468_v39  ;;  %v767_v56 = vmul.f32 %v452_v48, %v452_v48  ;;  %v730_v2 = vadd.f32 %v729_v60, %v452_v48 }
 0x13f   :  { %v454_v57 = vpop.f32.mrf.mxu0  ;;  %v526_v59 = vpop.f32.mrf.mxu1  ;;  %v782_v60 = vmul.f32 %v1456_v12, %v1456_v12 }
 0x140   :  { %1056 = vst [vmem:[%s1548_s2 + $0x38] sm:$0xff] %v998_v52   ;;  %1065 = vst [vmem:[%s1548_s2 + $0x80] sm:$0xff] %v1043_v53   ;;  %v802_v6 = vadd.f32 %v801_v62, %v767_v56  ;;  %v780_v53 = vmul.f32 %v1444_v49, %v1444_v49  ;;  %v781_v57 = vmul.f32 %v1446_v61, %v1446_v61 }
 0x141   :  { %v457_v63 = vpop.f32.mrf.mxu0  ;;  %v1480_v1 = vpop.f32.mrf.mxu1 }
 0x142   :  { %v768_v5 = vmul.f32 %v457_v63, %v457_v63  ;;  %v731_v8 = vadd.f32 %v730_v2, %v457_v63 }
 0x143   :  { %v459_v7 = vpop.f32.mrf.mxu0  ;;  %v531_v3 = vpop.f32.mrf.mxu1 }
 0x144   :  { %v803_v9 = vadd.f32 %v802_v6, %v768_v5  ;;  %v784_v5 = vmul.f32 %v1468_v39, %v1468_v39  ;;  %v785_v7 = vmul.f32 %v1470_v50, %v1470_v50 }
 0x145   :  { %v460_v11 = vpop.f32.mrf.mxu0  ;;  %v532_v13 = vpop.f32.mrf.mxu1 }
 0x146   :  { %v1003_v15 = vpack.c.bf16 %v460_v11, %v457_v63  ;;  %v732_v16 = vadd.f32 %v731_v8, %v460_v11  ;;  %v769_v17 = vmul.f32 %v460_v11, %v460_v11  ;;  %v1048_v18 = vpack.c.bf16 %v532_v13, %v1480_v1 }
 0x147   :  { %v462_v21 = vpop.f32.mrf.mxu0  ;;  %v534_v19 = vpop.f32.mrf.mxu1  ;;  %v783_v63 = vmul.f32 %v1458_v26, %v1458_v26  ;;  %v786_v8 = vmul.f32 %v1480_v1, %v1480_v1  ;;  %v787_v11 = vmul.f32 %v532_v13, %v532_v13 }
 0x148   :  { %1057 = vst [vmem:[%s1548_s2 + $0x40] sm:$0xff] %v1003_v15   ;;  %v733_v25 = vadd.f32 %v732_v16, %v1384_v54  ;;  %v804_v27 = vadd.f32 %v803_v9, %v769_v17  ;;  %1066 = vst [vmem:[%s1548_s2 + $0x88] sm:$0xff] %v1048_v18   ;;  %v773_v54 = vmul.f32 %v1398_v4, %v1398_v4 }
 0x14a   :  { %v734_v31 = vadd.f32 %v733_v25, %v1386_v58  ;;  %v805_v32 = vadd.f32 %v804_v27, %v770_v22  ;;  %v775_v58 = vmul.f32 %v1410_v14, %v1410_v14 }
 0x14c   :  { %v735_v34 = vadd.f32 %v734_v31, %v1396_v0  ;;  %v806_v35 = vadd.f32 %v805_v32, %v771_v28  ;;  %v776_v0 = vmul.f32 %v1420_v20, %v1420_v20 }
 0x14e   :  { %v736_v23 = vadd.f32 %v735_v34, %v1398_v4  ;;  %v807_v29 = vadd.f32 %v806_v35, %v772_v33  ;;  %v777_v4 = vmul.f32 %v1422_v24, %v1422_v24 }
 0x150   :  { %v737_v36 = vadd.f32 %v736_v23, %v1408_v10  ;;  %v808_v40 = vadd.f32 %v807_v29, %v773_v54  ;;  %v778_v10 = vmul.f32 %v1432_v30, %v1432_v30 }
 0x152   :  { %v809_v41 = vadd.f32 %v808_v40, %v774_v38  ;;  %v738_v42 = vadd.f32 %v737_v36, %v1410_v14  ;;  %v779_v14 = vmul.f32 %v1434_v37, %v1434_v37 }
 0x154   :  { %v739_v43 = vadd.f32 %v738_v42, %v1420_v20  ;;  %v810_v44 = vadd.f32 %v809_v41, %v775_v58 }
 0x156   :  { %v740_v45 = vadd.f32 %v739_v43, %v1422_v24  ;;  %v811_v46 = vadd.f32 %v810_v44, %v776_v0 }
 0x158   :  { %v741_v47 = vadd.f32 %v740_v45, %v1432_v30  ;;  %v812_v48 = vadd.f32 %v811_v46, %v777_v4 }
 0x15a   :  { %v742_v51 = vadd.f32 %v741_v47, %v1434_v37  ;;  %v813_v52 = vadd.f32 %v812_v48, %v778_v10 }
 0x15c   :  { %v743_v20 = vadd.f32 %v742_v51, %v1444_v49  ;;  %v814_v55 = vadd.f32 %v813_v52, %v779_v14 }
 0x15e   :  { %v815_v24 = vadd.f32 %v814_v55, %v780_v53  ;;  %v744_v56 = vadd.f32 %v743_v20, %v1446_v61 }
 0x160   :  { %v816_v30 = vadd.f32 %v815_v24, %v781_v57  ;;  %v745_v59 = vadd.f32 %v744_v56, %v1456_v12 }
 0x162   :  { %v817_v37 = vadd.f32 %v816_v30, %v782_v60  ;;  %v746_v62 = vadd.f32 %v745_v59, %v1458_v26 }
 0x164   :  { %v818_v49 = vadd.f32 %v817_v37, %v783_v63  ;;  %v747_v2 = vadd.f32 %v746_v62, %v1468_v39 }
 0x166   :  { %v819_v6 = vadd.f32 %v818_v49, %v784_v5  ;;  %v748_v61 = vadd.f32 %v747_v2, %v1470_v50 }
 0x168   :  { %v820_v3 = vadd.f32 %v819_v6, %v785_v7  ;;  %v749_v12 = vadd.f32 %v748_v61, %v1480_v1 }
 0x16a   :  { %v821_v9 = vadd.f32 %v820_v3, %v786_v8  ;;  %v750_v26 = vadd.f32 %v749_v12, %v532_v13 }
 0x16c   :  { %751 = vst [vmem:[%s1549_s3] sm:$0xff] %v750_v26  ;;  %v822_v39 = vadd.f32 %v821_v9, %v787_v11 }
 0x16e   :  { %823 = vst [vmem:[%s1550_s4] sm:$0xff] %v822_v39 }

// kernel: discriminator_forward.8
= control target key start
LH: loop header
LB: loop body
LE: loop exit
PB: predicated region body
PF: predicated region fallthrough
CT: control target
= control target key end

     0   :  { %s2312_s1 = inlined_call_operand.vmem [shape: bf16[512,128], index: 1, kind: input, shape index: {}]   ;;  %s2313_s0 = inlined_call_operand.vmem [shape: bf16[248,512], index: 0, kind: input, shape index: {}]   ;;  %s2314_s2 = inlined_call_operand.vmem [shape: bf16[248,128], index: 2, kind: output, shape index: {0}]   ;;  %s2315_s3 = inlined_call_operand.vmem [shape: f32[8,128], index: 3, kind: output, shape index: {1}]   ;;  %s2316_s4 = inlined_call_operand.vmem [shape: f32[8,128], index: 4, kind: output, shape index: {2}]  }
   0x1   :  { %v1699_v0 = vld [vmem:[%s2312_s1 + $0x78] sm:$0xff]   ;;  %v1703_v4 = vld [vmem:[%s2312_s1 + $0x70] sm:$0xff]   ;;  %v1707_v8 = vld [vmem:[%s2312_s1 + $0x68] sm:$0xff]  }
   0x2   :  { %v1700_v1 = vld [vmem:[%s2312_s1 + $0xf8] sm:$0xff]   ;;  %1475 = vmatprep.subr.bf16.mxu0 %v1699_v0  ;;  %v1704_v5 = vld [vmem:[%s2312_s1 + $0xf0] sm:$0xff]   ;;  %v1708_v9 = vld [vmem:[%s2312_s1 + $0xe8] sm:$0xff]  }
   0x3   :  { %v1701_v2 = vld [vmem:[%s2312_s1 + $0x38] sm:$0xff]   ;;  %1587 = vmatprep.subr.bf16.mxu1 %v1700_v1  ;;  %v1705_v6 = vld [vmem:[%s2312_s1 + $0x30] sm:$0xff]   ;;  %v1709_v10 = vld [vmem:[%s2312_s1 + $0x28] sm:$0xff]  }
   0x4   :  { %v1702_v3 = vld [vmem:[%s2312_s1 + $0xb8] sm:$0xff]   ;;  %1476 = vmatpush3.bf16.msra.mxu0 %v1701_v2  ;;  %v1706_v7 = vld [vmem:[%s2312_s1 + $0xb0] sm:$0xff]   ;;  %v1710_v11 = vld [vmem:[%s2312_s1 + $0xa8] sm:$0xff]  }
   0x5   :  { %1588 = vmatpush3.bf16.msra.mxu1 %v1702_v3  ;;  %1477 = vmatprep.subr.bf16.mxu0 %v1703_v4  ;;  %v1711_v12 = vld [vmem:[%s2312_s1 + $0x60] sm:$0xff]   ;;  %v1715_v16 = vld [vmem:[%s2312_s1 + $0x58] sm:$0xff]   ;;  %v1719_v20 = vld [vmem:[%s2312_s1 + $0x50] sm:$0xff]  }
   0x6   :  { %1589 = vmatprep.subr.bf16.mxu1 %v1704_v5  ;;  %v1712_v13 = vld [vmem:[%s2312_s1 + $0xe0] sm:$0xff]   ;;  %v1716_v17 = vld [vmem:[%s2312_s1 + $0xd8] sm:$0xff]   ;;  %v1720_v21 = vld [vmem:[%s2312_s1 + $0xd0] sm:$0xff]  }
   0x7   :  { %v1713_v14 = vld [vmem:[%s2312_s1 + $0x20] sm:$0xff]   ;;  %v1717_v18 = vld [vmem:[%s2312_s1 + $0x18] sm:$0xff]   ;;  %v1721_v22 = vld [vmem:[%s2312_s1 + $0x10] sm:$0xff]  }
   0x8   :  { %1478 = vmatpush3.bf16.msra.mxu0 %v1705_v6  ;;  %v1714_v15 = vld [vmem:[%s2312_s1 + $0xa0] sm:$0xff]   ;;  %v1718_v19 = vld [vmem:[%s2312_s1 + $0x98] sm:$0xff]   ;;  %v1722_v23 = vld [vmem:[%s2312_s1 + $0x90] sm:$0xff]  }
   0x9   :  { %1590 = vmatpush3.bf16.msra.mxu1 %v1706_v7  ;;  %1479 = vmatprep.subr.bf16.mxu0 %v1707_v8  ;;  %v1723_v24 = vld [vmem:[%s2312_s1 + $0x48] sm:$0xff]   ;;  %v1727_v28 = vld [vmem:[%s2312_s1 + $0x40] sm:$0xff]  }
   0xa   :  { %1591 = vmatprep.subr.bf16.mxu1 %v1708_v9  ;;  %v1724_v25 = vld [vmem:[%s2312_s1 + $0xc8] sm:$0xff]   ;;  %v1728_v29 = vld [vmem:[%s2312_s1 + $0xc0] sm:$0xff]  }
   0xb   :  { %v1725_v26 = vld [vmem:[%s2312_s1 + $0x8] sm:$0xff]   ;;  %v1729_v30 = vld [vmem:[%s2312_s1] sm:$0xff]  }
   0xc   :  { %1480 = vmatpush3.bf16.msra.mxu0 %v1709_v10  ;;  %v1726_v27 = vld [vmem:[%s2312_s1 + $0x88] sm:$0xff]   ;;  %v1730_v31 = vld [vmem:[%s2312_s1 + $0x80] sm:$0xff]  }
   0xd   :  { %1592 = vmatpush3.bf16.msra.mxu1 %v1710_v11  ;;  %1481 = vmatprep.subr.bf16.mxu0 %v1711_v12  ;;  %v1731_v32 = vld [vmem:[%s2313_s0] ss:$16 sps:$4 sm:$0xff]   ;;  %v1733_v33 = vld [vmem:[%s2313_s0 + $0x4] ss:$16 sps:$4 sm:$0xff]   ;;  %v1734_v34 = vld [vmem:[%s2313_s0 + $0x8] ss:$16 sps:$4 sm:$0xff]  }
   0xe   :  { %1593 = vmatprep.subr.bf16.mxu1 %v1712_v13  ;;  %v1736_v35 = vld [vmem:[%s2313_s0 + $0xc] ss:$16 sps:$4 sm:$0xff]   ;;  %679 = vmatprep.mubr.bf16.mxu0 %v1733_v33  ;;  %v1737_v36 = vld [vmem:[%s2313_s0 + $0x24] ss:$16 sps:$4 sm:$0xff]   ;;  %v1741_v38 = vld [vmem:[%s2313_s0 + $0x20] ss:$16 sps:$4 sm:$0xff]  }
   0xf   :  { %839 = vmatprep.mubr.bf16.mxu1 %v1736_v35  ;;  %v1739_v37 = vld [vmem:[%s2313_s0 + $0x2c] ss:$16 sps:$4 sm:$0xff]   ;;  %v1742_v39 = vld [vmem:[%s2313_s0 + $0x28] ss:$16 sps:$4 sm:$0xff]   ;;  %v1743_v40 = vld [vmem:[%s2313_s0 + $0x44] ss:$16 sps:$4 sm:$0xff]  }
  0x10   :  { %1482 = vmatpush3.bf16.msra.mxu0 %v1713_v14  ;;  %v1745_v41 = vld [vmem:[%s2313_s0 + $0x4c] ss:$16 sps:$4 sm:$0xff]   ;;  %v1747_v42 = vld [vmem:[%s2313_s0 + $0x40] ss:$16 sps:$4 sm:$0xff]   ;;  %v1748_v43 = vld [vmem:[%s2313_s0 + $0x48] ss:$16 sps:$4 sm:$0xff]  }
  0x11   :  { %1594 = vmatpush3.bf16.msra.mxu1 %v1714_v15  ;;  %1483 = vmatprep.subr.bf16.mxu0 %v1715_v16  ;;  %v1749_v44 = vld [vmem:[%s2313_s0 + $0x64] ss:$16 sps:$4 sm:$0xff]   ;;  %v1751_v45 = vld [vmem:[%s2313_s0 + $0x6c] ss:$16 sps:$4 sm:$0xff]   ;;  %v1753_v46 = vld [vmem:[%s2313_s0 + $0x60] ss:$16 sps:$4 sm:$0xff]  }
  0x12   :  { %1595 = vmatprep.subr.bf16.mxu1 %v1716_v17  ;;  %v1754_v47 = vld [vmem:[%s2313_s0 + $0x68] ss:$16 sps:$4 sm:$0xff]   ;;  %v1755_v48 = vld [vmem:[%s2313_s0 + $0x84] ss:$16 sps:$4 sm:$0xff]   ;;  %v1757_v49 = vld [vmem:[%s2313_s0 + $0x8c] ss:$16 sps:$4 sm:$0xff]  }
  0x13   :  { %v1759_v50 = vld [vmem:[%s2313_s0 + $0x80] ss:$16 sps:$4 sm:$0xff]   ;;  %v1760_v51 = vld [vmem:[%s2313_s0 + $0x88] ss:$16 sps:$4 sm:$0xff]   ;;  %v1761_v52 = vld [vmem:[%s2313_s0 + $0xa4] ss:$16 sps:$4 sm:$0xff]  }
  0x14   :  { %1484 = vmatpush3.bf16.msra.mxu0 %v1717_v18  ;;  %v1763_v53 = vld [vmem:[%s2313_s0 + $0xac] ss:$16 sps:$4 sm:$0xff]   ;;  %v1765_v54 = vld [vmem:[%s2313_s0 + $0xa0] ss:$16 sps:$4 sm:$0xff]   ;;  %v1766_v55 = vld [vmem:[%s2313_s0 + $0xa8] ss:$16 sps:$4 sm:$0xff]  }
  0x15   :  { %1596 = vmatpush3.bf16.msra.mxu1 %v1718_v19  ;;  %1485 = vmatprep.subr.bf16.mxu0 %v1719_v20  ;;  %v1767_v56 = vld [vmem:[%s2313_s0 + $0xc4] ss:$16 sps:$4 sm:$0xff]   ;;  %v1769_v57 = vld [vmem:[%s2313_s0 + $0xcc] ss:$16 sps:$4 sm:$0xff]   ;;  %v1771_v58 = vld [vmem:[%s2313_s0 + $0xc0] ss:$16 sps:$4 sm:$0xff]  }
  0x16   :  { %1597 = vmatprep.subr.bf16.mxu1 %v1720_v21  ;;  %v1772_v59 = vld [vmem:[%s2313_s0 + $0xc8] ss:$16 sps:$4 sm:$0xff]   ;;  %v1773_v60 = vld [vmem:[%s2313_s0 + $0xe4] ss:$16 sps:$4 sm:$0xff]   ;;  %v1775_v61 = vld [vmem:[%s2313_s0 + $0xec] ss:$16 sps:$4 sm:$0xff]  }
  0x17   :  { %v1777_v62 = vld [vmem:[%s2313_s0 + $0xe0] ss:$16 sps:$4 sm:$0xff]   ;;  %v1778_v63 = vld [vmem:[%s2313_s0 + $0xe8] ss:$16 sps:$4 sm:$0xff]   ;;  %v1779_v0 = vld [vmem:[%s2313_s0 + $0x104] ss:$16 sps:$4 sm:$0xff]  }
  0x18   :  { %1486 = vmatpush3.bf16.msra.mxu0 %v1721_v22  ;;  %v1781_v1 = vld [vmem:[%s2313_s0 + $0x10c] ss:$16 sps:$4 sm:$0xff]   ;;  %v1783_v2 = vld [vmem:[%s2313_s0 + $0x100] ss:$16 sps:$4 sm:$0xff]   ;;  %v1784_v3 = vld [vmem:[%s2313_s0 + $0x108] ss:$16 sps:$4 sm:$0xff]  }
  0x19   :  { %1598 = vmatpush3.bf16.msra.mxu1 %v1722_v23  ;;  %1487 = vmatprep.subr.bf16.mxu0 %v1723_v24  ;;  %v1785_v4 = vld [vmem:[%s2313_s0 + $0x124] ss:$16 sps:$4 sm:$0xff]   ;;  %v1787_v5 = vld [vmem:[%s2313_s0 + $0x12c] ss:$16 sps:$4 sm:$0xff]   ;;  %v1789_v6 = vld [vmem:[%s2313_s0 + $0x120] ss:$16 sps:$4 sm:$0xff]  }
  0x1a   :  { %1599 = vmatprep.subr.bf16.mxu1 %v1724_v25  ;;  %v1790_v7 = vld [vmem:[%s2313_s0 + $0x128] ss:$16 sps:$4 sm:$0xff]   ;;  %v1791_v8 = vld [vmem:[%s2313_s0 + $0x144] ss:$16 sps:$4 sm:$0xff]   ;;  %v1793_v9 = vld [vmem:[%s2313_s0 + $0x14c] ss:$16 sps:$4 sm:$0xff]  }
  0x1b   :  { %v1795_v10 = vld [vmem:[%s2313_s0 + $0x140] ss:$16 sps:$4 sm:$0xff]   ;;  %v1796_v11 = vld [vmem:[%s2313_s0 + $0x148] ss:$16 sps:$4 sm:$0xff]   ;;  %v1797_v12 = vld [vmem:[%s2313_s0 + $0x164] ss:$16 sps:$4 sm:$0xff]  }
  0x1c   :  { %1488 = vmatpush3.bf16.msra.mxu0 %v1725_v26  ;;  %v1799_v13 = vld [vmem:[%s2313_s0 + $0x16c] ss:$16 sps:$4 sm:$0xff]   ;;  %v1801_v14 = vld [vmem:[%s2313_s0 + $0x160] ss:$16 sps:$4 sm:$0xff]   ;;  %v1802_v15 = vld [vmem:[%s2313_s0 + $0x168] ss:$16 sps:$4 sm:$0xff]  }
  0x1d   :  { %1600 = vmatpush3.bf16.msra.mxu1 %v1726_v27  ;;  %1489 = vmatprep.subr.bf16.mxu0 %v1727_v28  ;;  %v1803_v16 = vld [vmem:[%s2313_s0 + $0x184] ss:$16 sps:$4 sm:$0xff]   ;;  %v1805_v17 = vld [vmem:[%s2313_s0 + $0x18c] ss:$16 sps:$4 sm:$0xff]   ;;  %v1807_v18 = vld [vmem:[%s2313_s0 + $0x180] ss:$16 sps:$4 sm:$0xff]  }
  0x1e   :  { %1601 = vmatprep.subr.bf16.mxu1 %v1728_v29  ;;  %v1808_v19 = vld [vmem:[%s2313_s0 + $0x188] ss:$16 sps:$4 sm:$0xff]   ;;  %v1809_v20 = vld [vmem:[%s2313_s0 + $0x1a4] ss:$16 sps:$4 sm:$0xff]   ;;  %v1811_v21 = vld [vmem:[%s2313_s0 + $0x1ac] ss:$16 sps:$4 sm:$0xff]  }
  0x1f   :  { %v1813_v22 = vld [vmem:[%s2313_s0 + $0x1a0] ss:$16 sps:$4 sm:$0xff]   ;;  %v1814_v23 = vld [vmem:[%s2313_s0 + $0x1a8] ss:$16 sps:$4 sm:$0xff]   ;;  %v1815_v24 = vld [vmem:[%s2313_s0 + $0x1c4] ss:$16 sps:$4 sm:$0xff]  }
  0x20   :  { %1490 = vmatpush3.bf16.msra.mxu0 %v1729_v30  ;;  %v1817_v25 = vld [vmem:[%s2313_s0 + $0x1cc] ss:$16 sps:$4 sm:$0xff]   ;;  %v75_v26 = vld [vmem:[%s2313_s0 + $0x1e0] sm:$0xff]  ;;  %v1820_v29 = vld [vmem:[%s2313_s0 + $0x1c8] ss:$16 sps:$4 sm:$0xff]  }
  0x21   :  { %1602 = vmatpush3.bf16.msra.mxu1 %v1730_v31  ;;  %v76_v27 = vld [vmem:[%s2313_s0 + $0x1e8] sm:$0xff]  ;;  %v1819_v28 = vld [vmem:[%s2313_s0 + $0x1c0] ss:$16 sps:$4 sm:$0xff]   ;;  %v1289_v30 = vcombine.high %v75_v26, %v75_v26 }
  0x22   :  { %v1291_v31 = vcombine.high %v76_v27, %v76_v27  ;;  %v1290_v33 = vcombine.low %v76_v27, %v76_v27 }
  0x23   :  { %680 = vmatmul.mubr.bf16.vlgmr.msra.gmra.mxu0 %v1731_v32  ;;  %v1288_v32 = vcombine.low %v75_v26, %v75_v26 }
  0x24   :  { %840 = vmatmul.mubr.bf16.vlgmr.msra.gmra.mxu1 %v1734_v34  ;;  %687 = vmatprep.mubr.bf16.mxu0 %v1737_v36 }
  0x25   :  { %847 = vmatprep.mubr.bf16.mxu1 %v1739_v37 }
  0x2b   :  { %688 = vmatmul.mubr.bf16.gmra.mxu0 %v1741_v38 }
  0x2c   :  { %848 = vmatmul.mubr.bf16.gmra.mxu1 %v1742_v39  ;;  %695 = vmatprep.mubr.bf16.mxu0 %v1743_v40 }
  0x2d   :  { %855 = vmatprep.mubr.bf16.mxu1 %v1745_v41 }
  0x33   :  { %696 = vmatmul.mubr.bf16.gmra.mxu0 %v1747_v42 }
  0x34   :  { %856 = vmatmul.mubr.bf16.gmra.mxu1 %v1748_v43  ;;  %703 = vmatprep.mubr.bf16.mxu0 %v1749_v44 }
  0x35   :  { %863 = vmatprep.mubr.bf16.mxu1 %v1751_v45 }
  0x3b   :  { %704 = vmatmul.mubr.bf16.gmra.mxu0 %v1753_v46 }
  0x3c   :  { %864 = vmatmul.mubr.bf16.gmra.mxu1 %v1754_v47  ;;  %711 = vmatprep.mubr.bf16.mxu0 %v1755_v48 }
  0x3d   :  { %871 = vmatprep.mubr.bf16.mxu1 %v1757_v49 }
  0x43   :  { %712 = vmatmul.mubr.bf16.gmra.mxu0 %v1759_v50 }
  0x44   :  { %872 = vmatmul.mubr.bf16.gmra.mxu1 %v1760_v51  ;;  %719 = vmatprep.mubr.bf16.mxu0 %v1761_v52 }
  0x45   :  { %879 = vmatprep.mubr.bf16.mxu1 %v1763_v53 }
  0x4b   :  { %720 = vmatmul.mubr.bf16.gmra.mxu0 %v1765_v54 }
  0x4c   :  { %880 = vmatmul.mubr.bf16.gmra.mxu1 %v1766_v55  ;;  %727 = vmatprep.mubr.bf16.mxu0 %v1767_v56 }
  0x4d   :  { %887 = vmatprep.mubr.bf16.mxu1 %v1769_v57 }
  0x53   :  { %728 = vmatmul.mubr.bf16.gmra.mxu0 %v1771_v58 }
  0x54   :  { %888 = vmatmul.mubr.bf16.gmra.mxu1 %v1772_v59  ;;  %735 = vmatprep.mubr.bf16.mxu0 %v1773_v60 }
  0x55   :  { %895 = vmatprep.mubr.bf16.mxu1 %v1775_v61 }
  0x5b   :  { %736 = vmatmul.mubr.bf16.gmra.mxu0 %v1777_v62 }
  0x5c   :  { %896 = vmatmul.mubr.bf16.gmra.mxu1 %v1778_v63  ;;  %743 = vmatprep.mubr.bf16.mxu0 %v1779_v0 }
  0x5d   :  { %903 = vmatprep.mubr.bf16.mxu1 %v1781_v1 }
  0x63   :  { %744 = vmatmul.mubr.bf16.gmra.mxu0 %v1783_v2 }
  0x64   :  { %904 = vmatmul.mubr.bf16.gmra.mxu1 %v1784_v3  ;;  %751 = vmatprep.mubr.bf16.mxu0 %v1785_v4 }
  0x65   :  { %911 = vmatprep.mubr.bf16.mxu1 %v1787_v5 }
  0x6b   :  { %752 = vmatmul.mubr.bf16.gmra.mxu0 %v1789_v6 }
  0x6c   :  { %912 = vmatmul.mubr.bf16.gmra.mxu1 %v1790_v7  ;;  %759 = vmatprep.mubr.bf16.mxu0 %v1791_v8 }
  0x6d   :  { %919 = vmatprep.mubr.bf16.mxu1 %v1793_v9 }
  0x73   :  { %760 = vmatmul.mubr.bf16.gmra.mxu0 %v1795_v10 }
  0x74   :  { %920 = vmatmul.mubr.bf16.gmra.mxu1 %v1796_v11  ;;  %767 = vmatprep.mubr.bf16.mxu0 %v1797_v12 }
  0x75   :  { %927 = vmatprep.mubr.bf16.mxu1 %v1799_v13 }
  0x7b   :  { %768 = vmatmul.mubr.bf16.gmra.mxu0 %v1801_v14 }
  0x7c   :  { %928 = vmatmul.mubr.bf16.gmra.mxu1 %v1802_v15  ;;  %775 = vmatprep.mubr.bf16.mxu0 %v1803_v16 }
  0x7d   :  { %935 = vmatprep.mubr.bf16.mxu1 %v1805_v17 }
  0x83   :  { %776 = vmatmul.mubr.bf16.gmra.mxu0 %v1807_v18 }
  0x84   :  { %936 = vmatmul.mubr.bf16.gmra.mxu1 %v1808_v19  ;;  %783 = vmatprep.mubr.bf16.mxu0 %v1809_v20 }
  0x85   :  { %943 = vmatprep.mubr.bf16.mxu1 %v1811_v21 }
  0x8b   :  { %784 = vmatmul.mubr.bf16.gmra.mxu0 %v1813_v22 }
  0x8c   :  { %944 = vmatmul.mubr.bf16.gmra.mxu1 %v1814_v23  ;;  %791 = vmatprep.mubr.bf16.mxu0 %v1815_v24 }
  0x8d   :  { %951 = vmatprep.mubr.bf16.mxu1 %v1817_v25 }
  0x93   :  { %792 = vmatmul.mubr.bf16.gmra.mxu0 %v1819_v28 }
  0x94   :  { %952 = vmatmul.mubr.bf16.gmra.mxu1 %v1820_v29  ;;  %799 = vmatprep.mubr.bf16.mxu0 %v1289_v30 }
  0x95   :  { %959 = vmatprep.mubr.bf16.mxu1 %v1291_v31 }
  0x9b   :  { %800 = vmatmul.mubr.bf16.gmra.mxu0 %v1288_v32 }
  0x9c   :  { %960 = vmatmul.mubr.bf16.gmra.mxu1 %v1290_v33 }
  0xe3   :  { %v1491_v34 = vpop.f32.mrf.mxu0 }
  0xe4   :  { %v1603_v35 = vpop.f32.mrf.mxu1 }
  0xe5   :  { %v1492_v36 = vpop.f32.mrf.mxu0 }
  0xe6   :  { %v1604_v37 = vpop.f32.mrf.mxu1  ;;  %v1493_v40 = vadd.f32 %v1492_v36, %v1491_v34 }
  0xe7   :  { %v1494_v38 = vpop.f32.mrf.mxu0  ;;  %v1605_v41 = vadd.f32 %v1604_v37, %v1603_v35 }
  0xe8   :  { %v1606_v39 = vpop.f32.mrf.mxu1 }
  0xe9   :  { %v1495_v42 = vpop.f32.mrf.mxu0  ;;  %v2132_v48 = vadd.f32 %v1605_v41, %v1493_v40 }
  0xea   :  { %v1496_v43 = vadd.f32 %v1495_v42, %v1494_v38  ;;  %v1607_v44 = vpop.f32.mrf.mxu1 }
  0xeb   :  { %v1608_v45 = vadd.f32 %v1607_v44, %v1606_v39  ;;  %v1497_v46 = vpop.f32.mrf.mxu0 }
  0xec   :  { %v1609_v47 = vpop.f32.mrf.mxu1 }
  0xed   :  { %v2134_v49 = vadd.f32 %v1608_v45, %v1496_v43  ;;  %v1498_v50 = vpop.f32.mrf.mxu0 }
  0xee   :  { %v1610_v51 = vpop.f32.mrf.mxu1  ;;  %v1499_v55 = vadd.f32 %v1498_v50, %v1497_v46 }
  0xef   :  { %v1389_v52 = vpack.c.bf16 %v2134_v49, %v2132_v48  ;;  %v1500_v53 = vpop.f32.mrf.mxu0  ;;  %v1611_v56 = vadd.f32 %v1610_v51, %v1609_v47 }
  0xf0   :  { %v1612_v54 = vpop.f32.mrf.mxu1 }
  0xf1   :  { %1390 = vst [vmem:[%s2314_s2] sm:$0xff] %v1389_v52   ;;  %v1501_v57 = vpop.f32.mrf.mxu0  ;;  %v2141_v63 = vadd.f32 %v1611_v56, %v1499_v55 }
  0xf2   :  { %v1502_v58 = vadd.f32 %v1501_v57, %v1500_v53  ;;  %v1613_v59 = vpop.f32.mrf.mxu1 }
  0xf3   :  { %v1614_v60 = vadd.f32 %v1613_v59, %v1612_v54  ;;  %v1503_v61 = vpop.f32.mrf.mxu0 }
  0xf4   :  { %v1615_v62 = vpop.f32.mrf.mxu1 }
  0xf5   :  { %v2143_v0 = vadd.f32 %v1614_v60, %v1502_v58  ;;  %v1504_v1 = vpop.f32.mrf.mxu0 }
  0xf6   :  { %v1616_v2 = vpop.f32.mrf.mxu1  ;;  %v1505_v6 = vadd.f32 %v1504_v1, %v1503_v61 }
  0xf7   :  { %v1394_v3 = vpack.c.bf16 %v2143_v0, %v2141_v63  ;;  %v1506_v4 = vpop.f32.mrf.mxu0  ;;  %v1617_v7 = vadd.f32 %v1616_v2, %v1615_v62 }
  0xf8   :  { %v1618_v5 = vpop.f32.mrf.mxu1 }
  0xf9   :  { %1461 = vst [vmem:[%s2314_s2 + $0x8] sm:$0xff] %v1394_v3   ;;  %v1507_v8 = vpop.f32.mrf.mxu0  ;;  %v2150_v14 = vadd.f32 %v1617_v7, %v1505_v6 }
  0xfa   :  { %v1508_v9 = vadd.f32 %v1507_v8, %v1506_v4  ;;  %v1619_v10 = vpop.f32.mrf.mxu1 }
  0xfb   :  { %v1620_v11 = vadd.f32 %v1619_v10, %v1618_v5  ;;  %v1509_v12 = vpop.f32.mrf.mxu0 }
  0xfc   :  { %v1621_v13 = vpop.f32.mrf.mxu1 }
  0xfd   :  { %v2152_v15 = vadd.f32 %v1620_v11, %v1508_v9  ;;  %v1510_v16 = vpop.f32.mrf.mxu0 }
  0xfe   :  { %v1622_v17 = vpop.f32.mrf.mxu1  ;;  %v1511_v21 = vadd.f32 %v1510_v16, %v1509_v12 }
  0xff   :  { %v1399_v18 = vpack.c.bf16 %v2152_v15, %v2150_v14  ;;  %v1512_v19 = vpop.f32.mrf.mxu0  ;;  %v1623_v22 = vadd.f32 %v1622_v17, %v1621_v13 }
 0x100   :  { %v1624_v20 = vpop.f32.mrf.mxu1 }
 0x101   :  { %1462 = vst [vmem:[%s2314_s2 + $0x10] sm:$0xff] %v1399_v18   ;;  %v1513_v23 = vpop.f32.mrf.mxu0  ;;  %v2159_v29 = vadd.f32 %v1623_v22, %v1511_v21 }
 0x102   :  { %v1514_v24 = vadd.f32 %v1513_v23, %v1512_v19  ;;  %v1625_v25 = vpop.f32.mrf.mxu1 }
 0x103   :  { %v1626_v26 = vadd.f32 %v1625_v25, %v1624_v20  ;;  %v1515_v27 = vpop.f32.mrf.mxu0 }
 0x104   :  { %v1627_v28 = vpop.f32.mrf.mxu1 }
 0x105   :  { %v2161_v30 = vadd.f32 %v1626_v26, %v1514_v24  ;;  %v1516_v31 = vpop.f32.mrf.mxu0 }
 0x106   :  { %v1628_v32 = vpop.f32.mrf.mxu1  ;;  %v1517_v36 = vadd.f32 %v1516_v31, %v1515_v27 }
 0x107   :  { %v1404_v33 = vpack.c.bf16 %v2161_v30, %v2159_v29  ;;  %v1518_v34 = vpop.f32.mrf.mxu0  ;;  %v1629_v37 = vadd.f32 %v1628_v32, %v1627_v28 }
 0x108   :  { %v1630_v35 = vpop.f32.mrf.mxu1 }
 0x109   :  { %1463 = vst [vmem:[%s2314_s2 + $0x18] sm:$0xff] %v1404_v33   ;;  %v1519_v38 = vpop.f32.mrf.mxu0  ;;  %v2168_v44 = vadd.f32 %v1629_v37, %v1517_v36  ;;  %v1155_v36 = vmul.f32 %v2134_v49, %v2134_v49 }
 0x10a   :  { %v1520_v39 = vadd.f32 %v1519_v38, %v1518_v34  ;;  %v1631_v40 = vpop.f32.mrf.mxu1 }
 0x10b   :  { %v1632_v41 = vadd.f32 %v1631_v40, %v1630_v35  ;;  %v1521_v42 = vpop.f32.mrf.mxu0  ;;  %v1154_v40 = vmul.f32 %v2132_v48, %v2132_v48 }
 0x10c   :  { %v1633_v43 = vpop.f32.mrf.mxu1 }
 0x10d   :  { %v2170_v45 = vadd.f32 %v1632_v41, %v1520_v39  ;;  %v1522_v46 = vpop.f32.mrf.mxu0  ;;  %v1156_v41 = vmul.f32 %v2141_v63, %v2141_v63 }
 0x10e   :  { %v1634_v47 = vpop.f32.mrf.mxu1  ;;  %v1523_v53 = vadd.f32 %v1522_v46, %v1521_v42 }
 0x10f   :  { %v1409_v50 = vpack.c.bf16 %v2170_v45, %v2168_v44  ;;  %v1524_v51 = vpop.f32.mrf.mxu0  ;;  %v1635_v54 = vadd.f32 %v1634_v47, %v1633_v43  ;;  %v1123_v43 = vadd.f32 %v2134_v49, %v2132_v48  ;;  %v1158_v48 = vmul.f32 %v2150_v14, %v2150_v14 }
 0x110   :  { %v1636_v52 = vpop.f32.mrf.mxu1 }
 0x111   :  { %1464 = vst [vmem:[%s2314_s2 + $0x20] sm:$0xff] %v1409_v50   ;;  %v1525_v55 = vpop.f32.mrf.mxu0  ;;  %v2177_v61 = vadd.f32 %v1635_v54, %v1523_v53 }
 0x112   :  { %v1526_v56 = vadd.f32 %v1525_v55, %v1524_v51  ;;  %v1637_v57 = vpop.f32.mrf.mxu1  ;;  %v1185_v51 = vadd.f32 %v1155_v36, %v1154_v40  ;;  %v1124_v55 = vadd.f32 %v1123_v43, %v2141_v63 }
 0x113   :  { %v1638_v58 = vadd.f32 %v1637_v57, %v1636_v52  ;;  %v1527_v59 = vpop.f32.mrf.mxu0  ;;  %v1157_v52 = vmul.f32 %v2143_v0, %v2143_v0 }
 0x114   :  { %v1639_v60 = vpop.f32.mrf.mxu1 }
 0x115   :  { %v2179_v62 = vadd.f32 %v1638_v58, %v1526_v56  ;;  %v1528_v1 = vpop.f32.mrf.mxu0  ;;  %v1186_v58 = vadd.f32 %v1185_v51, %v1156_v41 }
 0x116   :  { %v1640_v2 = vpop.f32.mrf.mxu1  ;;  %v1529_v6 = vadd.f32 %v1528_v1, %v1527_v59  ;;  %v1125_v59 = vadd.f32 %v1124_v55, %v2143_v0  ;;  %v1160_v0 = vmul.f32 %v2159_v29, %v2159_v29 }
 0x117   :  { %v1414_v3 = vpack.c.bf16 %v2179_v62, %v2177_v61  ;;  %v1530_v4 = vpop.f32.mrf.mxu0  ;;  %v1641_v7 = vadd.f32 %v1640_v2, %v1639_v60 }
 0x118   :  { %v1642_v5 = vpop.f32.mrf.mxu1  ;;  %v1126_v63 = vadd.f32 %v1125_v59, %v2150_v14  ;;  %v1161_v14 = vmul.f32 %v2161_v30, %v2161_v30 }
 0x119   :  { %1465 = vst [vmem:[%s2314_s2 + $0x28] sm:$0xff] %v1414_v3   ;;  %v1531_v8 = vpop.f32.mrf.mxu0  ;;  %v2186_v16 = vadd.f32 %v1641_v7, %v1529_v6  ;;  %v1187_v3 = vadd.f32 %v1186_v58, %v1157_v52 }
 0x11a   :  { %v1532_v9 = vadd.f32 %v1531_v8, %v1530_v4  ;;  %v1643_v10 = vpop.f32.mrf.mxu1  ;;  %v1159_v4 = vmul.f32 %v2152_v15, %v2152_v15 }
 0x11b   :  { %v1644_v11 = vadd.f32 %v1643_v10, %v1642_v5  ;;  %v1533_v12 = vpop.f32.mrf.mxu0  ;;  %v1188_v8 = vadd.f32 %v1187_v3, %v1158_v48  ;;  %v1127_v10 = vadd.f32 %v1126_v63, %v2152_v15  ;;  %v1162_v15 = vmul.f32 %v2168_v44, %v2168_v44 }
 0x11c   :  { %v1645_v13 = vpop.f32.mrf.mxu1 }
 0x11d   :  { %v2188_v17 = vadd.f32 %v1644_v11, %v1532_v9  ;;  %v1534_v18 = vpop.f32.mrf.mxu0 }
 0x11e   :  { %v1646_v19 = vpop.f32.mrf.mxu1  ;;  %v1535_v23 = vadd.f32 %v1534_v18, %v1533_v12  ;;  %v1189_v18 = vadd.f32 %v1188_v8, %v1159_v4 }
 0x11f   :  { %v1419_v20 = vpack.c.bf16 %v2188_v17, %v2186_v16  ;;  %v1536_v21 = vpop.f32.mrf.mxu0  ;;  %v1647_v24 = vadd.f32 %v1646_v19, %v1645_v13 }
 0x120   :  { %v1648_v22 = vpop.f32.mrf.mxu1 }
 0x121   :  { %1466 = vst [vmem:[%s2314_s2 + $0x30] sm:$0xff] %v1419_v20   ;;  %v1537_v25 = vpop.f32.mrf.mxu0  ;;  %v2195_v33 = vadd.f32 %v1647_v24, %v1535_v23  ;;  %v1190_v24 = vadd.f32 %v1189_v18, %v1160_v0 }
 0x122   :  { %v1538_v26 = vadd.f32 %v1537_v25, %v1536_v21  ;;  %v1649_v27 = vpop.f32.mrf.mxu1  ;;  %v1128_v21 = vadd.f32 %v1127_v10, %v2159_v29 }
 0x123   :  { %v1650_v28 = vadd.f32 %v1649_v27, %v1648_v22  ;;  %v1539_v31 = vpop.f32.mrf.mxu0 }
 0x124   :  { %v1651_v32 = vpop.f32.mrf.mxu1 }
 0x125   :  { %v2197_v34 = vadd.f32 %v1650_v28, %v1538_v26  ;;  %v1540_v35 = vpop.f32.mrf.mxu0  ;;  %v1129_v26 = vadd.f32 %v1128_v21, %v2161_v30  ;;  %v1164_v30 = vmul.f32 %v2177_v61, %v2177_v61 }
 0x126   :  { %v1652_v37 = vpop.f32.mrf.mxu1  ;;  %v1541_v46 = vadd.f32 %v1540_v35, %v1539_v31  ;;  %v1163_v35 = vmul.f32 %v2170_v45, %v2170_v45 }
 0x127   :  { %v1424_v38 = vpack.c.bf16 %v2197_v34, %v2195_v33  ;;  %v1542_v39 = vpop.f32.mrf.mxu0  ;;  %v1653_v47 = vadd.f32 %v1652_v37, %v1651_v32  ;;  %v1191_v32 = vadd.f32 %v1190_v24, %v1161_v14  ;;  %v1130_v29 = vadd.f32 %v1129_v26, %v2168_v44 }
 0x128   :  { %v1654_v42 = vpop.f32.mrf.mxu1  ;;  %v1165_v44 = vmul.f32 %v2179_v62, %v2179_v62 }
 0x129   :  { %1467 = vst [vmem:[%s2314_s2 + $0x38] sm:$0xff] %v1424_v38   ;;  %v1543_v50 = vpop.f32.mrf.mxu0  ;;  %v2218_v60 = vadd.f32 %v1653_v47, %v1541_v46  ;;  %v1131_v41 = vadd.f32 %v1130_v29, %v2170_v45  ;;  %v1166_v45 = vmul.f32 %v2186_v16, %v2186_v16 }
 0x12a   :  { %v1544_v53 = vadd.f32 %v1543_v50, %v1542_v39  ;;  %v1655_v54 = vpop.f32.mrf.mxu1  ;;  %v1192_v39 = vadd.f32 %v1191_v32, %v1162_v15 }
 0x12b   :  { %v1656_v56 = vadd.f32 %v1655_v54, %v1654_v42  ;;  %v1545_v57 = vpop.f32.mrf.mxu0  ;;  %v1132_v52 = vadd.f32 %v1131_v41, %v2177_v61 }
 0x12c   :  { %v1657_v49 = vpop.f32.mrf.mxu1  ;;  %v1193_v47 = vadd.f32 %v1192_v39, %v1163_v35 }
 0x12d   :  { %v2220_v1 = vadd.f32 %v1656_v56, %v1544_v53  ;;  %v1546_v2 = vpop.f32.mrf.mxu0 }
 0x12e   :  { %v1658_v5 = vpop.f32.mrf.mxu1  ;;  %v1547_v11 = vadd.f32 %v1546_v2, %v1545_v57  ;;  %v1194_v55 = vadd.f32 %v1193_v47, %v1164_v30  ;;  %v1133_v57 = vadd.f32 %v1132_v52, %v2179_v62  ;;  %v1167_v2 = vmul.f32 %v2188_v17, %v2188_v17 }
 0x12f   :  { %v1429_v6 = vpack.c.bf16 %v2220_v1, %v2218_v60  ;;  %v1548_v7 = vpop.f32.mrf.mxu0  ;;  %v1659_v12 = vadd.f32 %v1658_v5, %v1657_v49 }
 0x130   :  { %v1660_v9 = vpop.f32.mrf.mxu1  ;;  %v1195_v59 = vadd.f32 %v1194_v55, %v1165_v44  ;;  %v1134_v61 = vadd.f32 %v1133_v57, %v2186_v16  ;;  %v1169_v16 = vmul.f32 %v2197_v34, %v2197_v34 }
 0x131   :  { %1468 = vst [vmem:[%s2314_s2 + $0x40] sm:$0xff] %v1429_v6   ;;  %v1549_v13 = vpop.f32.mrf.mxu0  ;;  %v2239_v27 = vadd.f32 %v1659_v12, %v1547_v11  ;;  %v1168_v6 = vmul.f32 %v2195_v33, %v2195_v33 }
 0x132   :  { %v1550_v19 = vadd.f32 %v1549_v13, %v1548_v7  ;;  %v1661_v20 = vpop.f32.mrf.mxu1  ;;  %v1196_v63 = vadd.f32 %v1195_v59, %v1166_v45  ;;  %v1135_v62 = vadd.f32 %v1134_v61, %v2188_v17  ;;  %v1170_v17 = vmul.f32 %v2218_v60, %v2218_v60 }
 0x133   :  { %v1662_v22 = vadd.f32 %v1661_v20, %v1660_v9  ;;  %v1551_v23 = vpop.f32.mrf.mxu0 }
 0x134   :  { %v1663_v25 = vpop.f32.mrf.mxu1  ;;  %v1197_v10 = vadd.f32 %v1196_v63, %v1167_v2  ;;  %v1136_v13 = vadd.f32 %v1135_v62, %v2195_v33 }
 0x135   :  { %v2241_v28 = vadd.f32 %v1662_v22, %v1550_v19  ;;  %v1552_v31 = vpop.f32.mrf.mxu0 }
 0x136   :  { %v1664_v36 = vpop.f32.mrf.mxu1  ;;  %v1553_v42 = vadd.f32 %v1552_v31, %v1551_v23  ;;  %v1198_v19 = vadd.f32 %v1197_v10, %v1168_v6  ;;  %v1137_v21 = vadd.f32 %v1136_v13, %v2197_v34 }
 0x137   :  { %v1434_v37 = vpack.c.bf16 %v2241_v28, %v2239_v27  ;;  %v1554_v38 = vpop.f32.mrf.mxu0  ;;  %v1665_v43 = vadd.f32 %v1664_v36, %v1663_v25  ;;  %v1171_v25 = vmul.f32 %v2220_v1, %v2220_v1  ;;  %v1172_v36 = vmul.f32 %v2239_v27, %v2239_v27 }
 0x138   :  { %v1666_v40 = vpop.f32.mrf.mxu1  ;;  %v1199_v15 = vadd.f32 %v1198_v19, %v1169_v16  ;;  %v1138_v31 = vadd.f32 %v1137_v21, %v2218_v60  ;;  %v1173_v60 = vmul.f32 %v2241_v28, %v2241_v28 }
 0x139   :  { %1469 = vst [vmem:[%s2314_s2 + $0x48] sm:$0xff] %v1434_v37   ;;  %v1555_v46 = vpop.f32.mrf.mxu0  ;;  %v922_v58 = vadd.f32 %v1665_v43, %v1553_v42 }
 0x13a   :  { %v1556_v50 = vadd.f32 %v1555_v46, %v1554_v38  ;;  %v1667_v51 = vpop.f32.mrf.mxu1  ;;  %v1200_v35 = vadd.f32 %v1199_v15, %v1170_v17  ;;  %v1139_v37 = vadd.f32 %v1138_v31, %v2220_v1 }
 0x13b   :  { %v1668_v53 = vadd.f32 %v1667_v51, %v1666_v40  ;;  %v1557_v54 = vpop.f32.mrf.mxu0  ;;  %v1174_v44 = vmul.f32 %v922_v58, %v922_v58 }
 0x13c   :  { %v1669_v56 = vpop.f32.mrf.mxu1  ;;  %v1201_v30 = vadd.f32 %v1200_v35, %v1171_v25  ;;  %v1140_v42 = vadd.f32 %v1139_v37, %v2239_v27 }
 0x13d   :  { %v2260_v48 = vadd.f32 %v1668_v53, %v1556_v50  ;;  %v1558_v49 = vpop.f32.mrf.mxu0 }
 0x13e   :  { %v1670_v3 = vpop.f32.mrf.mxu1  ;;  %v1559_v8 = vadd.f32 %v1558_v49, %v1557_v54  ;;  %v1202_v47 = vadd.f32 %v1201_v30, %v1172_v36  ;;  %v1141_v50 = vadd.f32 %v1140_v42, %v2241_v28 }
 0x13f   :  { %v1439_v4 = vpack.c.bf16 %v2260_v48, %v922_v58  ;;  %v1560_v5 = vpop.f32.mrf.mxu0  ;;  %v1671_v0 = vadd.f32 %v1670_v3, %v1669_v56  ;;  %v1175_v55 = vmul.f32 %v2260_v48, %v2260_v48 }
 0x140   :  { %v1672_v7 = vpop.f32.mrf.mxu1  ;;  %v1203_v54 = vadd.f32 %v1202_v47, %v1173_v60  ;;  %v1142_v56 = vadd.f32 %v1141_v50, %v922_v58 }
 0x141   :  { %1470 = vst [vmem:[%s2314_s2 + $0x50] sm:$0xff] %v1439_v4   ;;  %v1561_v9 = vpop.f32.mrf.mxu0  ;;  %v930_v22 = vadd.f32 %v1671_v0, %v1559_v8 }
 0x142   :  { %v1562_v11 = vadd.f32 %v1561_v9, %v1560_v5  ;;  %v1673_v12 = vpop.f32.mrf.mxu1  ;;  %v1204_v59 = vadd.f32 %v1203_v54, %v1174_v44  ;;  %v1143_v4 = vadd.f32 %v1142_v56, %v2260_v48 }
 0x143   :  { %v1674_v18 = vadd.f32 %v1673_v12, %v1672_v7  ;;  %v1563_v14 = vpop.f32.mrf.mxu0  ;;  %v1176_v27 = vmul.f32 %v930_v22, %v930_v22 }
 0x144   :  { %v1675_v20 = vpop.f32.mrf.mxu1  ;;  %v1205_v5 = vadd.f32 %v1204_v59, %v1175_v55  ;;  %v1144_v62 = vadd.f32 %v1143_v4, %v930_v22 }
 0x145   :  { %v933_v23 = vadd.f32 %v1674_v18, %v1562_v11  ;;  %v1564_v24 = vpop.f32.mrf.mxu0 }
 0x146   :  { %v1676_v26 = vpop.f32.mrf.mxu1  ;;  %v1565_v34 = vadd.f32 %v1564_v24, %v1563_v14  ;;  %v1206_v0 = vadd.f32 %v1205_v5, %v1176_v27 }
 0x147   :  { %v1444_v33 = vpack.c.bf16 %v933_v23, %v930_v22  ;;  %v1566_v32 = vpop.f32.mrf.mxu0  ;;  %v1677_v38 = vadd.f32 %v1676_v26, %v1675_v20  ;;  %v1177_v63 = vmul.f32 %v933_v23, %v933_v23  ;;  %v1145_v11 = vadd.f32 %v1144_v62, %v933_v23 }
 0x148   :  { %v1678_v29 = vpop.f32.mrf.mxu1 }
 0x149   :  { %1471 = vst [vmem:[%s2314_s2 + $0x58] sm:$0xff] %v1444_v33   ;;  %v1567_v39 = vpop.f32.mrf.mxu0  ;;  %v938_v51 = vadd.f32 %v1677_v38, %v1565_v34  ;;  %v1207_v48 = vadd.f32 %v1206_v0, %v1177_v63 }
 0x14a   :  { %v1568_v40 = vadd.f32 %v1567_v39, %v1566_v32  ;;  %v1679_v41 = vpop.f32.mrf.mxu1 }
 0x14b   :  { %v1680_v43 = vadd.f32 %v1679_v41, %v1678_v29  ;;  %v1569_v46 = vpop.f32.mrf.mxu0  ;;  %v1178_v9 = vmul.f32 %v938_v51, %v938_v51  ;;  %v1146_v17 = vadd.f32 %v1145_v11, %v938_v51 }
 0x14c   :  { %v1681_v1 = vpop.f32.mrf.mxu1 }
 0x14d   :  { %v941_v52 = vadd.f32 %v1680_v43, %v1568_v40  ;;  %v1570_v53 = vpop.f32.mrf.mxu0  ;;  %v1208_v15 = vadd.f32 %v1207_v48, %v1178_v9 }
 0x14e   :  { %v1682_v45 = vpop.f32.mrf.mxu1  ;;  %v1571_v2 = vadd.f32 %v1570_v53, %v1569_v46 }
 0x14f   :  { %v1449_v57 = vpack.c.bf16 %v941_v52, %v938_v51  ;;  %v1572_v49 = vpop.f32.mrf.mxu0  ;;  %v1683_v3 = vadd.f32 %v1682_v45, %v1681_v1  ;;  %v1179_v18 = vmul.f32 %v941_v52, %v941_v52  ;;  %v1147_v26 = vadd.f32 %v1146_v17, %v941_v52 }
 0x150   :  { %v1684_v61 = vpop.f32.mrf.mxu1 }
 0x151   :  { %1472 = vst [vmem:[%s2314_s2 + $0x60] sm:$0xff] %v1449_v57   ;;  %v1573_v28 = vpop.f32.mrf.mxu0  ;;  %v946_v10 = vadd.f32 %v1683_v3, %v1571_v2  ;;  %v1209_v33 = vadd.f32 %v1208_v15, %v1179_v18 }
 0x152   :  { %v1574_v6 = vadd.f32 %v1573_v28, %v1572_v49  ;;  %v1685_v7 = vpop.f32.mrf.mxu1 }
 0x153   :  { %v1686_v58 = vadd.f32 %v1685_v7, %v1684_v61  ;;  %v1575_v8 = vpop.f32.mrf.mxu0  ;;  %v1180_v25 = vmul.f32 %v946_v10, %v946_v10  ;;  %v1148_v29 = vadd.f32 %v1147_v26, %v946_v10 }
 0x154   :  { %v1687_v16 = vpop.f32.mrf.mxu1 }
 0x155   :  { %v949_v12 = vadd.f32 %v1686_v58, %v1574_v6  ;;  %v1576_v13 = vpop.f32.mrf.mxu0  ;;  %v1210_v38 = vadd.f32 %v1209_v33, %v1180_v25 }
 0x156   :  { %v1577_v14 = vadd.f32 %v1576_v13, %v1575_v8  ;;  %v1688_v19 = vpop.f32.mrf.mxu1 }
 0x157   :  { %v1454_v20 = vpack.c.bf16 %v949_v12, %v946_v10  ;;  %v1689_v21 = vadd.f32 %v1688_v19, %v1687_v16  ;;  %v1578_v24 = vpop.f32.mrf.mxu0  ;;  %v1181_v32 = vmul.f32 %v949_v12, %v949_v12  ;;  %v1149_v30 = vadd.f32 %v1148_v29, %v949_v12 }
 0x158   :  { %v1690_v22 = vpop.f32.mrf.mxu1 }
 0x159   :  { %1473 = vst [vmem:[%s2314_s2 + $0x68] sm:$0xff] %v1454_v20   ;;  %v954_v31 = vadd.f32 %v1689_v21, %v1577_v14  ;;  %v1579_v23 = vpop.f32.mrf.mxu0  ;;  %v1211_v42 = vadd.f32 %v1210_v38, %v1181_v32 }
 0x15a   :  { %v1580_v35 = vadd.f32 %v1579_v23, %v1578_v24  ;;  %v1691_v36 = vpop.f32.mrf.mxu1 }
 0x15b   :  { %v1692_v37 = vadd.f32 %v1691_v36, %v1690_v22  ;;  %v1581_v34 = vpop.f32.mrf.mxu0  ;;  %v1182_v60 = vmul.f32 %v954_v31, %v954_v31  ;;  %v1150_v47 = vadd.f32 %v1149_v30, %v954_v31 }
 0x15c   :  { %v1693_v39 = vpop.f32.mrf.mxu1 }
 0x15d   :  { %v957_v40 = vadd.f32 %v1692_v37, %v1580_v35  ;;  %v1582_v41 = vpop.f32.mrf.mxu0  ;;  %v1212_v53 = vadd.f32 %v1211_v42, %v1182_v60 }
 0x15e   :  { %v1583_v43 = vadd.f32 %v1582_v41, %v1581_v34  ;;  %v1694_v46 = vpop.f32.mrf.mxu1 }
 0x15f   :  { %v1459_v44 = vpack.c.bf16 %v957_v40, %v954_v31  ;;  %v1183_v1 = vmul.f32 %v957_v40, %v957_v40  ;;  %v1695_v50 = vadd.f32 %v1694_v46, %v1693_v39  ;;  %v1584_v51 = vpop.f32.mrf.mxu0  ;;  %v1151_v54 = vadd.f32 %v1150_v47, %v957_v40 }
 0x160   :  { %v1696_v52 = vpop.f32.mrf.mxu1 }
 0x161   :  { %1474 = vst [vmem:[%s2314_s2 + $0x70] sm:$0xff] %v1459_v44   ;;  %v962_v55 = vadd.f32 %v1695_v50, %v1583_v43  ;;  %v1585_v45 = vpop.f32.mrf.mxu0  ;;  %v1213_v57 = vadd.f32 %v1212_v53, %v1183_v1 }
 0x162   :  { %v1697_v56 = vpop.f32.mrf.mxu1 }
 0x163   :  { %v1385_v49 = vpack.c.bf16 %v962_v55, %v962_v55  ;;  %v1152_v59 = vadd.f32 %v1151_v54, %v962_v55  ;;  %v1184_v27 = vmul.f32 %v962_v55, %v962_v55 }
 0x165   :  { %1122 = vst [vmem:[%s2314_s2 + $0x78] sm:$0xf] %v1385_v49  ;;  %1153 = vst [vmem:[%s2315_s3] sm:$0xff] %v1152_v59  ;;  %v1214_v2 = vadd.f32 %v1213_v57, %v1184_v27 }
 0x167   :  { %1215 = vst [vmem:[%s2316_s4] sm:$0xff] %v1214_v2 }

// kernel: discriminator_forward.9
= control target key start
LH: loop header
LB: loop body
LE: loop exit
PB: predicated region body
PF: predicated region fallthrough
CT: control target
= control target key end

     0   :  { %s3024_s1 = inlined_call_operand.vmem [shape: bf16[1024,128], index: 1, kind: input, shape index: {}]   ;;  %s3025_s0 = inlined_call_operand.vmem [shape: bf16[200,1024], index: 0, kind: input, shape index: {}]   ;;  %s3026_s2 = inlined_call_operand.vmem [shape: f32[1,128], index: 2, kind: input, shape index: {}]   ;;  %s3027_s3 = inlined_call_operand.vmem [shape: f32[200,128], index: 3, kind: output, shape index: {}]  }
   0x1   :  { %v2260_v0 = vld [vmem:[%s3024_s1 + $0x78] sm:$0xff]   ;;  %v2264_v4 = vld [vmem:[%s3024_s1 + $0x70] sm:$0xff]   ;;  %v2268_v8 = vld [vmem:[%s3024_s1 + $0x68] sm:$0xff]  }
   0x2   :  { %v2261_v1 = vld [vmem:[%s3024_s1 + $0xf8] sm:$0xff]   ;;  %1884 = vmatprep.subr.bf16.mxu0 %v2260_v0  ;;  %v2265_v5 = vld [vmem:[%s3024_s1 + $0xf0] sm:$0xff]   ;;  %v2269_v9 = vld [vmem:[%s3024_s1 + $0xe8] sm:$0xff]  }
   0x3   :  { %v2262_v2 = vld [vmem:[%s3024_s1 + $0x38] sm:$0xff]   ;;  %1978 = vmatprep.subr.bf16.mxu1 %v2261_v1  ;;  %v2266_v6 = vld [vmem:[%s3024_s1 + $0x30] sm:$0xff]   ;;  %v2270_v10 = vld [vmem:[%s3024_s1 + $0x28] sm:$0xff]  }
   0x4   :  { %v2263_v3 = vld [vmem:[%s3024_s1 + $0xb8] sm:$0xff]   ;;  %1885 = vmatpush3.bf16.msra.mxu0 %v2262_v2  ;;  %v2267_v7 = vld [vmem:[%s3024_s1 + $0xb0] sm:$0xff]   ;;  %v2271_v11 = vld [vmem:[%s3024_s1 + $0xa8] sm:$0xff]  }
   0x5   :  { %1979 = vmatpush3.bf16.msra.mxu1 %v2263_v3  ;;  %1886 = vmatprep.subr.bf16.mxu0 %v2264_v4  ;;  %v2272_v12 = vld [vmem:[%s3024_s1 + $0x60] sm:$0xff]   ;;  %v2276_v16 = vld [vmem:[%s3024_s1 + $0x58] sm:$0xff]   ;;  %v2280_v20 = vld [vmem:[%s3024_s1 + $0x50] sm:$0xff]  }
   0x6   :  { %1980 = vmatprep.subr.bf16.mxu1 %v2265_v5  ;;  %v2273_v13 = vld [vmem:[%s3024_s1 + $0xe0] sm:$0xff]   ;;  %v2277_v17 = vld [vmem:[%s3024_s1 + $0xd8] sm:$0xff]   ;;  %v2281_v21 = vld [vmem:[%s3024_s1 + $0xd0] sm:$0xff]  }
   0x7   :  { %v2274_v14 = vld [vmem:[%s3024_s1 + $0x20] sm:$0xff]   ;;  %v2278_v18 = vld [vmem:[%s3024_s1 + $0x18] sm:$0xff]   ;;  %v2282_v22 = vld [vmem:[%s3024_s1 + $0x10] sm:$0xff]  }
   0x8   :  { %1887 = vmatpush3.bf16.msra.mxu0 %v2266_v6  ;;  %v2275_v15 = vld [vmem:[%s3024_s1 + $0xa0] sm:$0xff]   ;;  %v2279_v19 = vld [vmem:[%s3024_s1 + $0x98] sm:$0xff]   ;;  %v2283_v23 = vld [vmem:[%s3024_s1 + $0x90] sm:$0xff]  }
   0x9   :  { %1981 = vmatpush3.bf16.msra.mxu1 %v2267_v7  ;;  %1888 = vmatprep.subr.bf16.mxu0 %v2268_v8  ;;  %v2284_v24 = vld [vmem:[%s3024_s1 + $0x48] sm:$0xff]   ;;  %v2288_v28 = vld [vmem:[%s3024_s1 + $0x40] sm:$0xff]   ;;  %v2292_v40 = vld [vmem:[%s3024_s1 + $0x178] sm:$0xff]  }
   0xa   :  { %1982 = vmatprep.subr.bf16.mxu1 %v2269_v9  ;;  %v2285_v25 = vld [vmem:[%s3024_s1 + $0xc8] sm:$0xff]   ;;  %v2289_v29 = vld [vmem:[%s3024_s1 + $0xc0] sm:$0xff]   ;;  %v2293_v41 = vld [vmem:[%s3024_s1 + $0x138] sm:$0xff]  }
   0xb   :  { %v2286_v26 = vld [vmem:[%s3024_s1 + $0x8] sm:$0xff]   ;;  %v2290_v30 = vld [vmem:[%s3024_s1] sm:$0xff]   ;;  %v2294_v42 = vld [vmem:[%s3024_s1 + $0x1f8] sm:$0xff]  }
   0xc   :  { %1889 = vmatpush3.bf16.msra.mxu0 %v2270_v10  ;;  %v2287_v27 = vld [vmem:[%s3024_s1 + $0x88] sm:$0xff]   ;;  %v2291_v31 = vld [vmem:[%s3024_s1 + $0x80] sm:$0xff]   ;;  %v2295_v43 = vld [vmem:[%s3024_s1 + $0x1b8] sm:$0xff]  }
   0xd   :  { %1983 = vmatpush3.bf16.msra.mxu1 %v2271_v11  ;;  %1890 = vmatprep.subr.bf16.mxu0 %v2272_v12  ;;  %v15_v32 = vld [vmem:[%s3025_s0] sm:$0xff]  ;;  %v16_v34 = vld [vmem:[%s3025_s0 + $0x8] sm:$0xff]  ;;  %v2296_v50 = vld [vmem:[%s3024_s1 + $0x170] sm:$0xff]  }
   0xe   :  { %1984 = vmatprep.subr.bf16.mxu1 %v2273_v13  ;;  %v19_v33 = vld [vmem:[%s3025_s0 + $0x20] sm:$0xff]  ;;  %v20_v37 = vld [vmem:[%s3025_s0 + $0x28] sm:$0xff]  ;;  %v2297_v52 = vld [vmem:[%s3024_s1 + $0x130] sm:$0xff]  }
   0xf   :  { %v1716_v35 = vcombine.low %v15_v32, %v19_v33  ;;  %v1717_v36 = vcombine.high %v15_v32, %v19_v33  ;;  %v1718_v38 = vcombine.low %v16_v34, %v20_v37  ;;  %v1719_v39 = vcombine.high %v16_v34, %v20_v37  ;;  %v23_v44 = vld [vmem:[%s3025_s0 + $0x40] sm:$0xff]  ;;  %v24_v47 = vld [vmem:[%s3025_s0 + $0x48] sm:$0xff]  ;;  %v2298_v60 = vld [vmem:[%s3024_s1 + $0x1f0] sm:$0xff]  }
  0x10   :  { %1891 = vmatpush3.bf16.msra.mxu0 %v2274_v14  ;;  %v27_v45 = vld [vmem:[%s3025_s0 + $0x60] sm:$0xff]  ;;  %v28_v48 = vld [vmem:[%s3025_s0 + $0x68] sm:$0xff]  ;;  %v2299_v61 = vld [vmem:[%s3024_s1 + $0x1b0] sm:$0xff]  }
  0x11   :  { %1985 = vmatpush3.bf16.msra.mxu1 %v2275_v15  ;;  %1892 = vmatprep.subr.bf16.mxu0 %v2276_v16  ;;  %v1725_v46 = vcombine.high %v23_v44, %v27_v45  ;;  %v1727_v49 = vcombine.high %v24_v47, %v28_v48  ;;  %v1724_v51 = vcombine.low %v23_v44, %v27_v45  ;;  %v31_v53 = vld [vmem:[%s3025_s0 + $0x80] sm:$0xff]  ;;  %v32_v56 = vld [vmem:[%s3025_s0 + $0x88] sm:$0xff]  ;;  %v2313_v34 = vld [vmem:[%s3024_s1 + $0x110] sm:$0xff]  }
  0x12   :  { %1986 = vmatprep.subr.bf16.mxu1 %v2277_v17  ;;  %1174 = vmatprep.mubr.bf16.mxu0 %v1717_v36  ;;  %v1726_v54 = vcombine.low %v24_v47, %v28_v48  ;;  %v35_v55 = vld [vmem:[%s3025_s0 + $0xa0] sm:$0xff]  ;;  %v36_v57 = vld [vmem:[%s3025_s0 + $0xa8] sm:$0xff]  ;;  %v2314_v36 = vld [vmem:[%s3024_s1 + $0x1d0] sm:$0xff]  }
  0x13   :  { %1310 = vmatprep.mubr.bf16.mxu1 %v1719_v39  ;;  %v1733_v58 = vcombine.high %v31_v53, %v35_v55  ;;  %v1735_v59 = vcombine.high %v32_v56, %v36_v57  ;;  %v39_v62 = vld [vmem:[%s3025_s0 + $0xc0] sm:$0xff]  ;;  %v40_v0 = vld [vmem:[%s3025_s0 + $0xc8] sm:$0xff]  ;;  %v1732_v4 = vcombine.low %v31_v53, %v35_v55  ;;  %v1734_v6 = vcombine.low %v32_v56, %v36_v57  ;;  %v2315_v37 = vld [vmem:[%s3024_s1 + $0x190] sm:$0xff]  }
  0x14   :  { %1893 = vmatpush3.bf16.msra.mxu0 %v2278_v18  ;;  %v43_v63 = vld [vmem:[%s3025_s0 + $0xe0] sm:$0xff]  ;;  %v44_v1 = vld [vmem:[%s3025_s0 + $0xe8] sm:$0xff] }
  0x15   :  { %1987 = vmatpush3.bf16.msra.mxu1 %v2279_v19  ;;  %1894 = vmatprep.subr.bf16.mxu0 %v2280_v20  ;;  %v2300_v2 = vld [vmem:[%s3024_s1 + $0x168] sm:$0xff]   ;;  %v1741_v7 = vcombine.high %v39_v62, %v43_v63  ;;  %v1743_v9 = vcombine.high %v40_v0, %v44_v1  ;;  %v47_v10 = vld [vmem:[%s3025_s0 + $0x100] sm:$0xff]  ;;  %v1740_v18 = vcombine.low %v39_v62, %v43_v63 }
  0x16   :  { %1988 = vmatprep.subr.bf16.mxu1 %v2281_v21  ;;  %v2301_v3 = vld [vmem:[%s3024_s1 + $0x128] sm:$0xff]   ;;  %v51_v11 = vld [vmem:[%s3025_s0 + $0x120] sm:$0xff]  ;;  %v1742_v19 = vcombine.low %v40_v0, %v44_v1 }
  0x17   :  { %v2302_v5 = vld [vmem:[%s3024_s1 + $0x1e8] sm:$0xff]   ;;  %v2304_v12 = vld [vmem:[%s3024_s1 + $0x160] sm:$0xff]   ;;  %v1749_v20 = vcombine.high %v47_v10, %v51_v11 }
  0x18   :  { %1895 = vmatpush3.bf16.msra.mxu0 %v2282_v22  ;;  %v2303_v8 = vld [vmem:[%s3024_s1 + $0x1a8] sm:$0xff]   ;;  %v2305_v15 = vld [vmem:[%s3024_s1 + $0x120] sm:$0xff]   ;;  %v2308_v22 = vld [vmem:[%s3024_s1 + $0x158] sm:$0xff]  }
  0x19   :  { %1989 = vmatpush3.bf16.msra.mxu1 %v2283_v23  ;;  %1896 = vmatprep.subr.bf16.mxu0 %v2284_v24  ;;  %v48_v13 = vld [vmem:[%s3025_s0 + $0x108] sm:$0xff]  ;;  %v2306_v16 = vld [vmem:[%s3024_s1 + $0x1e0] sm:$0xff]   ;;  %v2309_v23 = vld [vmem:[%s3024_s1 + $0x118] sm:$0xff]  }
  0x1a   :  { %1990 = vmatprep.subr.bf16.mxu1 %v2285_v25  ;;  %v52_v14 = vld [vmem:[%s3025_s0 + $0x128] sm:$0xff]  ;;  %v2307_v17 = vld [vmem:[%s3024_s1 + $0x1a0] sm:$0xff]   ;;  %v2310_v24 = vld [vmem:[%s3024_s1 + $0x1d8] sm:$0xff]  }
  0x1b   :  { %v1751_v21 = vcombine.high %v48_v13, %v52_v14  ;;  %v55_v25 = vld [vmem:[%s3025_s0 + $0x140] sm:$0xff]  ;;  %v1750_v32 = vcombine.low %v48_v13, %v52_v14  ;;  %v2317_v44 = vld [vmem:[%s3024_s1 + $0x108] sm:$0xff]  }
  0x1c   :  { %1897 = vmatpush3.bf16.msra.mxu0 %v2286_v26  ;;  %v59_v26 = vld [vmem:[%s3025_s0 + $0x160] sm:$0xff]  ;;  %v2318_v47 = vld [vmem:[%s3024_s1 + $0x1c8] sm:$0xff]  }
  0x1d   :  { %1991 = vmatpush3.bf16.msra.mxu1 %v2287_v27  ;;  %1898 = vmatprep.subr.bf16.mxu0 %v2288_v28  ;;  %v2311_v27 = vld [vmem:[%s3024_s1 + $0x198] sm:$0xff]   ;;  %v56_v28 = vld [vmem:[%s3025_s0 + $0x148] sm:$0xff]  ;;  %v1757_v33 = vcombine.high %v55_v25, %v59_v26  ;;  %v67_v39 = vld [vmem:[%s3025_s0 + $0x1a0] sm:$0xff] }
  0x1e   :  { %1992 = vmatprep.subr.bf16.mxu1 %v2289_v29  ;;  %v60_v29 = vld [vmem:[%s3025_s0 + $0x168] sm:$0xff]  ;;  %v2321_v55 = vld [vmem:[%s3024_s1 + $0x100] sm:$0xff]  }
  0x1f   :  { %v1758_v45 = vcombine.low %v56_v28, %v60_v29  ;;  %v72_v53 = vld [vmem:[%s3025_s0 + $0x1c8] sm:$0xff]  ;;  %v2322_v56 = vld [vmem:[%s3024_s1 + $0x1c0] sm:$0xff]  }
  0x20   :  { %1899 = vmatpush3.bf16.msra.mxu0 %v2290_v30  ;;  %v1748_v30 = vcombine.low %v47_v10, %v51_v11  ;;  %v2323_v57 = vld [vmem:[%s3024_s1 + $0x180] sm:$0xff]   ;;  %v80_v0 = vld [vmem:[%s3025_s0 + $0x208] sm:$0xff] }
  0x21   :  { %1993 = vmatpush3.bf16.msra.mxu1 %v2291_v31  ;;  %2072 = vmatprep.subr.bf16.mxu0 %v2292_v40  ;;  %v2312_v31 = vld [vmem:[%s3024_s1 + $0x150] sm:$0xff]   ;;  %v2316_v40 = vld [vmem:[%s3024_s1 + $0x148] sm:$0xff]   ;;  %v79_v62 = vld [vmem:[%s3025_s0 + $0x200] sm:$0xff] }
  0x22   :  { %2166 = vmatprep.subr.bf16.mxu1 %v2294_v42  ;;  %v68_v42 = vld [vmem:[%s3025_s0 + $0x1a8] sm:$0xff]  ;;  %v83_v63 = vld [vmem:[%s3025_s0 + $0x220] sm:$0xff] }
  0x23   :  { %1175 = vmatmul.mubr.bf16.vlgmr.msra.gmra.mxu0 %v1716_v35  ;;  %v1759_v35 = vcombine.high %v56_v28, %v60_v29  ;;  %v84_v1 = vld [vmem:[%s3025_s0 + $0x228] sm:$0xff]  ;;  %v1780_v10 = vcombine.low %v79_v62, %v83_v63  ;;  %v95_v14 = vld [vmem:[%s3025_s0 + $0x280] sm:$0xff] }
  0x24   :  { %1311 = vmatmul.mubr.bf16.vlgmr.msra.gmra.mxu1 %v1718_v38  ;;  %2073 = vmatpush3.bf16.msra.mxu0 %v2293_v41  ;;  %v63_v38 = vld [vmem:[%s3025_s0 + $0x180] sm:$0xff]  ;;  %v64_v41 = vld [vmem:[%s3025_s0 + $0x188] sm:$0xff]  ;;  %v1782_v11 = vcombine.low %v80_v0, %v84_v1 }
  0x25   :  { %2167 = vmatpush3.bf16.msra.mxu1 %v2295_v43  ;;  %1182 = vmatprep.mubr.bf16.mxu0 %v1725_v46  ;;  %v1756_v43 = vcombine.low %v55_v25, %v59_v26  ;;  %v1765_v46 = vcombine.high %v63_v38, %v67_v39  ;;  %v1767_v48 = vcombine.high %v64_v41, %v68_v42  ;;  %v108_v25 = vld [vmem:[%s3025_s0 + $0x2e8] sm:$0xff] }
  0x26   :  { %1318 = vmatprep.mubr.bf16.mxu1 %v1727_v49  ;;  %2074 = vmatprep.subr.bf16.mxu0 %v2296_v50  ;;  %v2319_v49 = vld [vmem:[%s3024_s1 + $0x188] sm:$0xff]   ;;  %v71_v50 = vld [vmem:[%s3025_s0 + $0x1c0] sm:$0xff] }
  0x27   :  { %2168 = vmatprep.subr.bf16.mxu1 %v2298_v60 }
  0x28   :  { %2075 = vmatpush3.bf16.msra.mxu0 %v2297_v52  ;;  %v2320_v52 = vld [vmem:[%s3024_s1 + $0x140] sm:$0xff]  }
  0x29   :  { %2169 = vmatpush3.bf16.msra.mxu1 %v2299_v61  ;;  %2076 = vmatprep.subr.bf16.mxu0 %v2300_v2 }
  0x2a   :  { %2170 = vmatprep.subr.bf16.mxu1 %v2302_v5  ;;  %v1783_v5 = vcombine.high %v80_v0, %v84_v1 }
  0x2b   :  { %1183 = vmatmul.mubr.bf16.gmra.mxu0 %v1724_v51  ;;  %v75_v51 = vld [vmem:[%s3025_s0 + $0x1e0] sm:$0xff] }
  0x2c   :  { %1319 = vmatmul.mubr.bf16.gmra.mxu1 %v1726_v54  ;;  %1190 = vmatprep.mubr.bf16.mxu0 %v1733_v58  ;;  %v76_v54 = vld [vmem:[%s3025_s0 + $0x1e8] sm:$0xff]  ;;  %v1764_v58 = vcombine.low %v63_v38, %v67_v39  ;;  %v1773_v60 = vcombine.high %v71_v50, %v75_v51  ;;  %v1772_v2 = vcombine.low %v71_v50, %v75_v51  ;;  %v18_v38 = vld [vmem:[%s3025_s0 + $0x18] sm:$0xff] }
  0x2d   :  { %1326 = vmatprep.mubr.bf16.mxu1 %v1735_v59  ;;  %2077 = vmatpush3.bf16.msra.mxu0 %v2301_v3  ;;  %v1766_v59 = vcombine.low %v64_v41, %v68_v42  ;;  %v1775_v61 = vcombine.high %v72_v53, %v76_v54  ;;  %v1774_v3 = vcombine.low %v72_v53, %v76_v54  ;;  %v22_v39 = vld [vmem:[%s3025_s0 + $0x38] sm:$0xff]  ;;  %v37_v53 = vld [vmem:[%s3025_s0 + $0xb0] sm:$0xff] }
  0x2e   :  { %2171 = vmatpush3.bf16.msra.mxu1 %v2303_v8  ;;  %2078 = vmatprep.subr.bf16.mxu0 %v2304_v12  ;;  %v88_v8 = vld [vmem:[%s3025_s0 + $0x248] sm:$0xff]  ;;  %v34_v54 = vld [vmem:[%s3025_s0 + $0x98] sm:$0xff] }
  0x2f   :  { %2172 = vmatprep.subr.bf16.mxu1 %v2306_v16  ;;  %v96_v16 = vld [vmem:[%s3025_s0 + $0x288] sm:$0xff] }
  0x31   :  { %2079 = vmatpush3.bf16.msra.mxu0 %v2305_v15  ;;  %v99_v15 = vld [vmem:[%s3025_s0 + $0x2a0] sm:$0xff] }
  0x32   :  { %2173 = vmatpush3.bf16.msra.mxu1 %v2307_v17  ;;  %2080 = vmatprep.subr.bf16.mxu0 %v2308_v22  ;;  %v100_v17 = vld [vmem:[%s3025_s0 + $0x2a8] sm:$0xff]  ;;  %v103_v22 = vld [vmem:[%s3025_s0 + $0x2c0] sm:$0xff]  ;;  %v1796_v26 = vcombine.low %v95_v14, %v99_v15 }
  0x33   :  { %1191 = vmatmul.mubr.bf16.gmra.mxu0 %v1732_v4  ;;  %2174 = vmatprep.subr.bf16.mxu1 %v2310_v24  ;;  %v1781_v4 = vcombine.high %v79_v62, %v83_v63  ;;  %v104_v24 = vld [vmem:[%s3025_s0 + $0x2c8] sm:$0xff]  ;;  %v42_v62 = vld [vmem:[%s3025_s0 + $0xd8] sm:$0xff] }
  0x34   :  { %1327 = vmatmul.mubr.bf16.gmra.mxu1 %v1734_v6  ;;  %1198 = vmatprep.mubr.bf16.mxu0 %v1741_v7  ;;  %v87_v6 = vld [vmem:[%s3025_s0 + $0x240] sm:$0xff]  ;;  %v1807_v29 = vcombine.high %v104_v24, %v108_v25  ;;  %v46_v63 = vld [vmem:[%s3025_s0 + $0xf8] sm:$0xff] }
  0x35   :  { %1334 = vmatprep.mubr.bf16.mxu1 %v1743_v9  ;;  %2081 = vmatpush3.bf16.msra.mxu0 %v2309_v23  ;;  %v91_v7 = vld [vmem:[%s3025_s0 + $0x260] sm:$0xff]  ;;  %v92_v9 = vld [vmem:[%s3025_s0 + $0x268] sm:$0xff] }
  0x36   :  { %2175 = vmatpush3.bf16.msra.mxu1 %v2311_v27  ;;  %2082 = vmatprep.subr.bf16.mxu0 %v2312_v31  ;;  %v1789_v12 = vcombine.high %v87_v6, %v91_v7  ;;  %v1791_v13 = vcombine.high %v88_v8, %v92_v9  ;;  %v107_v23 = vld [vmem:[%s3025_s0 + $0x2e0] sm:$0xff]  ;;  %v1798_v27 = vcombine.low %v96_v16, %v100_v17  ;;  %v112_v31 = vld [vmem:[%s3025_s0 + $0x308] sm:$0xff] }
  0x37   :  { %2176 = vmatprep.subr.bf16.mxu1 %v2314_v36  ;;  %v1805_v28 = vcombine.high %v103_v22, %v107_v23  ;;  %v17_v36 = vld [vmem:[%s3025_s0 + $0x10] sm:$0xff]  ;;  %v1814_v41 = vcombine.low %v112_v31, %v112_v31 }
  0x39   :  { %2083 = vmatpush3.bf16.msra.mxu0 %v2313_v34 }
  0x3a   :  { %2177 = vmatpush3.bf16.msra.mxu1 %v2315_v37  ;;  %2084 = vmatprep.subr.bf16.mxu0 %v2316_v40  ;;  %v21_v37 = vld [vmem:[%s3025_s0 + $0x30] sm:$0xff] }
  0x3b   :  { %1199 = vmatmul.mubr.bf16.gmra.mxu0 %v1740_v18  ;;  %2178 = vmatprep.subr.bf16.mxu1 %v2318_v47  ;;  %v1788_v18 = vcombine.low %v87_v6, %v91_v7  ;;  %v1721_v42 = vcombine.high %v17_v36, %v21_v37  ;;  %v30_v47 = vld [vmem:[%s3025_s0 + $0x78] sm:$0xff] }
  0x3c   :  { %1335 = vmatmul.mubr.bf16.gmra.mxu1 %v1742_v19  ;;  %1206 = vmatprep.mubr.bf16.mxu0 %v1749_v20  ;;  %v1790_v19 = vcombine.low %v88_v8, %v92_v9  ;;  %v1797_v20 = vcombine.high %v95_v14, %v99_v15  ;;  %v50_v6 = vld [vmem:[%s3025_s0 + $0x118] sm:$0xff]  ;;  %v1746_v9 = vcombine.low %v42_v62, %v46_v63 }
  0x3d   :  { %1342 = vmatprep.mubr.bf16.mxu1 %v1751_v21  ;;  %2085 = vmatpush3.bf16.msra.mxu0 %v2317_v44  ;;  %v1799_v21 = vcombine.high %v96_v16, %v100_v17  ;;  %v25_v44 = vld [vmem:[%s3025_s0 + $0x50] sm:$0xff]  ;;  %v54_v7 = vld [vmem:[%s3025_s0 + $0x138] sm:$0xff] }
  0x3e   :  { %2179 = vmatpush3.bf16.msra.mxu1 %v2319_v49  ;;  %2086 = vmatprep.subr.bf16.mxu0 %v2320_v52  ;;  %v1722_v49 = vcombine.low %v18_v38, %v22_v39  ;;  %v33_v52 = vld [vmem:[%s3025_s0 + $0x90] sm:$0xff]  ;;  %v58_v14 = vld [vmem:[%s3025_s0 + $0x158] sm:$0xff]  ;;  %v1754_v17 = vcombine.low %v50_v6, %v54_v7 }
  0x3f   :  { %2180 = vmatprep.subr.bf16.mxu1 %v2322_v56  ;;  %v1736_v0 = vcombine.low %v33_v52, %v37_v53  ;;  %v62_v15 = vld [vmem:[%s3025_s0 + $0x178] sm:$0xff] }
  0x41   :  { %2087 = vmatpush3.bf16.msra.mxu0 %v2321_v55  ;;  %v38_v55 = vld [vmem:[%s3025_s0 + $0xb8] sm:$0xff] }
  0x42   :  { %2181 = vmatpush3.bf16.msra.mxu1 %v2323_v57  ;;  %v1738_v1 = vcombine.low %v34_v54, %v38_v55 }
  0x43   :  { %1207 = vmatmul.mubr.bf16.gmra.mxu0 %v1748_v30  ;;  %v111_v30 = vld [vmem:[%s3025_s0 + $0x300] sm:$0xff] }
  0x44   :  { %1343 = vmatmul.mubr.bf16.gmra.mxu1 %v1750_v32  ;;  %1214 = vmatprep.mubr.bf16.mxu0 %v1757_v33  ;;  %v1804_v32 = vcombine.low %v103_v22, %v107_v23  ;;  %v1806_v33 = vcombine.low %v104_v24, %v108_v25  ;;  %v1813_v34 = vcombine.high %v111_v30, %v111_v30  ;;  %v66_v22 = vld [vmem:[%s3025_s0 + $0x198] sm:$0xff] }
  0x45   :  { %1350 = vmatprep.mubr.bf16.mxu1 %v1759_v35  ;;  %v1815_v35 = vcombine.high %v112_v31, %v112_v31  ;;  %v1812_v40 = vcombine.low %v111_v30, %v111_v30  ;;  %v70_v23 = vld [vmem:[%s3025_s0 + $0x1b8] sm:$0xff]  ;;  %v1762_v25 = vcombine.low %v58_v14, %v62_v15 }
  0x46   :  { %v74_v30 = vld [vmem:[%s3025_s0 + $0x1d8] sm:$0xff] }
  0x47   :  { %v78_v31 = vld [vmem:[%s3025_s0 + $0x1f8] sm:$0xff] }
  0x4b   :  { %1215 = vmatmul.mubr.bf16.gmra.mxu0 %v1756_v43  ;;  %v1723_v43 = vcombine.high %v18_v38, %v22_v39  ;;  %v82_v38 = vld [vmem:[%s3025_s0 + $0x218] sm:$0xff] }
  0x4c   :  { %1351 = vmatmul.mubr.bf16.gmra.mxu1 %v1758_v45  ;;  %1222 = vmatprep.mubr.bf16.mxu0 %v1765_v46  ;;  %v29_v45 = vld [vmem:[%s3025_s0 + $0x70] sm:$0xff]  ;;  %v26_v46 = vld [vmem:[%s3025_s0 + $0x58] sm:$0xff] }
  0x4d   :  { %1358 = vmatprep.mubr.bf16.mxu1 %v1767_v48  ;;  %v1720_v48 = vcombine.low %v17_v36, %v21_v37  ;;  %v1729_v50 = vcombine.high %v25_v44, %v29_v45  ;;  %v1731_v51 = vcombine.high %v26_v46, %v30_v47  ;;  %v1728_v56 = vcombine.low %v25_v44, %v29_v45  ;;  %v81_v36 = vld [vmem:[%s3025_s0 + $0x210] sm:$0xff]  ;;  %v86_v39 = vld [vmem:[%s3025_s0 + $0x238] sm:$0xff] }
  0x4e   :  { %v1730_v57 = vcombine.low %v26_v46, %v30_v47  ;;  %v85_v37 = vld [vmem:[%s3025_s0 + $0x230] sm:$0xff]  ;;  %v90_v46 = vld [vmem:[%s3025_s0 + $0x258] sm:$0xff] }
  0x4f   :  { %v89_v44 = vld [vmem:[%s3025_s0 + $0x250] sm:$0xff]  ;;  %v94_v47 = vld [vmem:[%s3025_s0 + $0x278] sm:$0xff] }
  0x50   :  { %v93_v45 = vld [vmem:[%s3025_s0 + $0x270] sm:$0xff] }
  0x53   :  { %1223 = vmatmul.mubr.bf16.gmra.mxu0 %v1764_v58  ;;  %v1737_v58 = vcombine.high %v33_v52, %v37_v53  ;;  %v97_v52 = vld [vmem:[%s3025_s0 + $0x290] sm:$0xff] }
  0x54   :  { %1359 = vmatmul.mubr.bf16.gmra.mxu1 %v1766_v59  ;;  %1230 = vmatprep.mubr.bf16.mxu0 %v1773_v60  ;;  %v1739_v59 = vcombine.high %v34_v54, %v38_v55  ;;  %v41_v60 = vld [vmem:[%s3025_s0 + $0xd0] sm:$0xff]  ;;  %v98_v54 = vld [vmem:[%s3025_s0 + $0x298] sm:$0xff] }
  0x55   :  { %1366 = vmatprep.mubr.bf16.mxu1 %v1775_v61  ;;  %v45_v61 = vld [vmem:[%s3025_s0 + $0xf0] sm:$0xff]  ;;  %v102_v55 = vld [vmem:[%s3025_s0 + $0x2b8] sm:$0xff] }
  0x56   :  { %v1744_v8 = vcombine.low %v41_v60, %v45_v61  ;;  %v101_v53 = vld [vmem:[%s3025_s0 + $0x2b0] sm:$0xff] }
  0x5b   :  { %1231 = vmatmul.mubr.bf16.gmra.mxu0 %v1772_v2  ;;  %v1745_v2 = vcombine.high %v41_v60, %v45_v61  ;;  %v105_v60 = vld [vmem:[%s3025_s0 + $0x2d0] sm:$0xff] }
  0x5c   :  { %1367 = vmatmul.mubr.bf16.gmra.mxu1 %v1774_v3  ;;  %1238 = vmatprep.mubr.bf16.mxu0 %v1781_v4  ;;  %v1747_v3 = vcombine.high %v42_v62, %v46_v63  ;;  %v49_v4 = vld [vmem:[%s3025_s0 + $0x110] sm:$0xff]  ;;  %v106_v62 = vld [vmem:[%s3025_s0 + $0x2d8] sm:$0xff] }
  0x5d   :  { %1374 = vmatprep.mubr.bf16.mxu1 %v1783_v5  ;;  %v53_v5 = vld [vmem:[%s3025_s0 + $0x130] sm:$0xff]  ;;  %v110_v63 = vld [vmem:[%s3025_s0 + $0x2f8] sm:$0xff] }
  0x5e   :  { %v1752_v16 = vcombine.low %v49_v4, %v53_v5  ;;  %v109_v61 = vld [vmem:[%s3025_s0 + $0x2f0] sm:$0xff] }
  0x63   :  { %1239 = vmatmul.mubr.bf16.gmra.mxu0 %v1780_v10  ;;  %v1753_v10 = vcombine.high %v49_v4, %v53_v5  ;;  %v113_v4 = vld [vmem:[%s3025_s0 + $0x310] sm:$0xff]  ;;  %v114_v5 = vld [vmem:[%s3025_s0 + $0x318] sm:$0xff] }
  0x64   :  { %1375 = vmatmul.mubr.bf16.gmra.mxu1 %v1782_v11  ;;  %1246 = vmatprep.mubr.bf16.mxu0 %v1789_v12  ;;  %v1755_v11 = vcombine.high %v50_v6, %v54_v7  ;;  %v57_v12 = vld [vmem:[%s3025_s0 + $0x150] sm:$0xff]  ;;  %v1808_v6 = vcombine.low %v105_v60, %v109_v61  ;;  %v1810_v7 = vcombine.low %v106_v62, %v110_v63 }
  0x65   :  { %1382 = vmatprep.mubr.bf16.mxu1 %v1791_v13  ;;  %v61_v13 = vld [vmem:[%s3025_s0 + $0x170] sm:$0xff] }
  0x66   :  { %v1760_v24 = vcombine.low %v57_v12, %v61_v13 }
  0x6b   :  { %1247 = vmatmul.mubr.bf16.gmra.mxu0 %v1788_v18  ;;  %v1761_v18 = vcombine.high %v57_v12, %v61_v13  ;;  %v2847_v12 = vld [vmem:[%s3026_s2] ss:$0 sm:$0xff] }
  0x6c   :  { %1383 = vmatmul.mubr.bf16.gmra.mxu1 %v1790_v19  ;;  %1254 = vmatprep.mubr.bf16.mxu0 %v1797_v20  ;;  %v1763_v19 = vcombine.high %v58_v14, %v62_v15  ;;  %v65_v20 = vld [vmem:[%s3025_s0 + $0x190] sm:$0xff] }
  0x6d   :  { %1390 = vmatprep.mubr.bf16.mxu1 %v1799_v21  ;;  %v69_v21 = vld [vmem:[%s3025_s0 + $0x1b0] sm:$0xff] }
  0x73   :  { %1255 = vmatmul.mubr.bf16.gmra.mxu0 %v1796_v26  ;;  %v1769_v26 = vcombine.high %v65_v20, %v69_v21 }
  0x74   :  { %1391 = vmatmul.mubr.bf16.gmra.mxu1 %v1798_v27  ;;  %1262 = vmatprep.mubr.bf16.mxu0 %v1805_v28  ;;  %v1771_v27 = vcombine.high %v66_v22, %v70_v23  ;;  %v73_v28 = vld [vmem:[%s3025_s0 + $0x1d0] sm:$0xff] }
  0x75   :  { %1398 = vmatprep.mubr.bf16.mxu1 %v1807_v29  ;;  %v77_v29 = vld [vmem:[%s3025_s0 + $0x1f0] sm:$0xff] }
  0x7b   :  { %1263 = vmatmul.mubr.bf16.gmra.mxu0 %v1804_v32  ;;  %v1768_v32 = vcombine.low %v65_v20, %v69_v21  ;;  %v1818_v21 = vcombine.low %v114_v5, %v114_v5 }
  0x7c   :  { %1399 = vmatmul.mubr.bf16.gmra.mxu1 %v1806_v33  ;;  %1270 = vmatprep.mubr.bf16.mxu0 %v1813_v34  ;;  %v1770_v33 = vcombine.low %v66_v22, %v70_v23  ;;  %v1777_v34 = vcombine.high %v73_v28, %v77_v29 }
  0x7d   :  { %1406 = vmatprep.mubr.bf16.mxu1 %v1815_v35  ;;  %v1779_v35 = vcombine.high %v74_v30, %v78_v31 }
  0x83   :  { %1271 = vmatmul.mubr.bf16.gmra.mxu0 %v1812_v40  ;;  %v1776_v40 = vcombine.low %v73_v28, %v77_v29 }
  0x84   :  { %1407 = vmatmul.mubr.bf16.gmra.mxu1 %v1814_v41  ;;  %1446 = vmatprep.mubr.bf16.mxu0 %v1721_v42  ;;  %v1778_v41 = vcombine.low %v74_v30, %v78_v31  ;;  %v1785_v42 = vcombine.high %v81_v36, %v85_v37 }
  0x85   :  { %1582 = vmatprep.mubr.bf16.mxu1 %v1723_v43  ;;  %v1787_v43 = vcombine.high %v82_v38, %v86_v39 }
  0x8b   :  { %1447 = vmatmul.mubr.bf16.vlgmr.msra.gmra.mxu0 %v1720_v48  ;;  %v1784_v48 = vcombine.low %v81_v36, %v85_v37 }
  0x8c   :  { %1583 = vmatmul.mubr.bf16.vlgmr.msra.gmra.mxu1 %v1722_v49  ;;  %1454 = vmatprep.mubr.bf16.mxu0 %v1729_v50  ;;  %v1786_v49 = vcombine.low %v82_v38, %v86_v39  ;;  %v1793_v50 = vcombine.high %v89_v44, %v93_v45 }
  0x8d   :  { %1590 = vmatprep.mubr.bf16.mxu1 %v1731_v51  ;;  %v1795_v51 = vcombine.high %v90_v46, %v94_v47 }
  0x93   :  { %1455 = vmatmul.mubr.bf16.gmra.mxu0 %v1728_v56  ;;  %v1792_v56 = vcombine.low %v89_v44, %v93_v45 }
  0x94   :  { %1591 = vmatmul.mubr.bf16.gmra.mxu1 %v1730_v57  ;;  %1462 = vmatprep.mubr.bf16.mxu0 %v1737_v58  ;;  %v1794_v57 = vcombine.low %v90_v46, %v94_v47  ;;  %v1801_v58 = vcombine.high %v97_v52, %v101_v53 }
  0x95   :  { %1598 = vmatprep.mubr.bf16.mxu1 %v1739_v59  ;;  %v1803_v59 = vcombine.high %v98_v54, %v102_v55 }
  0x9b   :  { %1463 = vmatmul.mubr.bf16.gmra.mxu0 %v1736_v0  ;;  %v1800_v0 = vcombine.low %v97_v52, %v101_v53 }
  0x9c   :  { %1599 = vmatmul.mubr.bf16.gmra.mxu1 %v1738_v1  ;;  %1470 = vmatprep.mubr.bf16.mxu0 %v1745_v2  ;;  %v1802_v1 = vcombine.low %v98_v54, %v102_v55  ;;  %v1809_v2 = vcombine.high %v105_v60, %v109_v61 }
  0x9d   :  { %1606 = vmatprep.mubr.bf16.mxu1 %v1747_v3  ;;  %v1811_v3 = vcombine.high %v106_v62, %v110_v63 }
  0xa3   :  { %1471 = vmatmul.mubr.bf16.gmra.mxu0 %v1744_v8  ;;  %v1817_v8 = vcombine.high %v113_v4, %v113_v4 }
  0xa4   :  { %1607 = vmatmul.mubr.bf16.gmra.mxu1 %v1746_v9  ;;  %1478 = vmatprep.mubr.bf16.mxu0 %v1753_v10  ;;  %v1819_v9 = vcombine.high %v114_v5, %v114_v5 }
  0xa5   :  { %1614 = vmatprep.mubr.bf16.mxu1 %v1755_v11 }
  0xab   :  { %1479 = vmatmul.mubr.bf16.gmra.mxu0 %v1752_v16 }
  0xac   :  { %1615 = vmatmul.mubr.bf16.gmra.mxu1 %v1754_v17  ;;  %1486 = vmatprep.mubr.bf16.mxu0 %v1761_v18  ;;  %v1816_v18 = vcombine.low %v113_v4, %v113_v4 }
  0xad   :  { %1622 = vmatprep.mubr.bf16.mxu1 %v1763_v19 }
  0xb3   :  { %1487 = vmatmul.mubr.bf16.gmra.mxu0 %v1760_v24 }
  0xb4   :  { %1623 = vmatmul.mubr.bf16.gmra.mxu1 %v1762_v25  ;;  %1494 = vmatprep.mubr.bf16.mxu0 %v1769_v26 }
  0xb5   :  { %1630 = vmatprep.mubr.bf16.mxu1 %v1771_v27 }
  0xbb   :  { %1495 = vmatmul.mubr.bf16.gmra.mxu0 %v1768_v32 }
  0xbc   :  { %1631 = vmatmul.mubr.bf16.gmra.mxu1 %v1770_v33  ;;  %1502 = vmatprep.mubr.bf16.mxu0 %v1777_v34 }
  0xbd   :  { %1638 = vmatprep.mubr.bf16.mxu1 %v1779_v35 }
  0xc3   :  { %1503 = vmatmul.mubr.bf16.gmra.mxu0 %v1776_v40 }
  0xc4   :  { %1639 = vmatmul.mubr.bf16.gmra.mxu1 %v1778_v41  ;;  %1510 = vmatprep.mubr.bf16.mxu0 %v1785_v42 }
  0xc5   :  { %1646 = vmatprep.mubr.bf16.mxu1 %v1787_v43 }
  0xcb   :  { %1511 = vmatmul.mubr.bf16.gmra.mxu0 %v1784_v48 }
  0xcc   :  { %1647 = vmatmul.mubr.bf16.gmra.mxu1 %v1786_v49  ;;  %1518 = vmatprep.mubr.bf16.mxu0 %v1793_v50 }
  0xcd   :  { %1654 = vmatprep.mubr.bf16.mxu1 %v1795_v51 }
  0xd3   :  { %1519 = vmatmul.mubr.bf16.gmra.mxu0 %v1792_v56 }
  0xd4   :  { %1655 = vmatmul.mubr.bf16.gmra.mxu1 %v1794_v57  ;;  %1526 = vmatprep.mubr.bf16.mxu0 %v1801_v58 }
  0xd5   :  { %1662 = vmatprep.mubr.bf16.mxu1 %v1803_v59 }
  0xdb   :  { %1527 = vmatmul.mubr.bf16.gmra.mxu0 %v1800_v0 }
  0xdc   :  { %1663 = vmatmul.mubr.bf16.gmra.mxu1 %v1802_v1  ;;  %1534 = vmatprep.mubr.bf16.mxu0 %v1809_v2 }
  0xdd   :  { %1670 = vmatprep.mubr.bf16.mxu1 %v1811_v3 }
  0xe3   :  { %v1900_v10 = vpop.f32.mrf.mxu0  ;;  %1535 = vmatmul.mubr.bf16.gmra.mxu0 %v1808_v6 }
  0xe4   :  { %v1994_v11 = vpop.f32.mrf.mxu1  ;;  %1671 = vmatmul.mubr.bf16.gmra.mxu1 %v1810_v7  ;;  %1542 = vmatprep.mubr.bf16.mxu0 %v1817_v8 }
  0xe5   :  { %v1901_v13 = vpop.f32.mrf.mxu0  ;;  %1678 = vmatprep.mubr.bf16.mxu1 %v1819_v9 }
  0xe6   :  { %v1902_v14 = vadd.f32 %v1901_v13, %v1900_v10  ;;  %v1995_v15 = vpop.f32.mrf.mxu1 }
  0xe7   :  { %v1996_v16 = vadd.f32 %v1995_v15, %v1994_v11  ;;  %v1903_v17 = vpop.f32.mrf.mxu0 }
  0xe8   :  { %v1177_v19 = vadd.f32 %v1902_v14, %v2847_v12  ;;  %v1997_v20 = vpop.f32.mrf.mxu1 }
  0xe9   :  { %v1904_v22 = vpop.f32.mrf.mxu0 }
  0xea   :  { %v2850_v23 = vadd.f32 %v1996_v16, %v1177_v19  ;;  %v1905_v24 = vadd.f32 %v1904_v22, %v1903_v17  ;;  %v1998_v25 = vpop.f32.mrf.mxu1 }
  0xeb   :  { %v1999_v26 = vadd.f32 %v1998_v25, %v1997_v20  ;;  %v1906_v27 = vpop.f32.mrf.mxu0  ;;  %1543 = vmatmul.mubr.bf16.gmra.mxu0 %v1816_v18 }
  0xec   :  { %v1180_v28 = vadd.f32 %v1905_v24, %v2847_v12  ;;  %v2000_v29 = vpop.f32.mrf.mxu1  ;;  %1679 = vmatmul.mubr.bf16.gmra.mxu1 %v1818_v21 }
  0xed   :  { %v1907_v30 = vpop.f32.mrf.mxu0 }
  0xee   :  { %v2853_v31 = vadd.f32 %v1999_v26, %v1180_v28  ;;  %v1908_v32 = vadd.f32 %v1907_v30, %v1906_v27  ;;  %v2001_v33 = vpop.f32.mrf.mxu1 }
  0xef   :  { %v2002_v34 = vadd.f32 %v2001_v33, %v2000_v29  ;;  %v1909_v35 = vpop.f32.mrf.mxu0 }
  0xf0   :  { %v1185_v36 = vadd.f32 %v1908_v32, %v2847_v12  ;;  %v2003_v37 = vpop.f32.mrf.mxu1 }
  0xf1   :  { %v1910_v38 = vpop.f32.mrf.mxu0 }
  0xf2   :  { %v2856_v39 = vadd.f32 %v2002_v34, %v1185_v36  ;;  %v1911_v40 = vadd.f32 %v1910_v38, %v1909_v35  ;;  %v2004_v41 = vpop.f32.mrf.mxu1 }
  0xf3   :  { %v2005_v42 = vadd.f32 %v2004_v41, %v2003_v37  ;;  %v1912_v43 = vpop.f32.mrf.mxu0 }
  0xf4   :  { %v1188_v44 = vadd.f32 %v1911_v40, %v2847_v12  ;;  %v2006_v45 = vpop.f32.mrf.mxu1 }
  0xf5   :  { %v1913_v46 = vpop.f32.mrf.mxu0 }
  0xf6   :  { %v2859_v47 = vadd.f32 %v2005_v42, %v1188_v44  ;;  %v1914_v48 = vadd.f32 %v1913_v46, %v1912_v43  ;;  %v2007_v49 = vpop.f32.mrf.mxu1 }
  0xf7   :  { %v2008_v50 = vadd.f32 %v2007_v49, %v2006_v45  ;;  %v1915_v51 = vpop.f32.mrf.mxu0 }
  0xf8   :  { %v1193_v52 = vadd.f32 %v1914_v48, %v2847_v12  ;;  %v2009_v53 = vpop.f32.mrf.mxu1 }
  0xf9   :  { %v1916_v54 = vpop.f32.mrf.mxu0 }
  0xfa   :  { %v2862_v55 = vadd.f32 %v2008_v50, %v1193_v52  ;;  %v1917_v56 = vadd.f32 %v1916_v54, %v1915_v51  ;;  %v2010_v57 = vpop.f32.mrf.mxu1 }
  0xfb   :  { %v2011_v58 = vadd.f32 %v2010_v57, %v2009_v53  ;;  %v1918_v59 = vpop.f32.mrf.mxu0 }
  0xfc   :  { %v1196_v60 = vadd.f32 %v1917_v56, %v2847_v12  ;;  %v2012_v61 = vpop.f32.mrf.mxu1 }
  0xfd   :  { %v1919_v62 = vpop.f32.mrf.mxu0 }
  0xfe   :  { %v2865_v63 = vadd.f32 %v2011_v58, %v1196_v60  ;;  %v1920_v0 = vadd.f32 %v1919_v62, %v1918_v59  ;;  %v2013_v1 = vpop.f32.mrf.mxu1 }
  0xff   :  { %v2014_v2 = vadd.f32 %v2013_v1, %v2012_v61  ;;  %v1921_v3 = vpop.f32.mrf.mxu0 }
 0x100   :  { %v1201_v4 = vadd.f32 %v1920_v0, %v2847_v12  ;;  %v2015_v5 = vpop.f32.mrf.mxu1 }
 0x101   :  { %v1922_v6 = vpop.f32.mrf.mxu0 }
 0x102   :  { %v2868_v7 = vadd.f32 %v2014_v2, %v1201_v4  ;;  %v1923_v8 = vadd.f32 %v1922_v6, %v1921_v3  ;;  %v2016_v9 = vpop.f32.mrf.mxu1 }
 0x103   :  { %v2017_v10 = vadd.f32 %v2016_v9, %v2015_v5  ;;  %v1924_v11 = vpop.f32.mrf.mxu0 }
 0x104   :  { %v1204_v13 = vadd.f32 %v1923_v8, %v2847_v12  ;;  %v2018_v14 = vpop.f32.mrf.mxu1 }
 0x105   :  { %v1925_v15 = vpop.f32.mrf.mxu0 }
 0x106   :  { %v2871_v16 = vadd.f32 %v2017_v10, %v1204_v13  ;;  %v1926_v17 = vadd.f32 %v1925_v15, %v1924_v11  ;;  %v2019_v18 = vpop.f32.mrf.mxu1 }
 0x107   :  { %v2020_v19 = vadd.f32 %v2019_v18, %v2018_v14  ;;  %v1927_v20 = vpop.f32.mrf.mxu0 }
 0x108   :  { %v1209_v21 = vadd.f32 %v1926_v17, %v2847_v12  ;;  %v2021_v22 = vpop.f32.mrf.mxu1 }
 0x109   :  { %v1928_v24 = vpop.f32.mrf.mxu0 }
 0x10a   :  { %v2874_v25 = vadd.f32 %v2020_v19, %v1209_v21  ;;  %v1929_v26 = vadd.f32 %v1928_v24, %v1927_v20  ;;  %v2022_v27 = vpop.f32.mrf.mxu1 }
 0x10b   :  { %v2023_v28 = vadd.f32 %v2022_v27, %v2021_v22  ;;  %v1930_v29 = vpop.f32.mrf.mxu0 }
 0x10c   :  { %v1212_v30 = vadd.f32 %v1929_v26, %v2847_v12  ;;  %v2024_v32 = vpop.f32.mrf.mxu1 }
 0x10d   :  { %v1931_v33 = vpop.f32.mrf.mxu0 }
 0x10e   :  { %v2877_v34 = vadd.f32 %v2023_v28, %v1212_v30  ;;  %v1932_v35 = vadd.f32 %v1931_v33, %v1930_v29  ;;  %v2025_v36 = vpop.f32.mrf.mxu1 }
 0x10f   :  { %v2026_v37 = vadd.f32 %v2025_v36, %v2024_v32  ;;  %v1933_v38 = vpop.f32.mrf.mxu0 }
 0x110   :  { %v1217_v40 = vadd.f32 %v1932_v35, %v2847_v12  ;;  %v2027_v41 = vpop.f32.mrf.mxu1 }
 0x111   :  { %v1934_v42 = vpop.f32.mrf.mxu0 }
 0x112   :  { %v2880_v43 = vadd.f32 %v2026_v37, %v1217_v40  ;;  %v1935_v44 = vadd.f32 %v1934_v42, %v1933_v38  ;;  %v2028_v45 = vpop.f32.mrf.mxu1 }
 0x113   :  { %v2029_v46 = vadd.f32 %v2028_v45, %v2027_v41  ;;  %v1936_v48 = vpop.f32.mrf.mxu0 }
 0x114   :  { %v1220_v49 = vadd.f32 %v1935_v44, %v2847_v12  ;;  %v2030_v50 = vpop.f32.mrf.mxu1 }
 0x115   :  { %v1937_v51 = vpop.f32.mrf.mxu0 }
 0x116   :  { %v2883_v52 = vadd.f32 %v2029_v46, %v1220_v49  ;;  %v1938_v53 = vadd.f32 %v1937_v51, %v1936_v48  ;;  %v2031_v54 = vpop.f32.mrf.mxu1 }
 0x117   :  { %v2032_v56 = vadd.f32 %v2031_v54, %v2030_v50  ;;  %v1939_v57 = vpop.f32.mrf.mxu0 }
 0x118   :  { %v1225_v58 = vadd.f32 %v1938_v53, %v2847_v12  ;;  %v2033_v59 = vpop.f32.mrf.mxu1 }
 0x119   :  { %v1940_v60 = vpop.f32.mrf.mxu0 }
 0x11a   :  { %v2886_v61 = vadd.f32 %v2032_v56, %v1225_v58  ;;  %v1941_v62 = vadd.f32 %v1940_v60, %v1939_v57  ;;  %v2034_v0 = vpop.f32.mrf.mxu1 }
 0x11b   :  { %v2035_v1 = vadd.f32 %v2034_v0, %v2033_v59  ;;  %v1942_v2 = vpop.f32.mrf.mxu0 }
 0x11c   :  { %v1228_v3 = vadd.f32 %v1941_v62, %v2847_v12  ;;  %v2036_v4 = vpop.f32.mrf.mxu1 }
 0x11d   :  { %v1943_v5 = vpop.f32.mrf.mxu0 }
 0x11e   :  { %v2889_v6 = vadd.f32 %v2035_v1, %v1228_v3  ;;  %v1944_v8 = vadd.f32 %v1943_v5, %v1942_v2  ;;  %v2037_v9 = vpop.f32.mrf.mxu1 }
 0x11f   :  { %v2038_v10 = vadd.f32 %v2037_v9, %v2036_v4  ;;  %v1945_v11 = vpop.f32.mrf.mxu0 }
 0x120   :  { %v1233_v13 = vadd.f32 %v1944_v8, %v2847_v12  ;;  %v2039_v14 = vpop.f32.mrf.mxu1 }
 0x121   :  { %v1946_v15 = vpop.f32.mrf.mxu0 }
 0x122   :  { %v2892_v17 = vadd.f32 %v2038_v10, %v1233_v13  ;;  %v1947_v18 = vadd.f32 %v1946_v15, %v1945_v11  ;;  %v2040_v19 = vpop.f32.mrf.mxu1 }
 0x123   :  { %v2041_v20 = vadd.f32 %v2040_v19, %v2039_v14  ;;  %v1948_v21 = vpop.f32.mrf.mxu0 }
 0x124   :  { %v1236_v22 = vadd.f32 %v1947_v18, %v2847_v12  ;;  %v2042_v24 = vpop.f32.mrf.mxu1 }
 0x125   :  { %v1949_v26 = vpop.f32.mrf.mxu0 }
 0x126   :  { %v2895_v27 = vadd.f32 %v2041_v20, %v1236_v22  ;;  %v1950_v28 = vadd.f32 %v1949_v26, %v1948_v21  ;;  %v2043_v29 = vpop.f32.mrf.mxu1 }
 0x127   :  { %v2044_v30 = vadd.f32 %v2043_v29, %v2042_v24  ;;  %v1951_v32 = vpop.f32.mrf.mxu0 }
 0x128   :  { %v1241_v33 = vadd.f32 %v1950_v28, %v2847_v12  ;;  %v2045_v35 = vpop.f32.mrf.mxu1 }
 0x129   :  { %v1952_v36 = vpop.f32.mrf.mxu0 }
 0x12a   :  { %v2898_v37 = vadd.f32 %v2044_v30, %v1241_v33  ;;  %v1953_v38 = vadd.f32 %v1952_v36, %v1951_v32  ;;  %v2046_v40 = vpop.f32.mrf.mxu1 }
 0x12b   :  { %v2047_v41 = vadd.f32 %v2046_v40, %v2045_v35  ;;  %v1954_v42 = vpop.f32.mrf.mxu0 }
 0x12c   :  { %v1244_v44 = vadd.f32 %v1953_v38, %v2847_v12  ;;  %v2048_v45 = vpop.f32.mrf.mxu1 }
 0x12d   :  { %v1955_v46 = vpop.f32.mrf.mxu0 }
 0x12e   :  { %v2901_v48 = vadd.f32 %v2047_v41, %v1244_v44  ;;  %v1956_v49 = vadd.f32 %v1955_v46, %v1954_v42  ;;  %v2049_v50 = vpop.f32.mrf.mxu1 }
 0x12f   :  { %v2050_v51 = vadd.f32 %v2049_v50, %v2048_v45  ;;  %v1957_v53 = vpop.f32.mrf.mxu0 }
 0x130   :  { %v1249_v54 = vadd.f32 %v1956_v49, %v2847_v12  ;;  %v2051_v56 = vpop.f32.mrf.mxu1 }
 0x131   :  { %v1958_v57 = vpop.f32.mrf.mxu0 }
 0x132   :  { %v2904_v58 = vadd.f32 %v2050_v51, %v1249_v54  ;;  %v1959_v59 = vadd.f32 %v1958_v57, %v1957_v53  ;;  %v2052_v60 = vpop.f32.mrf.mxu1 }
 0x133   :  { %v2053_v62 = vadd.f32 %v2052_v60, %v2051_v56  ;;  %v1960_v0 = vpop.f32.mrf.mxu0 }
 0x134   :  { %v1252_v1 = vadd.f32 %v1959_v59, %v2847_v12  ;;  %v2054_v2 = vpop.f32.mrf.mxu1 }
 0x135   :  { %v1961_v3 = vpop.f32.mrf.mxu0 }
 0x136   :  { %v2907_v4 = vadd.f32 %v2053_v62, %v1252_v1  ;;  %v1962_v5 = vadd.f32 %v1961_v3, %v1960_v0  ;;  %v2055_v8 = vpop.f32.mrf.mxu1 }
 0x137   :  { %v2056_v9 = vadd.f32 %v2055_v8, %v2054_v2  ;;  %v1963_v10 = vpop.f32.mrf.mxu0 }
 0x138   :  { %v1257_v11 = vadd.f32 %v1962_v5, %v2847_v12  ;;  %v2057_v13 = vpop.f32.mrf.mxu1 }
 0x139   :  { %v1964_v14 = vpop.f32.mrf.mxu0 }
 0x13a   :  { %v2910_v15 = vadd.f32 %v2056_v9, %v1257_v11  ;;  %v1965_v18 = vadd.f32 %v1964_v14, %v1963_v10  ;;  %v2058_v19 = vpop.f32.mrf.mxu1 }
 0x13b   :  { %v2059_v20 = vadd.f32 %v2058_v19, %v2057_v13  ;;  %v1966_v21 = vpop.f32.mrf.mxu0 }
 0x13c   :  { %v1260_v22 = vadd.f32 %v1965_v18, %v2847_v12  ;;  %v2060_v24 = vpop.f32.mrf.mxu1 }
 0x13d   :  { %v1967_v26 = vpop.f32.mrf.mxu0 }
 0x13e   :  { %v2913_v28 = vadd.f32 %v2059_v20, %v1260_v22  ;;  %v1968_v29 = vadd.f32 %v1967_v26, %v1966_v21  ;;  %v2061_v30 = vpop.f32.mrf.mxu1 }
 0x13f   :  { %v2062_v32 = vadd.f32 %v2061_v30, %v2060_v24  ;;  %v1969_v33 = vpop.f32.mrf.mxu0 }
 0x140   :  { %v1265_v35 = vadd.f32 %v1968_v29, %v2847_v12  ;;  %v2063_v36 = vpop.f32.mrf.mxu1 }
 0x141   :  { %v1970_v38 = vpop.f32.mrf.mxu0 }
 0x142   :  { %v2916_v40 = vadd.f32 %v2062_v32, %v1265_v35  ;;  %v1971_v41 = vadd.f32 %v1970_v38, %v1969_v33  ;;  %v2064_v42 = vpop.f32.mrf.mxu1 }
 0x143   :  { %v2065_v44 = vadd.f32 %v2064_v42, %v2063_v36  ;;  %v1972_v45 = vpop.f32.mrf.mxu0 }
 0x144   :  { %v1268_v46 = vadd.f32 %v1971_v41, %v2847_v12  ;;  %v2066_v49 = vpop.f32.mrf.mxu1 }
 0x145   :  { %v1973_v50 = vpop.f32.mrf.mxu0 }
 0x146   :  { %v2919_v51 = vadd.f32 %v2065_v44, %v1268_v46  ;;  %v1974_v53 = vadd.f32 %v1973_v50, %v1972_v45  ;;  %v2067_v54 = vpop.f32.mrf.mxu1 }
 0x147   :  { %v2068_v56 = vadd.f32 %v2067_v54, %v2066_v49  ;;  %v1975_v57 = vpop.f32.mrf.mxu0 }
 0x148   :  { %v1273_v59 = vadd.f32 %v1974_v53, %v2847_v12  ;;  %v2069_v60 = vpop.f32.mrf.mxu1 }
 0x149   :  { %v1976_v62 = vpop.f32.mrf.mxu0 }
 0x14a   :  { %v2922_v0 = vadd.f32 %v2068_v56, %v1273_v59  ;;  %v2070_v1 = vpop.f32.mrf.mxu1 }
 0x14b   :  { %v2088_v2 = vpop.f32.mrf.mxu0 }
 0x14c   :  { %v2182_v3 = vpop.f32.mrf.mxu1 }
 0x14d   :  { %v2089_v5 = vpop.f32.mrf.mxu0 }
 0x14e   :  { %v2090_v8 = vadd.f32 %v2089_v5, %v2088_v2  ;;  %v2183_v9 = vpop.f32.mrf.mxu1 }
 0x14f   :  { %v2091_v10 = vpop.f32.mrf.mxu0  ;;  %v2184_v13 = vadd.f32 %v2183_v9, %v2182_v3 }
 0x150   :  { %v1449_v11 = vadd.f32 %v2090_v8, %v2850_v23  ;;  %v2185_v14 = vpop.f32.mrf.mxu1 }
 0x151   :  { %v2092_v18 = vpop.f32.mrf.mxu0 }
 0x152   :  { %v1585_v19 = vadd.f32 %v2184_v13, %v1449_v11  ;;  %v2093_v20 = vadd.f32 %v2092_v18, %v2091_v10  ;;  %v2186_v21 = vpop.f32.mrf.mxu1 }
 0x153   :  { %v2094_v12 = vpop.f32.mrf.mxu0  ;;  %v2187_v24 = vadd.f32 %v2186_v21, %v2185_v14 }
 0x154   :  { %1686 = vst [vmem:[%s3027_s3] sm:$0xff] %v1585_v19  ;;  %v1452_v22 = vadd.f32 %v2093_v20, %v2853_v31  ;;  %v2188_v26 = vpop.f32.mrf.mxu1 }
 0x155   :  { %v2095_v29 = vpop.f32.mrf.mxu0 }
 0x156   :  { %v1588_v30 = vadd.f32 %v2187_v24, %v1452_v22  ;;  %v2096_v32 = vadd.f32 %v2095_v29, %v2094_v12  ;;  %v2189_v33 = vpop.f32.mrf.mxu1 }
 0x157   :  { %v2097_v23 = vpop.f32.mrf.mxu0  ;;  %v2190_v36 = vadd.f32 %v2189_v33, %v2188_v26 }
 0x158   :  { %1687 = vst [vmem:[%s3027_s3 + $0x8] sm:$0xff] %v1588_v30  ;;  %v1457_v35 = vadd.f32 %v2096_v32, %v2856_v39  ;;  %v2191_v38 = vpop.f32.mrf.mxu1 }
 0x159   :  { %v2098_v41 = vpop.f32.mrf.mxu0 }
 0x15a   :  { %v1593_v42 = vadd.f32 %v2190_v36, %v1457_v35  ;;  %v2099_v44 = vadd.f32 %v2098_v41, %v2097_v23  ;;  %v2192_v45 = vpop.f32.mrf.mxu1 }
 0x15b   :  { %v2100_v31 = vpop.f32.mrf.mxu0  ;;  %v2193_v49 = vadd.f32 %v2192_v45, %v2191_v38 }
 0x15c   :  { %1688 = vst [vmem:[%s3027_s3 + $0x10] sm:$0xff] %v1593_v42  ;;  %v1460_v46 = vadd.f32 %v2099_v44, %v2859_v47  ;;  %v2194_v50 = vpop.f32.mrf.mxu1 }
 0x15d   :  { %v2101_v53 = vpop.f32.mrf.mxu0 }
 0x15e   :  { %v1596_v54 = vadd.f32 %v2193_v49, %v1460_v46  ;;  %v2102_v56 = vadd.f32 %v2101_v53, %v2100_v31  ;;  %v2195_v57 = vpop.f32.mrf.mxu1 }
 0x15f   :  { %v2103_v39 = vpop.f32.mrf.mxu0  ;;  %v2196_v60 = vadd.f32 %v2195_v57, %v2194_v50 }
 0x160   :  { %1689 = vst [vmem:[%s3027_s3 + $0x18] sm:$0xff] %v1596_v54  ;;  %v1465_v59 = vadd.f32 %v2102_v56, %v2862_v55  ;;  %v2197_v62 = vpop.f32.mrf.mxu1 }
 0x161   :  { %v2104_v1 = vpop.f32.mrf.mxu0 }
 0x162   :  { %v1601_v2 = vadd.f32 %v2196_v60, %v1465_v59  ;;  %v2105_v3 = vadd.f32 %v2104_v1, %v2103_v39  ;;  %v2198_v5 = vpop.f32.mrf.mxu1 }
 0x163   :  { %v2106_v47 = vpop.f32.mrf.mxu0  ;;  %v2199_v9 = vadd.f32 %v2198_v5, %v2197_v62 }
 0x164   :  { %1690 = vst [vmem:[%s3027_s3 + $0x20] sm:$0xff] %v1601_v2  ;;  %v1468_v8 = vadd.f32 %v2105_v3, %v2865_v63  ;;  %v2200_v10 = vpop.f32.mrf.mxu1 }
 0x165   :  { %v2107_v11 = vpop.f32.mrf.mxu0 }
 0x166   :  { %v1604_v13 = vadd.f32 %v2199_v9, %v1468_v8  ;;  %v2108_v14 = vadd.f32 %v2107_v11, %v2106_v47  ;;  %v2201_v18 = vpop.f32.mrf.mxu1 }
 0x167   :  { %v2109_v55 = vpop.f32.mrf.mxu0  ;;  %v2202_v20 = vadd.f32 %v2201_v18, %v2200_v10 }
 0x168   :  { %1691 = vst [vmem:[%s3027_s3 + $0x28] sm:$0xff] %v1604_v13  ;;  %v1473_v19 = vadd.f32 %v2108_v14, %v2868_v7  ;;  %v2203_v21 = vpop.f32.mrf.mxu1 }
 0x169   :  { %v2110_v12 = vpop.f32.mrf.mxu0 }
 0x16a   :  { %v1609_v22 = vadd.f32 %v2202_v20, %v1473_v19  ;;  %v2111_v24 = vadd.f32 %v2110_v12, %v2109_v55  ;;  %v2204_v26 = vpop.f32.mrf.mxu1 }
 0x16b   :  { %v2112_v63 = vpop.f32.mrf.mxu0  ;;  %v2205_v30 = vadd.f32 %v2204_v26, %v2203_v21 }
 0x16c   :  { %1692 = vst [vmem:[%s3027_s3 + $0x30] sm:$0xff] %v1609_v22  ;;  %v1476_v29 = vadd.f32 %v2111_v24, %v2871_v16  ;;  %v2206_v32 = vpop.f32.mrf.mxu1 }
 0x16d   :  { %v2113_v33 = vpop.f32.mrf.mxu0 }
 0x16e   :  { %v1612_v23 = vadd.f32 %v2205_v30, %v1476_v29  ;;  %v2114_v35 = vadd.f32 %v2113_v33, %v2112_v63  ;;  %v2207_v36 = vpop.f32.mrf.mxu1 }
 0x16f   :  { %v2115_v7 = vpop.f32.mrf.mxu0  ;;  %v2208_v41 = vadd.f32 %v2207_v36, %v2206_v32 }
 0x170   :  { %1693 = vst [vmem:[%s3027_s3 + $0x38] sm:$0xff] %v1612_v23  ;;  %v1481_v38 = vadd.f32 %v2114_v35, %v2874_v25  ;;  %v2209_v42 = vpop.f32.mrf.mxu1 }
 0x171   :  { %v2116_v44 = vpop.f32.mrf.mxu0 }
 0x172   :  { %v1617_v45 = vadd.f32 %v2208_v41, %v1481_v38  ;;  %v2117_v31 = vadd.f32 %v2116_v44, %v2115_v7  ;;  %v2210_v46 = vpop.f32.mrf.mxu1 }
 0x173   :  { %v2118_v16 = vpop.f32.mrf.mxu0  ;;  %v2211_v50 = vadd.f32 %v2210_v46, %v2209_v42 }
 0x174   :  { %1694 = vst [vmem:[%s3027_s3 + $0x40] sm:$0xff] %v1617_v45  ;;  %v1484_v49 = vadd.f32 %v2117_v31, %v2877_v34  ;;  %v2212_v53 = vpop.f32.mrf.mxu1 }
 0x175   :  { %v2119_v54 = vpop.f32.mrf.mxu0 }
 0x176   :  { %v1620_v56 = vadd.f32 %v2211_v50, %v1484_v49  ;;  %v2120_v57 = vadd.f32 %v2119_v54, %v2118_v16  ;;  %v2213_v39 = vpop.f32.mrf.mxu1 }
 0x177   :  { %v2121_v25 = vpop.f32.mrf.mxu0  ;;  %v2214_v60 = vadd.f32 %v2213_v39, %v2212_v53 }
 0x178   :  { %1695 = vst [vmem:[%s3027_s3 + $0x48] sm:$0xff] %v1620_v56  ;;  %v1489_v59 = vadd.f32 %v2120_v57, %v2880_v43  ;;  %v2215_v62 = vpop.f32.mrf.mxu1 }
 0x179   :  { %v2122_v1 = vpop.f32.mrf.mxu0 }
 0x17a   :  { %v1625_v2 = vadd.f32 %v2214_v60, %v1489_v59  ;;  %v2123_v3 = vadd.f32 %v2122_v1, %v2121_v25  ;;  %v2216_v5 = vpop.f32.mrf.mxu1 }
 0x17b   :  { %v2124_v34 = vpop.f32.mrf.mxu0  ;;  %v2217_v8 = vadd.f32 %v2216_v5, %v2215_v62 }
 0x17c   :  { %1696 = vst [vmem:[%s3027_s3 + $0x50] sm:$0xff] %v1625_v2  ;;  %v1492_v47 = vadd.f32 %v2123_v3, %v2883_v52  ;;  %v2218_v9 = vpop.f32.mrf.mxu1 }
 0x17d   :  { %v2125_v10 = vpop.f32.mrf.mxu0 }
 0x17e   :  { %v1628_v11 = vadd.f32 %v2217_v8, %v1492_v47  ;;  %v2126_v13 = vadd.f32 %v2125_v10, %v2124_v34  ;;  %v2219_v14 = vpop.f32.mrf.mxu1 }
 0x17f   :  { %v2127_v43 = vpop.f32.mrf.mxu0  ;;  %v2220_v55 = vadd.f32 %v2219_v14, %v2218_v9 }
 0x180   :  { %1697 = vst [vmem:[%s3027_s3 + $0x58] sm:$0xff] %v1628_v11  ;;  %v1497_v18 = vadd.f32 %v2126_v13, %v2886_v61  ;;  %v2221_v19 = vpop.f32.mrf.mxu1 }
 0x181   :  { %v2128_v20 = vpop.f32.mrf.mxu0 }
 0x182   :  { %v1633_v21 = vadd.f32 %v2220_v55, %v1497_v18  ;;  %v2129_v12 = vadd.f32 %v2128_v20, %v2127_v43  ;;  %v2222_v22 = vpop.f32.mrf.mxu1 }
 0x183   :  { %v2130_v52 = vpop.f32.mrf.mxu0  ;;  %v2223_v26 = vadd.f32 %v2222_v22, %v2221_v19 }
 0x184   :  { %1698 = vst [vmem:[%s3027_s3 + $0x60] sm:$0xff] %v1633_v21  ;;  %v1500_v24 = vadd.f32 %v2129_v12, %v2889_v6  ;;  %v2224_v63 = vpop.f32.mrf.mxu1 }
 0x185   :  { %v2131_v29 = vpop.f32.mrf.mxu0 }
 0x186   :  { %v1636_v30 = vadd.f32 %v2223_v26, %v1500_v24  ;;  %v2132_v32 = vadd.f32 %v2131_v29, %v2130_v52  ;;  %v2225_v33 = vpop.f32.mrf.mxu1 }
 0x187   :  { %v2133_v61 = vpop.f32.mrf.mxu0  ;;  %v2226_v35 = vadd.f32 %v2225_v33, %v2224_v63 }
 0x188   :  { %1699 = vst [vmem:[%s3027_s3 + $0x68] sm:$0xff] %v1636_v30  ;;  %v1505_v23 = vadd.f32 %v2132_v32, %v2892_v17  ;;  %v2227_v36 = vpop.f32.mrf.mxu1 }
 0x189   :  { %v2134_v7 = vpop.f32.mrf.mxu0 }
 0x18a   :  { %v1641_v38 = vadd.f32 %v2226_v35, %v1505_v23  ;;  %v2135_v41 = vadd.f32 %v2134_v7, %v2133_v61  ;;  %v2228_v42 = vpop.f32.mrf.mxu1 }
 0x18b   :  { %v2136_v6 = vpop.f32.mrf.mxu0  ;;  %v2229_v45 = vadd.f32 %v2228_v42, %v2227_v36 }
 0x18c   :  { %1700 = vst [vmem:[%s3027_s3 + $0x70] sm:$0xff] %v1641_v38  ;;  %v1508_v44 = vadd.f32 %v2135_v41, %v2895_v27  ;;  %v2230_v31 = vpop.f32.mrf.mxu1 }
 0x18d   :  { %v2137_v46 = vpop.f32.mrf.mxu0 }
 0x18e   :  { %v1644_v16 = vadd.f32 %v2229_v45, %v1508_v44  ;;  %v2138_v49 = vadd.f32 %v2137_v46, %v2136_v6  ;;  %v2231_v50 = vpop.f32.mrf.mxu1 }
 0x18f   :  { %v2139_v17 = vpop.f32.mrf.mxu0  ;;  %v2232_v54 = vadd.f32 %v2231_v50, %v2230_v31 }
 0x190   :  { %1701 = vst [vmem:[%s3027_s3 + $0x78] sm:$0xff] %v1644_v16  ;;  %v1513_v53 = vadd.f32 %v2138_v49, %v2898_v37  ;;  %v2233_v56 = vpop.f32.mrf.mxu1 }
 0x191   :  { %v2140_v57 = vpop.f32.mrf.mxu0 }
 0x192   :  { %v1649_v39 = vadd.f32 %v2232_v54, %v1513_v53  ;;  %v2141_v25 = vadd.f32 %v2140_v57, %v2139_v17  ;;  %v2234_v59 = vpop.f32.mrf.mxu1 }
 0x193   :  { %v2142_v27 = vpop.f32.mrf.mxu0  ;;  %v2235_v62 = vadd.f32 %v2234_v59, %v2233_v56 }
 0x194   :  { %1702 = vst [vmem:[%s3027_s3 + $0x80] sm:$0xff] %v1649_v39  ;;  %v1516_v60 = vadd.f32 %v2141_v25, %v2901_v48  ;;  %v2236_v1 = vpop.f32.mrf.mxu1 }
 0x195   :  { %v2143_v2 = vpop.f32.mrf.mxu0 }
 0x196   :  { %v1652_v3 = vadd.f32 %v2235_v62, %v1516_v60  ;;  %v2144_v5 = vadd.f32 %v2143_v2, %v2142_v27  ;;  %v2237_v34 = vpop.f32.mrf.mxu1 }
 0x197   :  { %v2145_v37 = vpop.f32.mrf.mxu0  ;;  %v2238_v8 = vadd.f32 %v2237_v34, %v2236_v1 }
 0x198   :  { %1703 = vst [vmem:[%s3027_s3 + $0x88] sm:$0xff] %v1652_v3  ;;  %v1521_v47 = vadd.f32 %v2144_v5, %v2904_v58  ;;  %v2239_v9 = vpop.f32.mrf.mxu1 }
 0x199   :  { %v2146_v10 = vpop.f32.mrf.mxu0 }
 0x19a   :  { %v1657_v11 = vadd.f32 %v2238_v8, %v1521_v47  ;;  %v2147_v13 = vadd.f32 %v2146_v10, %v2145_v37  ;;  %v2240_v14 = vpop.f32.mrf.mxu1 }
 0x19b   :  { %v2148_v48 = vpop.f32.mrf.mxu0  ;;  %v2241_v18 = vadd.f32 %v2240_v14, %v2239_v9 }
 0x19c   :  { %1704 = vst [vmem:[%s3027_s3 + $0x90] sm:$0xff] %v1657_v11  ;;  %v1524_v43 = vadd.f32 %v2147_v13, %v2907_v4  ;;  %v2242_v55 = vpop.f32.mrf.mxu1 }
 0x19d   :  { %v2149_v19 = vpop.f32.mrf.mxu0 }
 0x19e   :  { %v1660_v20 = vadd.f32 %v2241_v18, %v1524_v43  ;;  %v2150_v21 = vadd.f32 %v2149_v19, %v2148_v48  ;;  %v2243_v12 = vpop.f32.mrf.mxu1 }
 0x19f   :  { %v2151_v58 = vpop.f32.mrf.mxu0  ;;  %v2244_v52 = vadd.f32 %v2243_v12, %v2242_v55 }
 0x1a0   :  { %1705 = vst [vmem:[%s3027_s3 + $0x98] sm:$0xff] %v1660_v20  ;;  %v1529_v22 = vadd.f32 %v2150_v21, %v2910_v15  ;;  %v2245_v24 = vpop.f32.mrf.mxu1 }
 0x1a1   :  { %v2152_v26 = vpop.f32.mrf.mxu0 }
 0x1a2   :  { %v1665_v63 = vadd.f32 %v2244_v52, %v1529_v22  ;;  %v2153_v29 = vadd.f32 %v2152_v26, %v2151_v58  ;;  %v2246_v30 = vpop.f32.mrf.mxu1 }
 0x1a3   :  { %v2154_v4 = vpop.f32.mrf.mxu0  ;;  %v2247_v33 = vadd.f32 %v2246_v30, %v2245_v24 }
 0x1a4   :  { %1706 = vst [vmem:[%s3027_s3 + $0xa0] sm:$0xff] %v1665_v63  ;;  %v1532_v32 = vadd.f32 %v2153_v29, %v2913_v28  ;;  %v2248_v61 = vpop.f32.mrf.mxu1 }
 0x1a5   :  { %v2155_v23 = vpop.f32.mrf.mxu0 }
 0x1a6   :  { %v1668_v35 = vadd.f32 %v2247_v33, %v1532_v32  ;;  %v2156_v36 = vadd.f32 %v2155_v23, %v2154_v4  ;;  %v2249_v7 = vpop.f32.mrf.mxu1 }
 0x1a7   :  { %v2157_v15 = vpop.f32.mrf.mxu0  ;;  %v2250_v41 = vadd.f32 %v2249_v7, %v2248_v61 }
 0x1a8   :  { %1707 = vst [vmem:[%s3027_s3 + $0xa8] sm:$0xff] %v1668_v35  ;;  %v1537_v38 = vadd.f32 %v2156_v36, %v2916_v40  ;;  %v2251_v42 = vpop.f32.mrf.mxu1 }
 0x1a9   :  { %v2158_v6 = vpop.f32.mrf.mxu0 }
 0x1aa   :  { %v1673_v44 = vadd.f32 %v2250_v41, %v1537_v38  ;;  %v2159_v45 = vadd.f32 %v2158_v6, %v2157_v15  ;;  %v2252_v31 = vpop.f32.mrf.mxu1 }
 0x1ab   :  { %v2160_v28 = vpop.f32.mrf.mxu0  ;;  %v2253_v16 = vadd.f32 %v2252_v31, %v2251_v42 }
 0x1ac   :  { %1708 = vst [vmem:[%s3027_s3 + $0xb0] sm:$0xff] %v1673_v44  ;;  %v1540_v46 = vadd.f32 %v2159_v45, %v2919_v51  ;;  %v2254_v49 = vpop.f32.mrf.mxu1 }
 0x1ad   :  { %v2161_v50 = vpop.f32.mrf.mxu0 }
 0x1ae   :  { %v1676_v17 = vadd.f32 %v2253_v16, %v1540_v46  ;;  %v2162_v53 = vadd.f32 %v2161_v50, %v2160_v28  ;;  %v2255_v54 = vpop.f32.mrf.mxu1 }
 0x1af   :  { %v2163_v40 = vpop.f32.mrf.mxu0  ;;  %v2256_v57 = vadd.f32 %v2255_v54, %v2254_v49 }
 0x1b0   :  { %1709 = vst [vmem:[%s3027_s3 + $0xb8] sm:$0xff] %v1676_v17  ;;  %v1545_v56 = vadd.f32 %v2162_v53, %v2922_v0  ;;  %v2257_v39 = vpop.f32.mrf.mxu1 }
 0x1b1   :  { %v2164_v25 = vpop.f32.mrf.mxu0 }
 0x1b2   :  { %v1681_v59 = vadd.f32 %v2256_v57, %v1545_v56  ;;  %v2258_v27 = vpop.f32.mrf.mxu1 }
 0x1b4   :  { %1710 = vst [vmem:[%s3027_s3 + $0xc0] sm:$0xff] %v1681_v59 }

</bundles_post_ra>
